<compile_context>
chip_gen: v6e
topology: v6e:2x2x1
jax: 0.10.0
libtpu: 0.0.40
codegen_flags: <defaults>
</compile_context>

<pallas_src>
import functools

import numpy as np
import jax
import jax.numpy as jnp
from jax import lax
from jax.experimental import pallas as pl
from jax.experimental.pallas import tpu as pltpu

R = 5            # radius of the 11x11 all-ones "dist" conv
BN_EPS = 1e-5    # nn.BatchNorm2d default eps
TEMP = 0.5       # random_sample temperature
NSAMPLES = 5     # sampling_num


def _basic_block_kernel(B, C, H, W,
                        p_ref, a_ref, aones_ref, cheye_ref, wn_ref, g_ref, x_ref,
                        out_ref, ac_ref):
    """Whole BasicBlock forward on one lane-dense (B*C, H*W) slab.

    p_ref     : (8, HW, HW)    0/1 tap-shift matrices (center tap excluded), shared by layers
    a_ref     : (2, BC, 9*BC)  per-layer conv mixing matrix (weights folded in, block-diag in b)
    aones_ref : (BC, 9*BC)     all-ones mixing matrix -> x_norm^2
    cheye_ref : (BC, BC)       per-channel cross-batch summation matrix (BatchNorm stats)
    wn_ref    : (2, BC, 1)     per-out-channel Frobenius norms, replicated over batch rows
    g_ref     : (2, NS, BC, HW) precomputed Gumbel noise for the categorical draws
    x_ref     : (BC, HW)       input slab;  out_ref: (BC, HW);  ac_ref: (1, 1)
    """
    f32 = jnp.float32
    BC = B * C
    HW = H * W
    NS = g_ref.shape[1]

    # ---- hoisted spatial coordinate planes (shared by both layer invocations) ----
    pos = lax.broadcasted_iota(jnp.int32, (1, 1, HW), 2).astype(f32)   # flattened position
    hpos = jnp.floor(pos / W)
    wpos = pos - hpos * W

    cheye = cheye_ref[...]
    aones = aones_ref[...]
    x0 = x_ref[...]

    def tap_stack(xs):
        # 9 shifted (zero-padded) copies of the slab, stacked along sublanes: (9*BC, HW).
        # Shifts ride the MXU as 0/1 matmuls -> no unaligned lane concats, VPU stays free.
        taps = []
        for t in range(9):
            if t == 4:                      # center tap == identity
                taps.append(xs)
            else:
                taps.append(jnp.dot(xs, p_ref[t if t < 4 else t - 1],
                                    preferred_element_type=f32))
        return jnp.concatenate(taps, axis=0)

    def layer(xs, a_mix, wn_col, gum, residual):
        t_all = tap_stack(xs)                                           # (9*BC, HW)

        # 3x3 conv (weights + cin->cout contraction folded into one small matmul) and
        # the all-ones 3x3 conv of x^2 for the activation norm.
        y = jnp.dot(a_mix, t_all, preferred_element_type=f32)          # (BC, HW)
        nsq = jnp.dot(aones, t_all * t_all, preferred_element_type=f32)
        x_norm = jnp.sqrt(nsq)
        cos = y / ((wn_col + 1e-6) * (x_norm + 1e-6))                   # exact division

        # ---- activation-cosine statistic: all NS draws and all (b,c) rows batched.
        #      argmax(score + Gumbel) ~ Categorical(exp(cosine/T)); the 11x11 box mean is
        #      evaluated only at the drawn centers via a window mask (zero-pad == truncation).
        sc = cos[None] * (1.0 / TEMP) + gum                              # (NS, BC, HW)
        m = jnp.max(sc, axis=2, keepdims=True)
        sel = sc >= m
        # single flattened-position reduction (also fixes the argmax tie-mixing bug)
        psel = jnp.min(jnp.where(sel, pos, float(HW)), axis=2, keepdims=True)
        hs = jnp.floor(psel / W)
        ws = psel - hs * W
        win = (jnp.abs(hpos - hs) <= R) & (jnp.abs(wpos - ws) <= R)      # (NS, BC, HW)
        wsum = jnp.sum(jnp.sum(jnp.where(win, cos[None], 0.0), axis=2, keepdims=True),
                       axis=0)                                           # (BC, 1)

        # ---- BatchNorm2d (training-mode batch stats, gamma=1, beta=0) [+ residual] + ReLU
        inv_n = 1.0 / (B * HW)
        mean = jnp.sum(jnp.dot(cheye, y, preferred_element_type=f32),
                       axis=1, keepdims=True) * inv_n                    # per-channel mean
        cent = y - mean
        var = jnp.sum(jnp.dot(cheye, cent * cent, preferred_element_type=f32),
                      axis=1, keepdims=True) * inv_n                     # biased variance
        o = cent * lax.rsqrt(var + BN_EPS)
        if residual is not None:
            o = o + residual
        return jnp.maximum(o, 0.0), wsum

    h1, s1 = layer(x0, a_ref[0], wn_ref[0], g_ref[0], None)     # conv1 + bn1 + relu
    h2, s2 = layer(h1, a_ref[1], wn_ref[1], g_ref[1], x0)       # conv2 + bn2 + identity + relu

    out_ref[...] = h2                                             # one full lane-dense store
    # mean over (samples, batch, channels) and the 1/121 box normalization, both layers.
    ac_ref[...] = jnp.sum(s1 + s2, axis=0, keepdims=True) * (
        1.0 / (NS * B * C * (2 * R + 1) ** 2))


def _make_tap_matrices(H, W):
    """(8, HW, HW) 0/1 matrices: (X @ P_t)[r, p] = X[r, src(p, tap t)] (0 outside the image).
    Tap order t = di*3 + dj, center tap (t==4 / identity) omitted."""
    HW = H * W
    p = np.zeros((8, HW, HW), np.float32)
    for di in range(3):
        for dj in range(3):
            t = di * 3 + dj
            if t == 4:
                continue
            idx = t if t < 4 else t - 1
            dh, dw = di - 1, dj - 1
            for h in range(H):
                hh = h + dh
                if hh < 0 or hh >= H:
                    continue
                for w in range(W):
                    ww = w + dw
                    if 0 <= ww < W:
                        p[idx, hh * W + ww, h * W + w] = 1.0
    return p


def _mix_matrix(w_oihw, B):
    """PyTorch (Cout, Cin, 3, 3) weight -> (B*Cout, 9*B*Cin) block matrix so that
    conv3x3 output slab = A @ concat_t(tap_t(x) slab)."""
    eye_b = jnp.eye(B, dtype=w_oihw.dtype)
    blocks = [jnp.kron(eye_b, w_oihw[:, :, di, dj])
              for di in range(3) for dj in range(3)]
    return jnp.concatenate(blocks, axis=1)


def _wnorm_col(w_oihw, B):
    """Per-out-channel Frobenius norm (== weight.norm(-1).norm(-1).norm(-1)), one row per
    (b, cout) sublane of the stacked slab."""
    wn = jnp.sqrt(jnp.sum(w_oihw * w_oihw, axis=(1, 2, 3)))      # (Cout,)
    return jnp.tile(wn, B)[:, None]                               # (B*Cout, 1)


@jax.jit
def basic_block_forward(x_nchw, w1_oihw, w2_oihw, key):
    """Returns (out NCHW, activation_cosine_sum scalar)."""
    B, C, H, W = x_nchw.shape
    HW, BC = H * W, B * C

    # Static 0/1 structure matrices (built at trace time, tiny).
    p = jnp.asarray(_make_tap_matrices(H, W))                                  # (8, HW, HW)
    aones = jnp.asarray(np.concatenate(
        [np.kron(np.eye(B), np.ones((C, C)))] * 9, axis=1).astype(np.float32))  # (BC, 9*BC)
    cheye = jnp.asarray(np.kron(np.ones((B, B)), np.eye(C)).astype(np.float32))  # (BC, BC)

    # Per-layer weight-derived operands.
    a = jnp.stack([_mix_matrix(w1_oihw, B), _mix_matrix(w2_oihw, B)])           # (2, BC, 9*BC)
    wn = jnp.stack([_wnorm_col(w1_oihw, B), _wnorm_col(w2_oihw, B)])            # (2, BC, 1)

    # Categorical-sampling noise: argmax(cos/T + Gumbel) ~ Multinomial weights exp(cos/T).
    gum = jax.random.gumbel(key, (2, NSAMPLES, BC, HW), jnp.float32)

    vmem = pl.BlockSpec(memory_space=pltpu.MemorySpace.VMEM)
    out_flat, ac = pl.pallas_call(
        functools.partial(_basic_block_kernel, B, C, H, W),
        out_shape=(jax.ShapeDtypeStruct((BC, HW), jnp.float32),
                   jax.ShapeDtypeStruct((1, 1), jnp.float32)),
        in_specs=[vmem] * 7,
        out_specs=(vmem, vmem),
    )(p, a, aones, cheye, wn, gum, x_nchw.reshape(BC, HW))
    return out_flat.reshape(B, C, H, W), ac[0, 0]


if __name__ == "__main__":
    B, C, H, W = 2, 4, 16, 16          # inplanes == planes == 4, stride=1, downsample=None

    key = jax.random.PRNGKey(0)
    kx, kw1, kw2, kg = jax.random.split(key, 4)

    # PyTorch-layout parameters / input: weight (Cout, Cin, kh, kw), input NCHW.
    w1 = jax.random.normal(kw1, (C, C, 3, 3), jnp.float32) * 0.1
    w2 = jax.random.normal(kw2, (C, C, 3, 3), jnp.float32) * 0.1
    x = jax.random.normal(kx, (B, C, H, W), jnp.float32)

    out, ac_sum = basic_block_forward(x, w1, w2, kg)
    jax.block_until_ready((out, ac_sum))

    assert out.shape == (B, C, H, W)
    assert ac_sum.shape == ()
    assert bool(jnp.all(jnp.isfinite(out))) and bool(jnp.isfinite(ac_sum))
    print("KERNEL_OK")
</pallas_src>

<mosaic_0001>
module attributes {stable_mosaic.version = 11 : i64} {
  func.func @_basic_block_kernel(%arg0: memref<8x256x256xf32, #tpu.memory_space<vmem>>, %arg1: memref<2x8x72xf32, #tpu.memory_space<vmem>>, %arg2: memref<8x72xf32, #tpu.memory_space<vmem>>, %arg3: memref<8x8xf32, #tpu.memory_space<vmem>>, %arg4: memref<2x8x1xf32, #tpu.memory_space<vmem>>, %arg5: memref<2x5x8x256xf32, #tpu.memory_space<vmem>>, %arg6: memref<8x256xf32, #tpu.memory_space<vmem>>, %arg7: memref<8x256xf32, #tpu.memory_space<vmem>>, %arg8: memref<1x1xf32, #tpu.memory_space<vmem>>) attributes {dimension_semantics = [], scalar_prefetch = 0 : i64, scratch_operands = 0 : i64, tpu.core_type = #tpu.core_type<tc>} {
    %0 = tpu.iota {dimensions = array<i32: 2>} : vector<1x1x256xi32>
    %1 = arith.sitofp %0 : vector<1x1x256xi32> to vector<1x1x256xf32>
    %cst = arith.constant 1.600000e+01 : f32
    %2 = vector.broadcast %cst : f32 to vector<1x1x256xf32>
    %3 = arith.divf %1, %2 : vector<1x1x256xf32>
    %4 = math.floor %3 : vector<1x1x256xf32>
    %cst_0 = arith.constant 1.600000e+01 : f32
    %5 = vector.broadcast %cst_0 : f32 to vector<1x1x256xf32>
    %6 = arith.mulf %4, %5 : vector<1x1x256xf32>
    %7 = arith.subf %1, %6 : vector<1x1x256xf32>
    %c0 = arith.constant 0 : index
    %c0_1 = arith.constant 0 : index
    %8 = vector.load %arg3[%c0, %c0_1] : memref<8x8xf32, #tpu.memory_space<vmem>>, vector<8x8xf32>
    %c0_2 = arith.constant 0 : index
    %c0_3 = arith.constant 0 : index
    %9 = vector.load %arg2[%c0_2, %c0_3] : memref<8x72xf32, #tpu.memory_space<vmem>>, vector<8x72xf32>
    %c0_4 = arith.constant 0 : index
    %c0_5 = arith.constant 0 : index
    %10 = vector.load %arg6[%c0_4, %c0_5] : memref<8x256xf32, #tpu.memory_space<vmem>>, vector<8x256xf32>
    %c0_6 = arith.constant 0 : index
    %c0_7 = arith.constant 0 : index
    %c0_8 = arith.constant 0 : index
    %11 = vector.load %arg1[%c0_6, %c0_7, %c0_8] : memref<2x8x72xf32, #tpu.memory_space<vmem>>, vector<1x8x72xf32>
    %12 = vector.shape_cast %11 : vector<1x8x72xf32> to vector<8x72xf32>
    %c0_9 = arith.constant 0 : index
    %c0_10 = arith.constant 0 : index
    %c0_11 = arith.constant 0 : index
    %13 = vector.load %arg4[%c0_9, %c0_10, %c0_11] : memref<2x8x1xf32, #tpu.memory_space<vmem>>, vector<1x8x1xf32>
    %14 = vector.shape_cast %13 : vector<1x8x1xf32> to vector<8x1xf32>
    %c0_12 = arith.constant 0 : index
    %c0_13 = arith.constant 0 : index
    %c0_14 = arith.constant 0 : index
    %c0_15 = arith.constant 0 : index
    %15 = vector.load %arg5[%c0_12, %c0_13, %c0_14, %c0_15] : memref<2x5x8x256xf32, #tpu.memory_space<vmem>>, vector<1x5x8x256xf32>
    %16 = vector.shape_cast %15 : vector<1x5x8x256xf32> to vector<5x8x256xf32>
    %c0_16 = arith.constant 0 : index
    %c0_17 = arith.constant 0 : index
    %c0_18 = arith.constant 0 : index
    %17 = vector.load %arg0[%c0_16, %c0_17, %c0_18] : memref<8x256x256xf32, #tpu.memory_space<vmem>>, vector<1x256x256xf32>
    %18 = vector.shape_cast %17 : vector<1x256x256xf32> to vector<256x256xf32>
    %cst_19 = arith.constant dense<0.000000e+00> : vector<8x256xf32>
    %19 = tpu.matmul %10, %18, %cst_19 {dimension_numbers = #tpu.dot_dimension_numbers<[1], [0], [0], [1], [0, 0, 1, 1], [], []>} : vector<8x256xf32>, vector<256x256xf32>, vector<8x256xf32> -> vector<8x256xf32>
    %c1 = arith.constant 1 : index
    %c0_20 = arith.constant 0 : index
    %c0_21 = arith.constant 0 : index
    %20 = vector.load %arg0[%c1, %c0_20, %c0_21] : memref<8x256x256xf32, #tpu.memory_space<vmem>>, vector<1x256x256xf32>
    %21 = vector.shape_cast %20 : vector<1x256x256xf32> to vector<256x256xf32>
    %cst_22 = arith.constant dense<0.000000e+00> : vector<8x256xf32>
    %22 = tpu.matmul %10, %21, %cst_22 {dimension_numbers = #tpu.dot_dimension_numbers<[1], [0], [0], [1], [0, 0, 1, 1], [], []>} : vector<8x256xf32>, vector<256x256xf32>, vector<8x256xf32> -> vector<8x256xf32>
    %c2 = arith.constant 2 : index
    %c0_23 = arith.constant 0 : index
    %c0_24 = arith.constant 0 : index
    %23 = vector.load %arg0[%c2, %c0_23, %c0_24] : memref<8x256x256xf32, #tpu.memory_space<vmem>>, vector<1x256x256xf32>
    %24 = vector.shape_cast %23 : vector<1x256x256xf32> to vector<256x256xf32>
    %cst_25 = arith.constant dense<0.000000e+00> : vector<8x256xf32>
    %25 = tpu.matmul %10, %24, %cst_25 {dimension_numbers = #tpu.dot_dimension_numbers<[1], [0], [0], [1], [0, 0, 1, 1], [], []>} : vector<8x256xf32>, vector<256x256xf32>, vector<8x256xf32> -> vector<8x256xf32>
    %c3 = arith.constant 3 : index
    %c0_26 = arith.constant 0 : index
    %c0_27 = arith.constant 0 : index
    %26 = vector.load %arg0[%c3, %c0_26, %c0_27] : memref<8x256x256xf32, #tpu.memory_space<vmem>>, vector<1x256x256xf32>
    %27 = vector.shape_cast %26 : vector<1x256x256xf32> to vector<256x256xf32>
    %cst_28 = arith.constant dense<0.000000e+00> : vector<8x256xf32>
    %28 = tpu.matmul %10, %27, %cst_28 {dimension_numbers = #tpu.dot_dimension_numbers<[1], [0], [0], [1], [0, 0, 1, 1], [], []>} : vector<8x256xf32>, vector<256x256xf32>, vector<8x256xf32> -> vector<8x256xf32>
    %c4 = arith.constant 4 : index
    %c0_29 = arith.constant 0 : index
    %c0_30 = arith.constant 0 : index
    %29 = vector.load %arg0[%c4, %c0_29, %c0_30] : memref<8x256x256xf32, #tpu.memory_space<vmem>>, vector<1x256x256xf32>
    %30 = vector.shape_cast %29 : vector<1x256x256xf32> to vector<256x256xf32>
    %cst_31 = arith.constant dense<0.000000e+00> : vector<8x256xf32>
    %31 = tpu.matmul %10, %30, %cst_31 {dimension_numbers = #tpu.dot_dimension_numbers<[1], [0], [0], [1], [0, 0, 1, 1], [], []>} : vector<8x256xf32>, vector<256x256xf32>, vector<8x256xf32> -> vector<8x256xf32>
    %c5 = arith.constant 5 : index
    %c0_32 = arith.constant 0 : index
    %c0_33 = arith.constant 0 : index
    %32 = vector.load %arg0[%c5, %c0_32, %c0_33] : memref<8x256x256xf32, #tpu.memory_space<vmem>>, vector<1x256x256xf32>
    %33 = vector.shape_cast %32 : vector<1x256x256xf32> to vector<256x256xf32>
    %cst_34 = arith.constant dense<0.000000e+00> : vector<8x256xf32>
    %34 = tpu.matmul %10, %33, %cst_34 {dimension_numbers = #tpu.dot_dimension_numbers<[1], [0], [0], [1], [0, 0, 1, 1], [], []>} : vector<8x256xf32>, vector<256x256xf32>, vector<8x256xf32> -> vector<8x256xf32>
    %c6 = arith.constant 6 : index
    %c0_35 = arith.constant 0 : index
    %c0_36 = arith.constant 0 : index
    %35 = vector.load %arg0[%c6, %c0_35, %c0_36] : memref<8x256x256xf32, #tpu.memory_space<vmem>>, vector<1x256x256xf32>
    %36 = vector.shape_cast %35 : vector<1x256x256xf32> to vector<256x256xf32>
    %cst_37 = arith.constant dense<0.000000e+00> : vector<8x256xf32>
    %37 = tpu.matmul %10, %36, %cst_37 {dimension_numbers = #tpu.dot_dimension_numbers<[1], [0], [0], [1], [0, 0, 1, 1], [], []>} : vector<8x256xf32>, vector<256x256xf32>, vector<8x256xf32> -> vector<8x256xf32>
    %c7 = arith.constant 7 : index
    %c0_38 = arith.constant 0 : index
    %c0_39 = arith.constant 0 : index
    %38 = vector.load %arg0[%c7, %c0_38, %c0_39] : memref<8x256x256xf32, #tpu.memory_space<vmem>>, vector<1x256x256xf32>
    %39 = vector.shape_cast %38 : vector<1x256x256xf32> to vector<256x256xf32>
    %cst_40 = arith.constant dense<0.000000e+00> : vector<8x256xf32>
    %40 = tpu.matmul %10, %39, %cst_40 {dimension_numbers = #tpu.dot_dimension_numbers<[1], [0], [0], [1], [0, 0, 1, 1], [], []>} : vector<8x256xf32>, vector<256x256xf32>, vector<8x256xf32> -> vector<8x256xf32>
    %41 = tpu.concatenate %19, %22, %25, %28, %10, %31, %34, %37, %40 in 0 : vector<8x256xf32>, vector<8x256xf32>, vector<8x256xf32>, vector<8x256xf32>, vector<8x256xf32>, vector<8x256xf32>, vector<8x256xf32>, vector<8x256xf32>, vector<8x256xf32> -> vector<72x256xf32>
    %cst_41 = arith.constant dense<0.000000e+00> : vector<8x256xf32>
    %42 = tpu.matmul %12, %41, %cst_41 {dimension_numbers = #tpu.dot_dimension_numbers<[1], [0], [0], [1], [0, 0, 1, 1], [], []>} : vector<8x72xf32>, vector<72x256xf32>, vector<8x256xf32> -> vector<8x256xf32>
    %43 = arith.mulf %41, %41 : vector<72x256xf32>
    %cst_42 = arith.constant dense<0.000000e+00> : vector<8x256xf32>
    %44 = tpu.matmul %9, %43, %cst_42 {dimension_numbers = #tpu.dot_dimension_numbers<[1], [0], [0], [1], [0, 0, 1, 1], [], []>} : vector<8x72xf32>, vector<72x256xf32>, vector<8x256xf32> -> vector<8x256xf32>
    %45 = math.sqrt %44 : vector<8x256xf32>
    %cst_43 = arith.constant 9.99999997E-7 : f32
    %46 = vector.broadcast %cst_43 : f32 to vector<8x1xf32>
    %47 = arith.addf %14, %46 : vector<8x1xf32>
    %cst_44 = arith.constant 9.99999997E-7 : f32
    %48 = vector.broadcast %cst_44 : f32 to vector<8x256xf32>
    %49 = arith.addf %45, %48 : vector<8x256xf32>
    %50 = vector.broadcast %47 : vector<8x1xf32> to vector<8x256xf32>
    %51 = arith.mulf %50, %49 : vector<8x256xf32>
    %52 = arith.divf %42, %51 : vector<8x256xf32>
    %53 = vector.shape_cast %52 : vector<8x256xf32> to vector<1x8x256xf32>
    %cst_45 = arith.constant 2.000000e+00 : f32
    %54 = vector.broadcast %cst_45 : f32 to vector<1x8x256xf32>
    %55 = arith.mulf %53, %54 : vector<1x8x256xf32>
    %56 = vector.broadcast %55 : vector<1x8x256xf32> to vector<5x8x256xf32>
    %57 = arith.addf %56, %16 : vector<5x8x256xf32>
    %cst_46 = arith.constant dense<0xFF800000> : vector<5x8xf32>
    %58 = vector.multi_reduction <maximumf>, %57, %cst_46 [2] : vector<5x8x256xf32> to vector<5x8xf32>
    %59 = vector.shape_cast %58 : vector<5x8xf32> to vector<5x8x1xf32>
    %60 = vector.broadcast %59 : vector<5x8x1xf32> to vector<5x8x256xf32>
    %61 = arith.cmpf oge, %57, %60 : vector<5x8x256xf32>
    %cst_47 = arith.constant 2.560000e+02 : f32
    %62 = vector.shape_cast %1 : vector<1x1x256xf32> to vector<1x1x256xf32>
    %63 = vector.broadcast %62 : vector<1x1x256xf32> to vector<5x8x256xf32>
    %64 = vector.broadcast %cst_47 : f32 to vector<5x8x256xf32>
    %65 = arith.select %61, %63, %64 : vector<5x8x256xi1>, vector<5x8x256xf32>
    %cst_48 = arith.constant dense<0x7F800000> : vector<5x8xf32>
    %66 = vector.multi_reduction <minimumf>, %65, %cst_48 [2] : vector<5x8x256xf32> to vector<5x8xf32>
    %67 = vector.shape_cast %66 : vector<5x8xf32> to vector<5x8x1xf32>
    %cst_49 = arith.constant 1.600000e+01 : f32
    %68 = vector.broadcast %cst_49 : f32 to vector<5x8x1xf32>
    %69 = arith.divf %67, %68 : vector<5x8x1xf32>
    %70 = math.floor %69 : vector<5x8x1xf32>
    %cst_50 = arith.constant 1.600000e+01 : f32
    %71 = vector.broadcast %cst_50 : f32 to vector<5x8x1xf32>
    %72 = arith.mulf %70, %71 : vector<5x8x1xf32>
    %73 = arith.subf %67, %72 : vector<5x8x1xf32>
    %74 = vector.broadcast %4 : vector<1x1x256xf32> to vector<5x8x256xf32>
    %75 = vector.broadcast %70 : vector<5x8x1xf32> to vector<5x8x256xf32>
    %76 = arith.subf %74, %75 : vector<5x8x256xf32>
    %77 = math.absf %76 : vector<5x8x256xf32>
    %cst_51 = arith.constant 5.000000e+00 : f32
    %78 = vector.broadcast %cst_51 : f32 to vector<5x8x256xf32>
    %79 = arith.cmpf ole, %77, %78 : vector<5x8x256xf32>
    %80 = vector.broadcast %7 : vector<1x1x256xf32> to vector<5x8x256xf32>
    %81 = vector.broadcast %73 : vector<5x8x1xf32> to vector<5x8x256xf32>
    %82 = arith.subf %80, %81 : vector<5x8x256xf32>
    %83 = math.absf %82 : vector<5x8x256xf32>
    %cst_52 = arith.constant 5.000000e+00 : f32
    %84 = vector.broadcast %cst_52 : f32 to vector<5x8x256xf32>
    %85 = arith.cmpf ole, %83, %84 : vector<5x8x256xf32>
    %86 = arith.andi %79, %85 : vector<5x8x256xi1>
    %87 = vector.shape_cast %52 : vector<8x256xf32> to vector<1x8x256xf32>
    %cst_53 = arith.constant 0.000000e+00 : f32
    %88 = vector.shape_cast %87 : vector<1x8x256xf32> to vector<1x8x256xf32>
    %89 = vector.broadcast %88 : vector<1x8x256xf32> to vector<5x8x256xf32>
    %90 = vector.broadcast %cst_53 : f32 to vector<5x8x256xf32>
    %91 = arith.select %86, %89, %90 : vector<5x8x256xi1>, vector<5x8x256xf32>
    %cst_54 = arith.constant dense<0.000000e+00> : vector<5x8xf32>
    %92 = vector.multi_reduction <add>, %91, %cst_54 [2] : vector<5x8x256xf32> to vector<5x8xf32>
    %93 = vector.shape_cast %92 : vector<5x8xf32> to vector<5x8x1xf32>
    %cst_55 = arith.constant dense<0.000000e+00> : vector<8x1xf32>
    %94 = vector.multi_reduction <add>, %93, %cst_55 [0] : vector<5x8x1xf32> to vector<8x1xf32>
    %cst_56 = arith.constant dense<0.000000e+00> : vector<8x256xf32>
    %95 = tpu.matmul %8, %42, %cst_56 {dimension_numbers = #tpu.dot_dimension_numbers<[1], [0], [0], [1], [0, 0, 1, 1], [], []>} : vector<8x8xf32>, vector<8x256xf32>, vector<8x256xf32> -> vector<8x256xf32>
    %cst_57 = arith.constant dense<0.000000e+00> : vector<8xf32>
    %96 = vector.multi_reduction <add>, %95, %cst_57 [1] : vector<8x256xf32> to vector<8xf32>
    %97 = vector.shape_cast %96 : vector<8xf32> to vector<8x1xf32>
    %cst_58 = arith.constant 0.001953125 : f32
    %98 = vector.broadcast %cst_58 : f32 to vector<8x1xf32>
    %99 = arith.mulf %97, %98 : vector<8x1xf32>
    %100 = vector.broadcast %99 : vector<8x1xf32> to vector<8x256xf32>
    %101 = arith.subf %42, %100 : vector<8x256xf32>
    %102 = arith.mulf %101, %101 : vector<8x256xf32>
    %cst_59 = arith.constant dense<0.000000e+00> : vector<8x256xf32>
    %103 = tpu.matmul %8, %102, %cst_59 {dimension_numbers = #tpu.dot_dimension_numbers<[1], [0], [0], [1], [0, 0, 1, 1], [], []>} : vector<8x8xf32>, vector<8x256xf32>, vector<8x256xf32> -> vector<8x256xf32>
    %cst_60 = arith.constant dense<0.000000e+00> : vector<8xf32>
    %104 = vector.multi_reduction <add>, %103, %cst_60 [1] : vector<8x256xf32> to vector<8xf32>
    %105 = vector.shape_cast %104 : vector<8xf32> to vector<8x1xf32>
    %cst_61 = arith.constant 0.001953125 : f32
    %106 = vector.broadcast %cst_61 : f32 to vector<8x1xf32>
    %107 = arith.mulf %105, %106 : vector<8x1xf32>
    %cst_62 = arith.constant 9.99999974E-6 : f32
    %108 = vector.broadcast %cst_62 : f32 to vector<8x1xf32>
    %109 = arith.addf %107, %108 : vector<8x1xf32>
    %110 = math.rsqrt %109 : vector<8x1xf32>
    %111 = vector.broadcast %110 : vector<8x1xf32> to vector<8x256xf32>
    %112 = arith.mulf %101, %111 : vector<8x256xf32>
    %cst_63 = arith.constant 0.000000e+00 : f32
    %113 = vector.broadcast %cst_63 : f32 to vector<8x256xf32>
    %114 = arith.maximumf %112, %113 : vector<8x256xf32>
    %c1_64 = arith.constant 1 : index
    %c0_65 = arith.constant 0 : index
    %c0_66 = arith.constant 0 : index
    %115 = vector.load %arg1[%c1_64, %c0_65, %c0_66] : memref<2x8x72xf32, #tpu.memory_space<vmem>>, vector<1x8x72xf32>
    %116 = vector.shape_cast %115 : vector<1x8x72xf32> to vector<8x72xf32>
    %c1_67 = arith.constant 1 : index
    %c0_68 = arith.constant 0 : index
    %c0_69 = arith.constant 0 : index
    %117 = vector.load %arg4[%c1_67, %c0_68, %c0_69] : memref<2x8x1xf32, #tpu.memory_space<vmem>>, vector<1x8x1xf32>
    %118 = vector.shape_cast %117 : vector<1x8x1xf32> to vector<8x1xf32>
    %c1_70 = arith.constant 1 : index
    %c0_71 = arith.constant 0 : index
    %c0_72 = arith.constant 0 : index
    %c0_73 = arith.constant 0 : index
    %119 = vector.load %arg5[%c1_70, %c0_71, %c0_72, %c0_73] : memref<2x5x8x256xf32, #tpu.memory_space<vmem>>, vector<1x5x8x256xf32>
    %120 = vector.shape_cast %119 : vector<1x5x8x256xf32> to vector<5x8x256xf32>
    %c0_74 = arith.constant 0 : index
    %c0_75 = arith.constant 0 : index
    %c0_76 = arith.constant 0 : index
    %121 = vector.load %arg0[%c0_74, %c0_75, %c0_76] : memref<8x256x256xf32, #tpu.memory_space<vmem>>, vector<1x256x256xf32>
    %122 = vector.shape_cast %121 : vector<1x256x256xf32> to vector<256x256xf32>
    %cst_77 = arith.constant dense<0.000000e+00> : vector<8x256xf32>
    %123 = tpu.matmul %114, %122, %cst_77 {dimension_numbers = #tpu.dot_dimension_numbers<[1], [0], [0], [1], [0, 0, 1, 1], [], []>} : vector<8x256xf32>, vector<256x256xf32>, vector<8x256xf32> -> vector<8x256xf32>
    %c1_78 = arith.constant 1 : index
    %c0_79 = arith.constant 0 : index
    %c0_80 = arith.constant 0 : index
    %124 = vector.load %arg0[%c1_78, %c0_79, %c0_80] : memref<8x256x256xf32, #tpu.memory_space<vmem>>, vector<1x256x256xf32>
    %125 = vector.shape_cast %124 : vector<1x256x256xf32> to vector<256x256xf32>
    %cst_81 = arith.constant dense<0.000000e+00> : vector<8x256xf32>
    %126 = tpu.matmul %114, %125, %cst_81 {dimension_numbers = #tpu.dot_dimension_numbers<[1], [0], [0], [1], [0, 0, 1, 1], [], []>} : vector<8x256xf32>, vector<256x256xf32>, vector<8x256xf32> -> vector<8x256xf32>
    %c2_82 = arith.constant 2 : index
    %c0_83 = arith.constant 0 : index
    %c0_84 = arith.constant 0 : index
    %127 = vector.load %arg0[%c2_82, %c0_83, %c0_84] : memref<8x256x256xf32, #tpu.memory_space<vmem>>, vector<1x256x256xf32>
    %128 = vector.shape_cast %127 : vector<1x256x256xf32> to vector<256x256xf32>
    %cst_85 = arith.constant dense<0.000000e+00> : vector<8x256xf32>
    %129 = tpu.matmul %114, %128, %cst_85 {dimension_numbers = #tpu.dot_dimension_numbers<[1], [0], [0], [1], [0, 0, 1, 1], [], []>} : vector<8x256xf32>, vector<256x256xf32>, vector<8x256xf32> -> vector<8x256xf32>
    %c3_86 = arith.constant 3 : index
    %c0_87 = arith.constant 0 : index
    %c0_88 = arith.constant 0 : index
    %130 = vector.load %arg0[%c3_86, %c0_87, %c0_88] : memref<8x256x256xf32, #tpu.memory_space<vmem>>, vector<1x256x256xf32>
    %131 = vector.shape_cast %130 : vector<1x256x256xf32> to vector<256x256xf32>
    %cst_89 = arith.constant dense<0.000000e+00> : vector<8x256xf32>
    %132 = tpu.matmul %114, %131, %cst_89 {dimension_numbers = #tpu.dot_dimension_numbers<[1], [0], [0], [1], [0, 0, 1, 1], [], []>} : vector<8x256xf32>, vector<256x256xf32>, vector<8x256xf32> -> vector<8x256xf32>
    %c4_90 = arith.constant 4 : index
    %c0_91 = arith.constant 0 : index
    %c0_92 = arith.constant 0 : index
    %133 = vector.load %arg0[%c4_90, %c0_91, %c0_92] : memref<8x256x256xf32, #tpu.memory_space<vmem>>, vector<1x256x256xf32>
    %134 = vector.shape_cast %133 : vector<1x256x256xf32> to vector<256x256xf32>
    %cst_93 = arith.constant dense<0.000000e+00> : vector<8x256xf32>
    %135 = tpu.matmul %114, %134, %cst_93 {dimension_numbers = #tpu.dot_dimension_numbers<[1], [0], [0], [1], [0, 0, 1, 1], [], []>} : vector<8x256xf32>, vector<256x256xf32>, vector<8x256xf32> -> vector<8x256xf32>
    %c5_94 = arith.constant 5 : index
    %c0_95 = arith.constant 0 : index
    %c0_96 = arith.constant 0 : index
    %136 = vector.load %arg0[%c5_94, %c0_95, %c0_96] : memref<8x256x256xf32, #tpu.memory_space<vmem>>, vector<1x256x256xf32>
    %137 = vector.shape_cast %136 : vector<1x256x256xf32> to vector<256x256xf32>
    %cst_97 = arith.constant dense<0.000000e+00> : vector<8x256xf32>
    %138 = tpu.matmul %114, %137, %cst_97 {dimension_numbers = #tpu.dot_dimension_numbers<[1], [0], [0], [1], [0, 0, 1, 1], [], []>} : vector<8x256xf32>, vector<256x256xf32>, vector<8x256xf32> -> vector<8x256xf32>
    %c6_98 = arith.constant 6 : index
    %c0_99 = arith.constant 0 : index
    %c0_100 = arith.constant 0 : index
    %139 = vector.load %arg0[%c6_98, %c0_99, %c0_100] : memref<8x256x256xf32, #tpu.memory_space<vmem>>, vector<1x256x256xf32>
    %140 = vector.shape_cast %139 : vector<1x256x256xf32> to vector<256x256xf32>
    %cst_101 = arith.constant dense<0.000000e+00> : vector<8x256xf32>
    %141 = tpu.matmul %114, %140, %cst_101 {dimension_numbers = #tpu.dot_dimension_numbers<[1], [0], [0], [1], [0, 0, 1, 1], [], []>} : vector<8x256xf32>, vector<256x256xf32>, vector<8x256xf32> -> vector<8x256xf32>
    %c7_102 = arith.constant 7 : index
    %c0_103 = arith.constant 0 : index
    %c0_104 = arith.constant 0 : index
    %142 = vector.load %arg0[%c7_102, %c0_103, %c0_104] : memref<8x256x256xf32, #tpu.memory_space<vmem>>, vector<1x256x256xf32>
    %143 = vector.shape_cast %142 : vector<1x256x256xf32> to vector<256x256xf32>
    %cst_105 = arith.constant dense<0.000000e+00> : vector<8x256xf32>
    %144 = tpu.matmul %114, %143, %cst_105 {dimension_numbers = #tpu.dot_dimension_numbers<[1], [0], [0], [1], [0, 0, 1, 1], [], []>} : vector<8x256xf32>, vector<256x256xf32>, vector<8x256xf32> -> vector<8x256xf32>
    %145 = tpu.concatenate %123, %126, %129, %132, %114, %135, %138, %141, %144 in 0 : vector<8x256xf32>, vector<8x256xf32>, vector<8x256xf32>, vector<8x256xf32>, vector<8x256xf32>, vector<8x256xf32>, vector<8x256xf32>, vector<8x256xf32>, vector<8x256xf32> -> vector<72x256xf32>
    %cst_106 = arith.constant dense<0.000000e+00> : vector<8x256xf32>
    %146 = tpu.matmul %116, %145, %cst_106 {dimension_numbers = #tpu.dot_dimension_numbers<[1], [0], [0], [1], [0, 0, 1, 1], [], []>} : vector<8x72xf32>, vector<72x256xf32>, vector<8x256xf32> -> vector<8x256xf32>
    %147 = arith.mulf %145, %145 : vector<72x256xf32>
    %cst_107 = arith.constant dense<0.000000e+00> : vector<8x256xf32>
    %148 = tpu.matmul %9, %147, %cst_107 {dimension_numbers = #tpu.dot_dimension_numbers<[1], [0], [0], [1], [0, 0, 1, 1], [], []>} : vector<8x72xf32>, vector<72x256xf32>, vector<8x256xf32> -> vector<8x256xf32>
    %149 = math.sqrt %148 : vector<8x256xf32>
    %cst_108 = arith.constant 9.99999997E-7 : f32
    %150 = vector.broadcast %cst_108 : f32 to vector<8x1xf32>
    %151 = arith.addf %118, %150 : vector<8x1xf32>
    %cst_109 = arith.constant 9.99999997E-7 : f32
    %152 = vector.broadcast %cst_109 : f32 to vector<8x256xf32>
    %153 = arith.addf %149, %152 : vector<8x256xf32>
    %154 = vector.broadcast %151 : vector<8x1xf32> to vector<8x256xf32>
    %155 = arith.mulf %154, %153 : vector<8x256xf32>
    %156 = arith.divf %146, %155 : vector<8x256xf32>
    %157 = vector.shape_cast %156 : vector<8x256xf32> to vector<1x8x256xf32>
    %cst_110 = arith.constant 2.000000e+00 : f32
    %158 = vector.broadcast %cst_110 : f32 to vector<1x8x256xf32>
    %159 = arith.mulf %157, %158 : vector<1x8x256xf32>
    %160 = vector.broadcast %159 : vector<1x8x256xf32> to vector<5x8x256xf32>
    %161 = arith.addf %160, %120 : vector<5x8x256xf32>
    %cst_111 = arith.constant dense<0xFF800000> : vector<5x8xf32>
    %162 = vector.multi_reduction <maximumf>, %161, %cst_111 [2] : vector<5x8x256xf32> to vector<5x8xf32>
    %163 = vector.shape_cast %162 : vector<5x8xf32> to vector<5x8x1xf32>
    %164 = vector.broadcast %163 : vector<5x8x1xf32> to vector<5x8x256xf32>
    %165 = arith.cmpf oge, %161, %164 : vector<5x8x256xf32>
    %cst_112 = arith.constant 2.560000e+02 : f32
    %166 = vector.shape_cast %1 : vector<1x1x256xf32> to vector<1x1x256xf32>
    %167 = vector.broadcast %166 : vector<1x1x256xf32> to vector<5x8x256xf32>
    %168 = vector.broadcast %cst_112 : f32 to vector<5x8x256xf32>
    %169 = arith.select %165, %167, %168 : vector<5x8x256xi1>, vector<5x8x256xf32>
    %cst_113 = arith.constant dense<0x7F800000> : vector<5x8xf32>
    %170 = vector.multi_reduction <minimumf>, %169, %cst_113 [2] : vector<5x8x256xf32> to vector<5x8xf32>
    %171 = vector.shape_cast %170 : vector<5x8xf32> to vector<5x8x1xf32>
    %cst_114 = arith.constant 1.600000e+01 : f32
    %172 = vector.broadcast %cst_114 : f32 to vector<5x8x1xf32>
    %173 = arith.divf %171, %172 : vector<5x8x1xf32>
    %174 = math.floor %173 : vector<5x8x1xf32>
    %cst_115 = arith.constant 1.600000e+01 : f32
    %175 = vector.broadcast %cst_115 : f32 to vector<5x8x1xf32>
    %176 = arith.mulf %174, %175 : vector<5x8x1xf32>
    %177 = arith.subf %171, %176 : vector<5x8x1xf32>
    %178 = vector.broadcast %4 : vector<1x1x256xf32> to vector<5x8x256xf32>
    %179 = vector.broadcast %174 : vector<5x8x1xf32> to vector<5x8x256xf32>
    %180 = arith.subf %178, %179 : vector<5x8x256xf32>
    %181 = math.absf %180 : vector<5x8x256xf32>
    %cst_116 = arith.constant 5.000000e+00 : f32
    %182 = vector.broadcast %cst_116 : f32 to vector<5x8x256xf32>
    %183 = arith.cmpf ole, %181, %182 : vector<5x8x256xf32>
    %184 = vector.broadcast %7 : vector<1x1x256xf32> to vector<5x8x256xf32>
    %185 = vector.broadcast %177 : vector<5x8x1xf32> to vector<5x8x256xf32>
    %186 = arith.subf %184, %185 : vector<5x8x256xf32>
    %187 = math.absf %186 : vector<5x8x256xf32>
    %cst_117 = arith.constant 5.000000e+00 : f32
    %188 = vector.broadcast %cst_117 : f32 to vector<5x8x256xf32>
    %189 = arith.cmpf ole, %187, %188 : vector<5x8x256xf32>
    %190 = arith.andi %183, %189 : vector<5x8x256xi1>
    %191 = vector.shape_cast %156 : vector<8x256xf32> to vector<1x8x256xf32>
    %cst_118 = arith.constant 0.000000e+00 : f32
    %192 = vector.shape_cast %191 : vector<1x8x256xf32> to vector<1x8x256xf32>
    %193 = vector.broadcast %192 : vector<1x8x256xf32> to vector<5x8x256xf32>
    %194 = vector.broadcast %cst_118 : f32 to vector<5x8x256xf32>
    %195 = arith.select %190, %193, %194 : vector<5x8x256xi1>, vector<5x8x256xf32>
    %cst_119 = arith.constant dense<0.000000e+00> : vector<5x8xf32>
    %196 = vector.multi_reduction <add>, %195, %cst_119 [2] : vector<5x8x256xf32> to vector<5x8xf32>
    %197 = vector.shape_cast %196 : vector<5x8xf32> to vector<5x8x1xf32>
    %cst_120 = arith.constant dense<0.000000e+00> : vector<8x1xf32>
    %198 = vector.multi_reduction <add>, %197, %cst_120 [0] : vector<5x8x1xf32> to vector<8x1xf32>
    %cst_121 = arith.constant dense<0.000000e+00> : vector<8x256xf32>
    %199 = tpu.matmul %8, %146, %cst_121 {dimension_numbers = #tpu.dot_dimension_numbers<[1], [0], [0], [1], [0, 0, 1, 1], [], []>} : vector<8x8xf32>, vector<8x256xf32>, vector<8x256xf32> -> vector<8x256xf32>
    %cst_122 = arith.constant dense<0.000000e+00> : vector<8xf32>
    %200 = vector.multi_reduction <add>, %199, %cst_122 [1] : vector<8x256xf32> to vector<8xf32>
    %201 = vector.shape_cast %200 : vector<8xf32> to vector<8x1xf32>
    %cst_123 = arith.constant 0.001953125 : f32
    %202 = vector.broadcast %cst_123 : f32 to vector<8x1xf32>
    %203 = arith.mulf %201, %202 : vector<8x1xf32>
    %204 = vector.broadcast %203 : vector<8x1xf32> to vector<8x256xf32>
    %205 = arith.subf %146, %204 : vector<8x256xf32>
    %206 = arith.mulf %205, %205 : vector<8x256xf32>
    %cst_124 = arith.constant dense<0.000000e+00> : vector<8x256xf32>
    %207 = tpu.matmul %8, %206, %cst_124 {dimension_numbers = #tpu.dot_dimension_numbers<[1], [0], [0], [1], [0, 0, 1, 1], [], []>} : vector<8x8xf32>, vector<8x256xf32>, vector<8x256xf32> -> vector<8x256xf32>
    %cst_125 = arith.constant dense<0.000000e+00> : vector<8xf32>
    %208 = vector.multi_reduction <add>, %207, %cst_125 [1] : vector<8x256xf32> to vector<8xf32>
    %209 = vector.shape_cast %208 : vector<8xf32> to vector<8x1xf32>
    %cst_126 = arith.constant 0.001953125 : f32
    %210 = vector.broadcast %cst_126 : f32 to vector<8x1xf32>
    %211 = arith.mulf %209, %210 : vector<8x1xf32>
    %cst_127 = arith.constant 9.99999974E-6 : f32
    %212 = vector.broadcast %cst_127 : f32 to vector<8x1xf32>
    %213 = arith.addf %211, %212 : vector<8x1xf32>
    %214 = math.rsqrt %213 : vector<8x1xf32>
    %215 = vector.broadcast %214 : vector<8x1xf32> to vector<8x256xf32>
    %216 = arith.mulf %205, %215 : vector<8x256xf32>
    %217 = arith.addf %216, %10 : vector<8x256xf32>
    %cst_128 = arith.constant 0.000000e+00 : f32
    %218 = vector.broadcast %cst_128 : f32 to vector<8x256xf32>
    %219 = arith.maximumf %217, %218 : vector<8x256xf32>
    %c0_129 = arith.constant 0 : index
    %c0_130 = arith.constant 0 : index
    %220 = vector.load %arg7[%c0_129, %c0_130] : memref<8x256xf32, #tpu.memory_space<vmem>>, vector<8x256xf32>
    tpu.vector_store %arg7[%c0_129, %c0_130], %219 {strides = array<i32>} : memref<8x256xf32, #tpu.memory_space<vmem>>, vector<8x256xf32>,
    %221 = arith.addf %94, %198 : vector<8x1xf32>
    %cst_131 = arith.constant dense<0.000000e+00> : vector<1xf32>
    %222 = vector.multi_reduction <add>, %221, %cst_131 [0] : vector<8x1xf32> to vector<1xf32>
    %223 = vector.shape_cast %222 : vector<1xf32> to vector<1x1xf32>
    %cst_132 = arith.constant 2.0661157E-4 : f32
    %224 = vector.broadcast %cst_132 : f32 to vector<1x1xf32>
    %225 = arith.mulf %223, %224 : vector<1x1xf32>
    %c0_133 = arith.constant 0 : index
    %c0_134 = arith.constant 0 : index
    %226 = vector.load %arg8[%c0_133, %c0_134] : memref<1x1xf32, #tpu.memory_space<vmem>>, vector<1x1xf32>
    tpu.vector_store %arg8[%c0_133, %c0_134], %225 {strides = array<i32>} : memref<1x1xf32, #tpu.memory_space<vmem>>, vector<1x1xf32>,
    return
  }
}

</mosaic_0001>

<bundles_post_ra>
// kernel: tile.13
= control target key start
LH: loop header
LB: loop body
LE: loop exit
PB: predicated region body
PF: predicated region fallthrough
CT: control target
= control target key end

     0   :  { %s22_s0 = inlined_call_operand.vmem [shape: f32[4], index: 0, kind: input, shape index: {}]   ;;  %s23_s1 = inlined_call_operand.vmem [shape: f32[2,4], index: 1, kind: output, shape index: {}]  }
   0x1   :  { %v4_v0 = vld [vmem:[%s22_s0] ss:$0 sm:$0xff] }
   0x2   :  { %5 = vst [vmem:[%s23_s1] sm:$0x3] %v4_v0 }

// kernel: tile.0
= control target key start
LH: loop header
LB: loop body
LE: loop exit
PB: predicated region body
PF: predicated region fallthrough
CT: control target
= control target key end

     0   :  { %s35_s8 = smov 125   ;;  %vm8_vm0 = vcmask 7168   ;;  %s36_s11 = smov 126   ;;  %s62_s0 = inlined_call_operand.vmem [shape: f32[2,4], index: 0, kind: input, shape index: {}]   ;;  %s63_s1 = inlined_call_operand.vmem [shape: f32[1,8,1], index: 1, kind: output, shape index: {}]  }
   0x1   :  { %v5_v0 = vld [vmem:[%s62_s0] sm:$0x3]  ;;  %s34_s0 = smov 127  }
   0x2   :  { %6 = vst [vmem:[#allocation0] sm:$0x3] %v5_v0 }
   0x9   :  { %v10_v1 = vld [vmem:[#allocation0] sm:$0x3]  }
   0xa   :  { %v22_v2 = vld [vmem:[#allocation0] sm:$0x3]   ;;  %11 = vrot.lane.b32.xlu0 %v10_v1, %s34_s0 }
   0xb   :  { %23 = vrot.lane.b32.xlu1 %v22_v2, %s35_s8  ;;  %v7_v3 = vld [vmem:[#allocation0] sm:$0x3]  }
   0xc   :  { %v16_v4 = vld [vmem:[#allocation0] sm:$0x3]   ;;  %9 = vst.msk [vmem:[%s63_s1] ss:$4 sm:$0x3] %vm8_vm0, %v7_v3  }
   0xe   :  { %17 = vrot.lane.b32.xlu0 %v16_v4, %s36_s11 }
  0x7c   :  { %v12_v5 = vpop.permute.xlu0 %11  }
  0x7d   :  { %v24_v6 = vpop.permute.xlu1 %23   ;;  %28 = vst.msk [vmem:[%s63_s1 + $0x1] ss:$4 sm:$0x3] %vm8_vm0, %v12_v5  }
  0x7e   :  { %30 = vst.msk [vmem:[%s63_s1 + $0x3] ss:$4 sm:$0x3] %vm8_vm0, %v24_v6  }
  0x80   :  { %v18_v7 = vpop.permute.xlu0 %17  }
  0x81   :  { %29 = vst.msk [vmem:[%s63_s1 + $0x2] ss:$4 sm:$0x3] %vm8_vm0, %v18_v7  }

// kernel: basic_block_forward.1
= control target key start
LH: loop header
LB: loop body
LE: loop exit
PB: predicated region body
PF: predicated region fallthrough
CT: control target
= control target key end

     0   :  { %14 = vsyncpa [#allocation3], 0  ;;  %s4105_s0 = inlined_call_operand.hbm [shape: f32[8,256,256], index: 0, kind: input, shape index: {}]   ;;  %s4106_s1 = inlined_call_operand.vmem [shape: f32[2,8,72], index: 1, kind: input, shape index: {}]   ;;  %s4107_s2 = inlined_call_operand.hbm [shape: f32[8,72], index: 2, kind: input, shape index: {}]   ;;  %s4108_s3 = inlined_call_operand.hbm [shape: f32[8,8], index: 3, kind: input, shape index: {}]   ;;  %s4109_s4 = inlined_call_operand.vmem [shape: f32[2,8,1], index: 4, kind: input, shape index: {}]   ;;  %s4110_s5 = inlined_call_operand.vmem [shape: f32[2,5,8,256], index: 5, kind: input, shape index: {}]   ;;  %s4111_s6 = inlined_call_operand.vmem [shape: f32[8,256], index: 6, kind: input, shape index: {}]   ;;  %s4112_s7 = inlined_call_operand.vmem [shape: f32[8,256], index: 7, kind: output, shape index: {0}]   ;;  %s4113_s8 = inlined_call_operand.hbm [shape: f32[1,1], index: 8, kind: output, shape index: {1}]  }
   0x1   :  { %15 = vsyncpa [#allocation6], 0 }
   0x2   :  { %16 = vsyncpa [#allocation4], 0  ;;  %s3526_s27 = smov [#allocation5]   ;;  %s3527_s29 = smov [#allocation2]  }
   0x3   :  { %s37_s28 = sshll.u32 %s3526_s27, 4  ;;  %s22_s30 = sshll.u32 %s3527_s29, 4  ;;  %s38_s28 = int_to_ptr.vmem [resolvable:$true] %s37_s28  ;;  %s23_s30 = int_to_ptr.vmem [resolvable:$true] %s22_s30 }
   0x4   :  { %s3448_s9 = scalar_lea.vmem %s38_s28, 128  ;;  %p3453_p1 = scmp.lt.s32.totalorder %s38_s28, %s38_s28 }
   0x5   :  { %p3449_p0 = scmp.ne.s32.totalorder %s38_s28, %s3448_s9  ;;  %p3454_p2 = scmp.lt.s32.totalorder %s3448_s9, %s3448_s9 }
   0x7   :  { %p3455_p3 = por %p3454_p2, %p3453_p1 }
   0x9   :  { %p3456_p4 = pnand %p3455_p3, %p3449_p0 }
   0xb   :  { %3459 = shalt.err (!%p3456_p4)
}
   0xc   :  { %40 = dma.hbm_to_vmem [thread:$0]  %s4107_s2, 128, %s38_s28, [#allocation6]  }
   0xd   :  { %s3468_s12 = scalar_lea.vmem %s23_s30, 65536  ;;  %p3473_p6 = scmp.lt.s32.totalorder %s23_s30, %s23_s30 }
   0xe   :  { %p3469_p5 = scmp.ne.s32.totalorder %s23_s30, %s3468_s12  ;;  %p3474_p7 = scmp.lt.s32.totalorder %s3468_s12, %s3468_s12 }
  0x10   :  { %p3475_p8 = por %p3474_p7, %p3473_p6 }
  0x12   :  { %p3476_p9 = pnand %p3475_p8, %p3469_p5 }
  0x14   :  { %3479 = shalt.err (!%p3476_p9)
}
  0x15   :  { %s3528_s13 = smov 256   ;;  %s3529_s14 = smov 16  }
  0x16   :  { %28 = dma.hbm_to_vmem [thread:$0]  %s4105_s0, 65536, %s23_s30, [#allocation3], %s3528_s13, %s3528_s13, %s3529_s14  }
  0x17   :  { %s3530_s17 = smov [#allocation7]  }
  0x18   :  { %s47_s18 = sshll.u32 %s3530_s17, 4  ;;  %s48_s18 = int_to_ptr.vmem [resolvable:$true] %s47_s18 }
  0x19   :  { %s3488_s19 = scalar_lea.vmem %s48_s18, 128  ;;  %p3493_p11 = scmp.lt.s32.totalorder %s48_s18, %s48_s18 }
  0x1a   :  { %p3489_p10 = scmp.ne.s32.totalorder %s48_s18, %s3488_s19  ;;  %p3494_p12 = scmp.lt.s32.totalorder %s3488_s19, %s3488_s19 }
  0x1c   :  { %p3495_p13 = por %p3494_p12, %p3493_p11 }
  0x1e   :  { %p3496_p0 = pnand %p3495_p13, %p3489_p10 }
  0x20   :  { %3499 = shalt.err (!%p3496_p0)
}
  0x21   :  { %50 = dma.hbm_to_vmem [thread:$0]  %s4108_s3, 128, %s48_s18, [#allocation6]  }
  0x22   :  { %3520 = dma.done.wait [#allocation3], 65536  }
  0x23   :  { %3521 = vsyncadd [#allocation3], 4294901760 }
  0x24   :  { %3522 = dma.done.wait [#allocation6], 256  }
  0x25   :  { %3523 = vsyncadd [#allocation6], 4294967040  ;;  %v127_v0 = vld [vmem:[#allocation2 + $0xf8] sm:$0xff]  ;;  %v126_v2 = vld [vmem:[#allocation2 + $0xf0] sm:$0xff]  ;;  %vm1183_vm0 = vcmask 588800   ;;  %vm1559_vm1 = vcmask 64512  }
  0x26   :  { %v263_v1 = vld [vmem:[#allocation2 + $0x2f8] sm:$0xff]  ;;  %160 = vmatprep.subr.mxu0 %v127_v0  ;;  %v262_v3 = vld [vmem:[#allocation2 + $0x2f0] sm:$0xff]  ;;  %v125_v4 = vld [vmem:[#allocation2 + $0xe8] sm:$0xff]  ;;  %s3533_s24 = smov [#allocation8]  }
  0x27   :  { %296 = vmatprep.subr.mxu1 %v263_v1  ;;  %v261_v5 = vld [vmem:[#allocation2 + $0x2e8] sm:$0xff]  ;;  %161 = vmatpush1.msra.mxu0 %v126_v2  ;;  %v124_v6 = vld [vmem:[#allocation2 + $0xe0] sm:$0xff]  ;;  %v123_v8 = vld [vmem:[#allocation2 + $0xd8] sm:$0xff]  ;;  %s2860_s25 = sshll.u32 %s3533_s24, 4  ;;  %s2861_s25 = int_to_ptr.vmem [resolvable:$true] %s2860_s25 }
  0x28   :  { %297 = vmatpush1.msra.mxu1 %v262_v3  ;;  %v260_v7 = vld [vmem:[#allocation2 + $0x2e0] sm:$0xff]  ;;  %162 = vmatprep.subr.mxu0 %v125_v4  ;;  %v259_v9 = vld [vmem:[#allocation2 + $0x2d8] sm:$0xff]  ;;  %v122_v10 = vld [vmem:[#allocation2 + $0xd0] sm:$0xff]  ;;  %s3504_s30 = scalar_lea.vmem %s2861_s25, 32  ;;  %p3505_p2 = scmp.lt.s32.totalorder %s2861_s25, %s2861_s25 }
  0x29   :  { %298 = vmatprep.subr.mxu1 %v261_v5  ;;  %v258_v11 = vld [vmem:[#allocation2 + $0x2d0] sm:$0xff]  ;;  %163 = vmatpush1.msra.mxu0 %v124_v6  ;;  %v121_v12 = vld [vmem:[#allocation2 + $0xc8] sm:$0xff]  ;;  %v120_v14 = vld [vmem:[#allocation2 + $0xc0] sm:$0xff] }
  0x2a   :  { %299 = vmatpush1.msra.mxu1 %v260_v7  ;;  %v257_v13 = vld [vmem:[#allocation2 + $0x2c8] sm:$0xff]  ;;  %164 = vmatprep.subr.mxu0 %v123_v8  ;;  %v256_v15 = vld [vmem:[#allocation2 + $0x2c0] sm:$0xff]  ;;  %v119_v16 = vld [vmem:[#allocation2 + $0xb8] sm:$0xff] }
  0x2b   :  { %300 = vmatprep.subr.mxu1 %v259_v9  ;;  %165 = vmatpush1.msra.mxu0 %v122_v10  ;;  %v255_v17 = vld [vmem:[#allocation2 + $0x2b8] sm:$0xff]  ;;  %v118_v18 = vld [vmem:[#allocation2 + $0xb0] sm:$0xff]  ;;  %v117_v20 = vld [vmem:[#allocation2 + $0xa8] sm:$0xff] }
  0x2c   :  { %301 = vmatpush1.msra.mxu1 %v258_v11  ;;  %166 = vmatprep.subr.mxu0 %v121_v12  ;;  %v254_v19 = vld [vmem:[#allocation2 + $0x2b0] sm:$0xff]  ;;  %v253_v21 = vld [vmem:[#allocation2 + $0x2a8] sm:$0xff]  ;;  %v116_v22 = vld [vmem:[#allocation2 + $0xa0] sm:$0xff] }
  0x2d   :  { %302 = vmatprep.subr.mxu1 %v257_v13  ;;  %167 = vmatpush1.msra.mxu0 %v120_v14  ;;  %v252_v23 = vld [vmem:[#allocation2 + $0x2a0] sm:$0xff]  ;;  %v115_v24 = vld [vmem:[#allocation2 + $0x98] sm:$0xff]  ;;  %v114_v26 = vld [vmem:[#allocation2 + $0x90] sm:$0xff] }
  0x2e   :  { %303 = vmatpush1.msra.mxu1 %v256_v15  ;;  %168 = vmatprep.subr.mxu0 %v119_v16  ;;  %v251_v25 = vld [vmem:[#allocation2 + $0x298] sm:$0xff]  ;;  %v250_v27 = vld [vmem:[#allocation2 + $0x290] sm:$0xff]  ;;  %v113_v28 = vld [vmem:[#allocation2 + $0x88] sm:$0xff] }
  0x2f   :  { %304 = vmatprep.subr.mxu1 %v255_v17  ;;  %169 = vmatpush1.msra.mxu0 %v118_v18  ;;  %v249_v29 = vld [vmem:[#allocation2 + $0x288] sm:$0xff]  ;;  %v112_v30 = vld [vmem:[#allocation2 + $0x80] sm:$0xff]  ;;  %v111_v32 = vld [vmem:[#allocation2 + $0x78] sm:$0xff] }
  0x30   :  { %305 = vmatpush1.msra.mxu1 %v254_v19  ;;  %170 = vmatprep.subr.mxu0 %v117_v20  ;;  %v248_v31 = vld [vmem:[#allocation2 + $0x280] sm:$0xff]  ;;  %v247_v33 = vld [vmem:[#allocation2 + $0x278] sm:$0xff]  ;;  %v110_v34 = vld [vmem:[#allocation2 + $0x70] sm:$0xff] }
  0x31   :  { %306 = vmatprep.subr.mxu1 %v253_v21  ;;  %171 = vmatpush1.msra.mxu0 %v116_v22  ;;  %v246_v35 = vld [vmem:[#allocation2 + $0x270] sm:$0xff]  ;;  %v109_v36 = vld [vmem:[#allocation2 + $0x68] sm:$0xff]  ;;  %v108_v38 = vld [vmem:[#allocation2 + $0x60] sm:$0xff] }
  0x32   :  { %307 = vmatpush1.msra.mxu1 %v252_v23  ;;  %172 = vmatprep.subr.mxu0 %v115_v24  ;;  %v245_v37 = vld [vmem:[#allocation2 + $0x268] sm:$0xff]  ;;  %v244_v39 = vld [vmem:[#allocation2 + $0x260] sm:$0xff]  ;;  %v107_v40 = vld [vmem:[#allocation2 + $0x58] sm:$0xff] }
  0x33   :  { %308 = vmatprep.subr.mxu1 %v251_v25  ;;  %173 = vmatpush1.msra.mxu0 %v114_v26  ;;  %v243_v41 = vld [vmem:[#allocation2 + $0x258] sm:$0xff]  ;;  %v106_v42 = vld [vmem:[#allocation2 + $0x50] sm:$0xff]  ;;  %v105_v44 = vld [vmem:[#allocation2 + $0x48] sm:$0xff] }
  0x34   :  { %309 = vmatpush1.msra.mxu1 %v250_v27  ;;  %174 = vmatprep.subr.mxu0 %v113_v28  ;;  %v242_v43 = vld [vmem:[#allocation2 + $0x250] sm:$0xff]  ;;  %v241_v45 = vld [vmem:[#allocation2 + $0x248] sm:$0xff]  ;;  %v104_v46 = vld [vmem:[#allocation2 + $0x40] sm:$0xff] }
  0x35   :  { %310 = vmatprep.subr.mxu1 %v249_v29  ;;  %175 = vmatpush1.msra.mxu0 %v112_v30  ;;  %v240_v47 = vld [vmem:[#allocation2 + $0x240] sm:$0xff]  ;;  %v103_v48 = vld [vmem:[#allocation2 + $0x38] sm:$0xff]  ;;  %v102_v50 = vld [vmem:[#allocation2 + $0x30] sm:$0xff] }
  0x36   :  { %311 = vmatpush1.msra.mxu1 %v248_v31  ;;  %176 = vmatprep.subr.mxu0 %v111_v32  ;;  %v239_v49 = vld [vmem:[#allocation2 + $0x238] sm:$0xff]  ;;  %v238_v51 = vld [vmem:[#allocation2 + $0x230] sm:$0xff]  ;;  %v101_v52 = vld [vmem:[#allocation2 + $0x28] sm:$0xff] }
  0x37   :  { %312 = vmatprep.subr.mxu1 %v247_v33  ;;  %177 = vmatpush1.msra.mxu0 %v110_v34  ;;  %v237_v53 = vld [vmem:[#allocation2 + $0x228] sm:$0xff]  ;;  %v100_v54 = vld [vmem:[#allocation2 + $0x20] sm:$0xff]  ;;  %v99_v56 = vld [vmem:[#allocation2 + $0x18] sm:$0xff] }
  0x38   :  { %313 = vmatpush1.msra.mxu1 %v246_v35  ;;  %178 = vmatprep.subr.mxu0 %v109_v36  ;;  %v236_v55 = vld [vmem:[#allocation2 + $0x220] sm:$0xff]  ;;  %v235_v57 = vld [vmem:[#allocation2 + $0x218] sm:$0xff]  ;;  %v98_v58 = vld [vmem:[#allocation2 + $0x10] sm:$0xff] }
  0x39   :  { %314 = vmatprep.subr.mxu1 %v245_v37  ;;  %179 = vmatpush1.msra.mxu0 %v108_v38  ;;  %v234_v59 = vld [vmem:[#allocation2 + $0x210] sm:$0xff]  ;;  %v97_v60 = vld [vmem:[#allocation2 + $0x8] sm:$0xff]  ;;  %v96_v62 = vld [vmem:[#allocation2] sm:$0xff] }
  0x3a   :  { %315 = vmatpush1.msra.mxu1 %v244_v39  ;;  %180 = vmatprep.subr.mxu0 %v107_v40  ;;  %v233_v61 = vld [vmem:[#allocation2 + $0x208] sm:$0xff]  ;;  %v232_v63 = vld [vmem:[#allocation2 + $0x200] sm:$0xff]  ;;  %v159_v0 = vld [vmem:[#allocation2 + $0x1f8] sm:$0xff] }
  0x3b   :  { %316 = vmatprep.subr.mxu1 %v243_v41  ;;  %181 = vmatpush1.msra.mxu0 %v106_v42  ;;  %v295_v1 = vld [vmem:[#allocation2 + $0x3f8] sm:$0xff]  ;;  %v158_v2 = vld [vmem:[#allocation2 + $0x1f0] sm:$0xff]  ;;  %v157_v4 = vld [vmem:[#allocation2 + $0x1e8] sm:$0xff] }
  0x3c   :  { %317 = vmatpush1.msra.mxu1 %v242_v43  ;;  %182 = vmatprep.subr.mxu0 %v105_v44  ;;  %v294_v3 = vld [vmem:[#allocation2 + $0x3f0] sm:$0xff]  ;;  %v293_v5 = vld [vmem:[#allocation2 + $0x3e8] sm:$0xff]  ;;  %v156_v6 = vld [vmem:[#allocation2 + $0x1e0] sm:$0xff] }
  0x3d   :  { %318 = vmatprep.subr.mxu1 %v241_v45  ;;  %183 = vmatpush1.msra.mxu0 %v104_v46  ;;  %v292_v7 = vld [vmem:[#allocation2 + $0x3e0] sm:$0xff]  ;;  %v155_v8 = vld [vmem:[#allocation2 + $0x1d8] sm:$0xff]  ;;  %v154_v10 = vld [vmem:[#allocation2 + $0x1d0] sm:$0xff] }
  0x3e   :  { %319 = vmatpush1.msra.mxu1 %v240_v47  ;;  %184 = vmatprep.subr.mxu0 %v103_v48  ;;  %v291_v9 = vld [vmem:[#allocation2 + $0x3d8] sm:$0xff]  ;;  %v290_v11 = vld [vmem:[#allocation2 + $0x3d0] sm:$0xff]  ;;  %v153_v12 = vld [vmem:[#allocation2 + $0x1c8] sm:$0xff] }
  0x3f   :  { %320 = vmatprep.subr.mxu1 %v239_v49  ;;  %185 = vmatpush1.msra.mxu0 %v102_v50  ;;  %v289_v13 = vld [vmem:[#allocation2 + $0x3c8] sm:$0xff]  ;;  %v152_v14 = vld [vmem:[#allocation2 + $0x1c0] sm:$0xff]  ;;  %v151_v16 = vld [vmem:[#allocation2 + $0x1b8] sm:$0xff] }
  0x40   :  { %321 = vmatpush1.msra.mxu1 %v238_v51  ;;  %186 = vmatprep.subr.mxu0 %v101_v52  ;;  %v288_v15 = vld [vmem:[#allocation2 + $0x3c0] sm:$0xff]  ;;  %v287_v17 = vld [vmem:[#allocation2 + $0x3b8] sm:$0xff]  ;;  %v150_v18 = vld [vmem:[#allocation2 + $0x1b0] sm:$0xff] }
  0x41   :  { %322 = vmatprep.subr.mxu1 %v237_v53  ;;  %187 = vmatpush1.msra.mxu0 %v100_v54  ;;  %v286_v19 = vld [vmem:[#allocation2 + $0x3b0] sm:$0xff]  ;;  %v149_v20 = vld [vmem:[#allocation2 + $0x1a8] sm:$0xff]  ;;  %v148_v22 = vld [vmem:[#allocation2 + $0x1a0] sm:$0xff] }
  0x42   :  { %323 = vmatpush1.msra.mxu1 %v236_v55  ;;  %188 = vmatprep.subr.mxu0 %v99_v56  ;;  %v285_v21 = vld [vmem:[#allocation2 + $0x3a8] sm:$0xff]  ;;  %v284_v23 = vld [vmem:[#allocation2 + $0x3a0] sm:$0xff]  ;;  %v147_v24 = vld [vmem:[#allocation2 + $0x198] sm:$0xff] }
  0x43   :  { %324 = vmatprep.subr.mxu1 %v235_v57  ;;  %189 = vmatpush1.msra.mxu0 %v98_v58  ;;  %v283_v25 = vld [vmem:[#allocation2 + $0x398] sm:$0xff]  ;;  %v146_v26 = vld [vmem:[#allocation2 + $0x190] sm:$0xff]  ;;  %v145_v28 = vld [vmem:[#allocation2 + $0x188] sm:$0xff] }
  0x44   :  { %325 = vmatpush1.msra.mxu1 %v234_v59  ;;  %190 = vmatprep.subr.mxu0 %v97_v60  ;;  %v282_v27 = vld [vmem:[#allocation2 + $0x390] sm:$0xff]  ;;  %v281_v29 = vld [vmem:[#allocation2 + $0x388] sm:$0xff]  ;;  %v144_v30 = vld [vmem:[#allocation2 + $0x180] sm:$0xff] }
  0x45   :  { %326 = vmatprep.subr.mxu1 %v233_v61  ;;  %191 = vmatpush1.msra.mxu0 %v96_v62  ;;  %v280_v31 = vld [vmem:[#allocation2 + $0x380] sm:$0xff]  ;;  %v143_v32 = vld [vmem:[#allocation2 + $0x178] sm:$0xff]  ;;  %v142_v34 = vld [vmem:[#allocation2 + $0x170] sm:$0xff] }
  0x46   :  { %327 = vmatpush1.msra.mxu1 %v232_v63  ;;  %192 = vmatprep.subr.mxu0 %v159_v0  ;;  %v279_v33 = vld [vmem:[#allocation2 + $0x378] sm:$0xff]  ;;  %v278_v35 = vld [vmem:[#allocation2 + $0x370] sm:$0xff]  ;;  %v141_v36 = vld [vmem:[#allocation2 + $0x168] sm:$0xff] }
  0x47   :  { %328 = vmatprep.subr.mxu1 %v295_v1  ;;  %193 = vmatpush2.msra.mxu0 %v158_v2  ;;  %v277_v37 = vld [vmem:[#allocation2 + $0x368] sm:$0xff]  ;;  %v140_v38 = vld [vmem:[#allocation2 + $0x160] sm:$0xff]  ;;  %v139_v40 = vld [vmem:[#allocation2 + $0x158] sm:$0xff] }
  0x48   :  { %329 = vmatpush2.msra.mxu1 %v294_v3  ;;  %194 = vmatprep.subr.mxu0 %v157_v4  ;;  %v276_v39 = vld [vmem:[#allocation2 + $0x360] sm:$0xff]  ;;  %v275_v41 = vld [vmem:[#allocation2 + $0x358] sm:$0xff]  ;;  %v138_v42 = vld [vmem:[#allocation2 + $0x150] sm:$0xff] }
  0x49   :  { %330 = vmatprep.subr.mxu1 %v293_v5  ;;  %195 = vmatpush2.msra.mxu0 %v156_v6  ;;  %v274_v43 = vld [vmem:[#allocation2 + $0x350] sm:$0xff]  ;;  %v137_v44 = vld [vmem:[#allocation2 + $0x148] sm:$0xff]  ;;  %v136_v46 = vld [vmem:[#allocation2 + $0x140] sm:$0xff] }
  0x4a   :  { %331 = vmatpush2.msra.mxu1 %v292_v7  ;;  %196 = vmatprep.subr.mxu0 %v155_v8  ;;  %v273_v45 = vld [vmem:[#allocation2 + $0x348] sm:$0xff]  ;;  %v272_v47 = vld [vmem:[#allocation2 + $0x340] sm:$0xff]  ;;  %v135_v48 = vld [vmem:[#allocation2 + $0x138] sm:$0xff] }
  0x4b   :  { %332 = vmatprep.subr.mxu1 %v291_v9  ;;  %197 = vmatpush2.msra.mxu0 %v154_v10  ;;  %v271_v49 = vld [vmem:[#allocation2 + $0x338] sm:$0xff]  ;;  %v134_v50 = vld [vmem:[#allocation2 + $0x130] sm:$0xff]  ;;  %v133_v52 = vld [vmem:[#allocation2 + $0x128] sm:$0xff] }
  0x4c   :  { %333 = vmatpush2.msra.mxu1 %v290_v11  ;;  %198 = vmatprep.subr.mxu0 %v153_v12  ;;  %v270_v51 = vld [vmem:[#allocation2 + $0x330] sm:$0xff]  ;;  %v269_v53 = vld [vmem:[#allocation2 + $0x328] sm:$0xff]  ;;  %v132_v54 = vld [vmem:[#allocation2 + $0x120] sm:$0xff] }
  0x4d   :  { %334 = vmatprep.subr.mxu1 %v289_v13  ;;  %199 = vmatpush2.msra.mxu0 %v152_v14  ;;  %v268_v55 = vld [vmem:[#allocation2 + $0x320] sm:$0xff]  ;;  %v131_v56 = vld [vmem:[#allocation2 + $0x118] sm:$0xff]  ;;  %v130_v58 = vld [vmem:[#allocation2 + $0x110] sm:$0xff] }
  0x4e   :  { %335 = vmatpush2.msra.mxu1 %v288_v15  ;;  %200 = vmatprep.subr.mxu0 %v151_v16  ;;  %v267_v57 = vld [vmem:[#allocation2 + $0x318] sm:$0xff]  ;;  %v266_v59 = vld [vmem:[#allocation2 + $0x310] sm:$0xff]  ;;  %v129_v60 = vld [vmem:[#allocation2 + $0x108] sm:$0xff] }
  0x4f   :  { %336 = vmatprep.subr.mxu1 %v287_v17  ;;  %201 = vmatpush2.msra.mxu0 %v150_v18  ;;  %v265_v61 = vld [vmem:[#allocation2 + $0x308] sm:$0xff]  ;;  %v128_v62 = vld [vmem:[#allocation2 + $0x100] sm:$0xff]  ;;  %v399_v2 = vld [vmem:[#allocation2 + $0x4f8] sm:$0xff] }
  0x50   :  { %337 = vmatpush2.msra.mxu1 %v286_v19  ;;  %202 = vmatprep.subr.mxu0 %v149_v20  ;;  %v264_v63 = vld [vmem:[#allocation2 + $0x300] sm:$0xff]  ;;  %v3591_v0 = vld [vmem:[%s4111_s6 + $0x8] sm:$0xff]  ;;  %v535_v3 = vld [vmem:[#allocation2 + $0x6f8] sm:$0xff] }
  0x51   :  { %338 = vmatprep.subr.mxu1 %v285_v21  ;;  %203 = vmatpush2.msra.mxu0 %v148_v22  ;;  %v3596_v1 = vld [vmem:[%s4111_s6] sm:$0xff]  ;;  %v398_v4 = vld [vmem:[#allocation2 + $0x4f0] sm:$0xff]  ;;  %v397_v6 = vld [vmem:[#allocation2 + $0x4e8] sm:$0xff] }
  0x52   :  { %339 = vmatpush2.msra.mxu1 %v284_v23  ;;  %204 = vmatprep.subr.mxu0 %v147_v24  ;;  %v534_v5 = vld [vmem:[#allocation2 + $0x6f0] sm:$0xff]  ;;  %v533_v7 = vld [vmem:[#allocation2 + $0x6e8] sm:$0xff]  ;;  %v396_v8 = vld [vmem:[#allocation2 + $0x4e0] sm:$0xff] }
  0x53   :  { %340 = vmatprep.subr.mxu1 %v283_v25  ;;  %205 = vmatpush2.msra.mxu0 %v146_v26  ;;  %v532_v9 = vld [vmem:[#allocation2 + $0x6e0] sm:$0xff]  ;;  %v395_v10 = vld [vmem:[#allocation2 + $0x4d8] sm:$0xff]  ;;  %v394_v12 = vld [vmem:[#allocation2 + $0x4d0] sm:$0xff] }
  0x54   :  { %341 = vmatpush2.msra.mxu1 %v282_v27  ;;  %206 = vmatprep.subr.mxu0 %v145_v28  ;;  %v531_v11 = vld [vmem:[#allocation2 + $0x6d8] sm:$0xff]  ;;  %v530_v13 = vld [vmem:[#allocation2 + $0x6d0] sm:$0xff]  ;;  %v393_v14 = vld [vmem:[#allocation2 + $0x4c8] sm:$0xff] }
  0x55   :  { %342 = vmatprep.subr.mxu1 %v281_v29  ;;  %207 = vmatpush2.msra.mxu0 %v144_v30  ;;  %v529_v15 = vld [vmem:[#allocation2 + $0x6c8] sm:$0xff]  ;;  %v392_v16 = vld [vmem:[#allocation2 + $0x4c0] sm:$0xff]  ;;  %v391_v18 = vld [vmem:[#allocation2 + $0x4b8] sm:$0xff] }
  0x56   :  { %343 = vmatpush2.msra.mxu1 %v280_v31  ;;  %208 = vmatprep.subr.mxu0 %v143_v32  ;;  %v528_v17 = vld [vmem:[#allocation2 + $0x6c0] sm:$0xff]  ;;  %v527_v19 = vld [vmem:[#allocation2 + $0x6b8] sm:$0xff]  ;;  %v390_v20 = vld [vmem:[#allocation2 + $0x4b0] sm:$0xff] }
  0x57   :  { %344 = vmatprep.subr.mxu1 %v279_v33  ;;  %209 = vmatpush2.msra.mxu0 %v142_v34  ;;  %v526_v21 = vld [vmem:[#allocation2 + $0x6b0] sm:$0xff]  ;;  %v389_v22 = vld [vmem:[#allocation2 + $0x4a8] sm:$0xff]  ;;  %v388_v24 = vld [vmem:[#allocation2 + $0x4a0] sm:$0xff] }
  0x58   :  { %345 = vmatpush2.msra.mxu1 %v278_v35  ;;  %210 = vmatprep.subr.mxu0 %v141_v36  ;;  %v525_v23 = vld [vmem:[#allocation2 + $0x6a8] sm:$0xff]  ;;  %v524_v25 = vld [vmem:[#allocation2 + $0x6a0] sm:$0xff]  ;;  %v387_v26 = vld [vmem:[#allocation2 + $0x498] sm:$0xff] }
  0x59   :  { %346 = vmatprep.subr.mxu1 %v277_v37  ;;  %211 = vmatpush2.msra.mxu0 %v140_v38  ;;  %v523_v27 = vld [vmem:[#allocation2 + $0x698] sm:$0xff]  ;;  %v386_v28 = vld [vmem:[#allocation2 + $0x490] sm:$0xff]  ;;  %v385_v30 = vld [vmem:[#allocation2 + $0x488] sm:$0xff] }
  0x5a   :  { %347 = vmatpush2.msra.mxu1 %v276_v39  ;;  %212 = vmatprep.subr.mxu0 %v139_v40  ;;  %v522_v29 = vld [vmem:[#allocation2 + $0x690] sm:$0xff]  ;;  %v521_v31 = vld [vmem:[#allocation2 + $0x688] sm:$0xff]  ;;  %v384_v32 = vld [vmem:[#allocation2 + $0x480] sm:$0xff] }
  0x5b   :  { %348 = vmatprep.subr.mxu1 %v275_v41  ;;  %213 = vmatpush2.msra.mxu0 %v138_v42  ;;  %v520_v33 = vld [vmem:[#allocation2 + $0x680] sm:$0xff]  ;;  %v383_v34 = vld [vmem:[#allocation2 + $0x478] sm:$0xff]  ;;  %v382_v36 = vld [vmem:[#allocation2 + $0x470] sm:$0xff] }
  0x5c   :  { %349 = vmatpush2.msra.mxu1 %v274_v43  ;;  %214 = vmatprep.subr.mxu0 %v137_v44  ;;  %v519_v35 = vld [vmem:[#allocation2 + $0x678] sm:$0xff]  ;;  %v518_v37 = vld [vmem:[#allocation2 + $0x670] sm:$0xff]  ;;  %v381_v38 = vld [vmem:[#allocation2 + $0x468] sm:$0xff] }
  0x5d   :  { %350 = vmatprep.subr.mxu1 %v273_v45  ;;  %215 = vmatpush2.msra.mxu0 %v136_v46  ;;  %v517_v39 = vld [vmem:[#allocation2 + $0x668] sm:$0xff]  ;;  %v380_v40 = vld [vmem:[#allocation2 + $0x460] sm:$0xff]  ;;  %v379_v42 = vld [vmem:[#allocation2 + $0x458] sm:$0xff] }
  0x5e   :  { %351 = vmatpush2.msra.mxu1 %v272_v47  ;;  %216 = vmatprep.subr.mxu0 %v135_v48  ;;  %v516_v41 = vld [vmem:[#allocation2 + $0x660] sm:$0xff]  ;;  %v515_v43 = vld [vmem:[#allocation2 + $0x658] sm:$0xff]  ;;  %v378_v44 = vld [vmem:[#allocation2 + $0x450] sm:$0xff] }
  0x5f   :  { %352 = vmatprep.subr.mxu1 %v271_v49  ;;  %217 = vmatpush2.msra.mxu0 %v134_v50  ;;  %v514_v45 = vld [vmem:[#allocation2 + $0x650] sm:$0xff]  ;;  %v377_v46 = vld [vmem:[#allocation2 + $0x448] sm:$0xff]  ;;  %v376_v48 = vld [vmem:[#allocation2 + $0x440] sm:$0xff] }
  0x60   :  { %353 = vmatpush2.msra.mxu1 %v270_v51  ;;  %218 = vmatprep.subr.mxu0 %v133_v52  ;;  %v513_v47 = vld [vmem:[#allocation2 + $0x648] sm:$0xff]  ;;  %v512_v49 = vld [vmem:[#allocation2 + $0x640] sm:$0xff]  ;;  %v375_v50 = vld [vmem:[#allocation2 + $0x438] sm:$0xff] }
  0x61   :  { %354 = vmatprep.subr.mxu1 %v269_v53  ;;  %219 = vmatpush2.msra.mxu0 %v132_v54  ;;  %v511_v51 = vld [vmem:[#allocation2 + $0x638] sm:$0xff]  ;;  %v374_v52 = vld [vmem:[#allocation2 + $0x430] sm:$0xff]  ;;  %v373_v54 = vld [vmem:[#allocation2 + $0x428] sm:$0xff] }
  0x62   :  { %355 = vmatpush2.msra.mxu1 %v268_v55  ;;  %220 = vmatprep.subr.mxu0 %v131_v56  ;;  %v510_v53 = vld [vmem:[#allocation2 + $0x630] sm:$0xff]  ;;  %v509_v55 = vld [vmem:[#allocation2 + $0x628] sm:$0xff]  ;;  %v372_v56 = vld [vmem:[#allocation2 + $0x420] sm:$0xff] }
  0x63   :  { %356 = vmatprep.subr.mxu1 %v267_v57  ;;  %221 = vmatpush2.msra.mxu0 %v130_v58  ;;  %v508_v57 = vld [vmem:[#allocation2 + $0x620] sm:$0xff]  ;;  %v371_v58 = vld [vmem:[#allocation2 + $0x418] sm:$0xff] }
  0x64   :  { %357 = vmatpush2.msra.mxu1 %v266_v59  ;;  %222 = vmatprep.subr.mxu0 %v129_v60  ;;  %v507_v59 = vld [vmem:[#allocation2 + $0x618] sm:$0xff]  ;;  %v370_v60 = vld [vmem:[#allocation2 + $0x410] sm:$0xff] }
  0x65   :  { %358 = vmatprep.subr.mxu1 %v265_v61  ;;  %223 = vmatpush2.msra.mxu0 %v128_v62  ;;  %v506_v61 = vld [vmem:[#allocation2 + $0x610] sm:$0xff]  ;;  %v369_v62 = vld [vmem:[#allocation2 + $0x408] sm:$0xff] }
  0x66   :  { %359 = vmatpush2.msra.mxu1 %v264_v63  ;;  %360 = vmatprep.mubr.f32.mxu1 %v3591_v0  ;;  %v505_v63 = vld [vmem:[#allocation2 + $0x608] sm:$0xff] }
  0x67   :  { %224 = vmatprep.mubr.f32.mxu0 %v3591_v0  ;;  %361 = vmatmul.mubr.f32.vlgmr.msra.gmra.mxu1 %v3596_v1 }
  0x68   :  { %432 = vmatprep.subr.mxu0 %v399_v2  ;;  %568 = vmatprep.subr.mxu1 %v535_v3  ;;  %v368_v2 = vld [vmem:[#allocation2 + $0x400] sm:$0xff] }
  0x69   :  { %225 = vmatmul.mubr.f32.vlgmr.msra.gmra.mxu0 %v3596_v1  ;;  %569 = vmatpush1.msra.mxu1 %v534_v5  ;;  %v504_v3 = vld [vmem:[#allocation2 + $0x600] sm:$0xff]  ;;  %v567_v5 = vld [vmem:[#allocation2 + $0x7f8] sm:$0xff] }
  0x6a   :  { %433 = vmatpush1.msra.mxu0 %v398_v4  ;;  %570 = vmatprep.subr.mxu1 %v533_v7  ;;  %v431_v4 = vld [vmem:[#allocation2 + $0x5f8] sm:$0xff]  ;;  %v566_v7 = vld [vmem:[#allocation2 + $0x7f0] sm:$0xff] }
  0x6b   :  { %434 = vmatprep.subr.mxu0 %v397_v6  ;;  %571 = vmatpush1.msra.mxu1 %v532_v9  ;;  %v430_v6 = vld [vmem:[#allocation2 + $0x5f0] sm:$0xff]  ;;  %v565_v9 = vld [vmem:[#allocation2 + $0x7e8] sm:$0xff] }
  0x6c   :  { %435 = vmatpush1.msra.mxu0 %v396_v8  ;;  %572 = vmatprep.subr.mxu1 %v531_v11  ;;  %v429_v8 = vld [vmem:[#allocation2 + $0x5e8] sm:$0xff]  ;;  %v564_v11 = vld [vmem:[#allocation2 + $0x7e0] sm:$0xff] }
  0x6d   :  { %436 = vmatprep.subr.mxu0 %v395_v10  ;;  %573 = vmatpush1.msra.mxu1 %v530_v13  ;;  %v428_v10 = vld [vmem:[#allocation2 + $0x5e0] sm:$0xff]  ;;  %v563_v13 = vld [vmem:[#allocation2 + $0x7d8] sm:$0xff] }
  0x6e   :  { %437 = vmatpush1.msra.mxu0 %v394_v12  ;;  %574 = vmatprep.subr.mxu1 %v529_v15  ;;  %v427_v12 = vld [vmem:[#allocation2 + $0x5d8] sm:$0xff]  ;;  %v562_v15 = vld [vmem:[#allocation2 + $0x7d0] sm:$0xff] }
  0x6f   :  { %438 = vmatprep.subr.mxu0 %v393_v14  ;;  %575 = vmatpush1.msra.mxu1 %v528_v17  ;;  %v426_v14 = vld [vmem:[#allocation2 + $0x5d0] sm:$0xff]  ;;  %v561_v17 = vld [vmem:[#allocation2 + $0x7c8] sm:$0xff] }
  0x70   :  { %439 = vmatpush1.msra.mxu0 %v392_v16  ;;  %576 = vmatprep.subr.mxu1 %v527_v19  ;;  %v425_v16 = vld [vmem:[#allocation2 + $0x5c8] sm:$0xff]  ;;  %v560_v19 = vld [vmem:[#allocation2 + $0x7c0] sm:$0xff] }
  0x71   :  { %440 = vmatprep.subr.mxu0 %v391_v18  ;;  %577 = vmatpush1.msra.mxu1 %v526_v21  ;;  %v424_v18 = vld [vmem:[#allocation2 + $0x5c0] sm:$0xff]  ;;  %v559_v21 = vld [vmem:[#allocation2 + $0x7b8] sm:$0xff] }
  0x72   :  { %441 = vmatpush1.msra.mxu0 %v390_v20  ;;  %578 = vmatprep.subr.mxu1 %v525_v23  ;;  %v423_v20 = vld [vmem:[#allocation2 + $0x5b8] sm:$0xff]  ;;  %v558_v23 = vld [vmem:[#allocation2 + $0x7b0] sm:$0xff] }
  0x73   :  { %442 = vmatprep.subr.mxu0 %v389_v22  ;;  %579 = vmatpush1.msra.mxu1 %v524_v25  ;;  %v422_v22 = vld [vmem:[#allocation2 + $0x5b0] sm:$0xff]  ;;  %v557_v25 = vld [vmem:[#allocation2 + $0x7a8] sm:$0xff] }
  0x74   :  { %443 = vmatpush1.msra.mxu0 %v388_v24  ;;  %580 = vmatprep.subr.mxu1 %v523_v27  ;;  %v421_v24 = vld [vmem:[#allocation2 + $0x5a8] sm:$0xff]  ;;  %v556_v27 = vld [vmem:[#allocation2 + $0x7a0] sm:$0xff] }
  0x75   :  { %444 = vmatprep.subr.mxu0 %v387_v26  ;;  %581 = vmatpush1.msra.mxu1 %v522_v29  ;;  %v420_v26 = vld [vmem:[#allocation2 + $0x5a0] sm:$0xff]  ;;  %v555_v29 = vld [vmem:[#allocation2 + $0x798] sm:$0xff] }
  0x76   :  { %445 = vmatpush1.msra.mxu0 %v386_v28  ;;  %582 = vmatprep.subr.mxu1 %v521_v31  ;;  %v419_v28 = vld [vmem:[#allocation2 + $0x598] sm:$0xff]  ;;  %v554_v31 = vld [vmem:[#allocation2 + $0x790] sm:$0xff] }
  0x77   :  { %446 = vmatprep.subr.mxu0 %v385_v30  ;;  %583 = vmatpush1.msra.mxu1 %v520_v33  ;;  %v418_v30 = vld [vmem:[#allocation2 + $0x590] sm:$0xff]  ;;  %v553_v33 = vld [vmem:[#allocation2 + $0x788] sm:$0xff] }
  0x78   :  { %447 = vmatpush1.msra.mxu0 %v384_v32  ;;  %584 = vmatprep.subr.mxu1 %v519_v35  ;;  %v417_v32 = vld [vmem:[#allocation2 + $0x588] sm:$0xff]  ;;  %v552_v35 = vld [vmem:[#allocation2 + $0x780] sm:$0xff] }
  0x79   :  { %448 = vmatprep.subr.mxu0 %v383_v34  ;;  %585 = vmatpush1.msra.mxu1 %v518_v37  ;;  %v416_v34 = vld [vmem:[#allocation2 + $0x580] sm:$0xff]  ;;  %v551_v37 = vld [vmem:[#allocation2 + $0x778] sm:$0xff] }
  0x7a   :  { %449 = vmatpush1.msra.mxu0 %v382_v36  ;;  %586 = vmatprep.subr.mxu1 %v517_v39  ;;  %v415_v36 = vld [vmem:[#allocation2 + $0x578] sm:$0xff]  ;;  %v550_v39 = vld [vmem:[#allocation2 + $0x770] sm:$0xff] }
  0x7b   :  { %450 = vmatprep.subr.mxu0 %v381_v38  ;;  %587 = vmatpush1.msra.mxu1 %v516_v41  ;;  %v414_v38 = vld [vmem:[#allocation2 + $0x570] sm:$0xff]  ;;  %v549_v41 = vld [vmem:[#allocation2 + $0x768] sm:$0xff] }
  0x7c   :  { %451 = vmatpush1.msra.mxu0 %v380_v40  ;;  %588 = vmatprep.subr.mxu1 %v515_v43  ;;  %v413_v40 = vld [vmem:[#allocation2 + $0x568] sm:$0xff]  ;;  %v548_v43 = vld [vmem:[#allocation2 + $0x760] sm:$0xff] }
  0x7d   :  { %452 = vmatprep.subr.mxu0 %v379_v42  ;;  %589 = vmatpush1.msra.mxu1 %v514_v45  ;;  %v412_v42 = vld [vmem:[#allocation2 + $0x560] sm:$0xff]  ;;  %v547_v45 = vld [vmem:[#allocation2 + $0x758] sm:$0xff] }
  0x7e   :  { %453 = vmatpush1.msra.mxu0 %v378_v44  ;;  %590 = vmatprep.subr.mxu1 %v513_v47  ;;  %v411_v44 = vld [vmem:[#allocation2 + $0x558] sm:$0xff]  ;;  %v546_v47 = vld [vmem:[#allocation2 + $0x750] sm:$0xff] }
  0x7f   :  { %454 = vmatprep.subr.mxu0 %v377_v46  ;;  %591 = vmatpush1.msra.mxu1 %v512_v49  ;;  %v410_v46 = vld [vmem:[#allocation2 + $0x550] sm:$0xff]  ;;  %v545_v49 = vld [vmem:[#allocation2 + $0x748] sm:$0xff] }
  0x80   :  { %455 = vmatpush1.msra.mxu0 %v376_v48  ;;  %592 = vmatprep.subr.mxu1 %v511_v51  ;;  %v409_v48 = vld [vmem:[#allocation2 + $0x548] sm:$0xff]  ;;  %v544_v51 = vld [vmem:[#allocation2 + $0x740] sm:$0xff] }
  0x81   :  { %456 = vmatprep.subr.mxu0 %v375_v50  ;;  %593 = vmatpush1.msra.mxu1 %v510_v53  ;;  %v408_v50 = vld [vmem:[#allocation2 + $0x540] sm:$0xff]  ;;  %v543_v53 = vld [vmem:[#allocation2 + $0x738] sm:$0xff] }
  0x82   :  { %457 = vmatpush1.msra.mxu0 %v374_v52  ;;  %594 = vmatprep.subr.mxu1 %v509_v55  ;;  %v407_v52 = vld [vmem:[#allocation2 + $0x538] sm:$0xff]  ;;  %v542_v55 = vld [vmem:[#allocation2 + $0x730] sm:$0xff] }
  0x83   :  { %458 = vmatprep.subr.mxu0 %v373_v54  ;;  %595 = vmatpush1.msra.mxu1 %v508_v57  ;;  %v406_v54 = vld [vmem:[#allocation2 + $0x530] sm:$0xff]  ;;  %v541_v57 = vld [vmem:[#allocation2 + $0x728] sm:$0xff] }
  0x84   :  { %459 = vmatpush1.msra.mxu0 %v372_v56  ;;  %596 = vmatprep.subr.mxu1 %v507_v59  ;;  %v405_v56 = vld [vmem:[#allocation2 + $0x528] sm:$0xff]  ;;  %v540_v59 = vld [vmem:[#allocation2 + $0x720] sm:$0xff] }
  0x85   :  { %460 = vmatprep.subr.mxu0 %v371_v58  ;;  %597 = vmatpush1.msra.mxu1 %v506_v61  ;;  %v404_v58 = vld [vmem:[#allocation2 + $0x520] sm:$0xff]  ;;  %v539_v61 = vld [vmem:[#allocation2 + $0x718] sm:$0xff] }
  0x86   :  { %461 = vmatpush1.msra.mxu0 %v370_v60  ;;  %598 = vmatprep.subr.mxu1 %v505_v63  ;;  %v403_v60 = vld [vmem:[#allocation2 + $0x518] sm:$0xff]  ;;  %v538_v63 = vld [vmem:[#allocation2 + $0x710] sm:$0xff] }
  0x87   :  { %462 = vmatprep.subr.mxu0 %v369_v62  ;;  %599 = vmatpush1.msra.mxu1 %v504_v3  ;;  %v402_v62 = vld [vmem:[#allocation2 + $0x510] sm:$0xff]  ;;  %v537_v3 = vld [vmem:[#allocation2 + $0x708] sm:$0xff] }
  0x88   :  { %463 = vmatpush1.msra.mxu0 %v368_v2  ;;  %600 = vmatprep.subr.mxu1 %v567_v5  ;;  %v401_v2 = vld [vmem:[#allocation2 + $0x508] sm:$0xff]  ;;  %v536_v5 = vld [vmem:[#allocation2 + $0x700] sm:$0xff] }
  0x89   :  { %464 = vmatprep.subr.mxu0 %v431_v4  ;;  %601 = vmatpush2.msra.mxu1 %v566_v7  ;;  %v400_v4 = vld [vmem:[#allocation2 + $0x500] sm:$0xff]  ;;  %v807_v7 = vld [vmem:[#allocation2 + $0xaf8] sm:$0xff] }
  0x8a   :  { %465 = vmatpush2.msra.mxu0 %v430_v6  ;;  %602 = vmatprep.subr.mxu1 %v565_v9  ;;  %v671_v6 = vld [vmem:[#allocation2 + $0x8f8] sm:$0xff]  ;;  %v806_v9 = vld [vmem:[#allocation2 + $0xaf0] sm:$0xff] }
  0x8b   :  { %466 = vmatprep.subr.mxu0 %v429_v8  ;;  %603 = vmatpush2.msra.mxu1 %v564_v11  ;;  %v670_v8 = vld [vmem:[#allocation2 + $0x8f0] sm:$0xff]  ;;  %v805_v11 = vld [vmem:[#allocation2 + $0xae8] sm:$0xff] }
  0x8c   :  { %467 = vmatpush2.msra.mxu0 %v428_v10  ;;  %604 = vmatprep.subr.mxu1 %v563_v13  ;;  %v669_v10 = vld [vmem:[#allocation2 + $0x8e8] sm:$0xff]  ;;  %v804_v13 = vld [vmem:[#allocation2 + $0xae0] sm:$0xff] }
  0x8d   :  { %468 = vmatprep.subr.mxu0 %v427_v12  ;;  %605 = vmatpush2.msra.mxu1 %v562_v15  ;;  %v668_v12 = vld [vmem:[#allocation2 + $0x8e0] sm:$0xff]  ;;  %v803_v15 = vld [vmem:[#allocation2 + $0xad8] sm:$0xff] }
  0x8e   :  { %469 = vmatpush2.msra.mxu0 %v426_v14  ;;  %606 = vmatprep.subr.mxu1 %v561_v17  ;;  %v667_v14 = vld [vmem:[#allocation2 + $0x8d8] sm:$0xff]  ;;  %v665_v17 = vld [vmem:[#allocation2 + $0x8c8] sm:$0xff] }
  0x8f   :  { %470 = vmatprep.subr.mxu0 %v425_v16  ;;  %607 = vmatpush2.msra.mxu1 %v560_v19  ;;  %v666_v16 = vld [vmem:[#allocation2 + $0x8d0] sm:$0xff]  ;;  %v664_v19 = vld [vmem:[#allocation2 + $0x8c0] sm:$0xff] }
  0x90   :  { %471 = vmatpush2.msra.mxu0 %v424_v18  ;;  %608 = vmatprep.subr.mxu1 %v559_v21  ;;  %v801_v18 = vld [vmem:[#allocation2 + $0xac8] sm:$0xff]  ;;  %v799_v21 = vld [vmem:[#allocation2 + $0xab8] sm:$0xff] }
  0x91   :  { %472 = vmatprep.subr.mxu0 %v423_v20  ;;  %609 = vmatpush2.msra.mxu1 %v558_v23  ;;  %v800_v20 = vld [vmem:[#allocation2 + $0xac0] sm:$0xff]  ;;  %v798_v23 = vld [vmem:[#allocation2 + $0xab0] sm:$0xff] }
  0x92   :  { %473 = vmatpush2.msra.mxu0 %v422_v22  ;;  %610 = vmatprep.subr.mxu1 %v557_v25  ;;  %v662_v22 = vld [vmem:[#allocation2 + $0x8b0] sm:$0xff]  ;;  %v797_v25 = vld [vmem:[#allocation2 + $0xaa8] sm:$0xff] }
  0x93   :  { %474 = vmatprep.subr.mxu0 %v421_v24  ;;  %611 = vmatpush2.msra.mxu1 %v556_v27  ;;  %v661_v24 = vld [vmem:[#allocation2 + $0x8a8] sm:$0xff]  ;;  %v796_v27 = vld [vmem:[#allocation2 + $0xaa0] sm:$0xff] }
  0x94   :  { %475 = vmatpush2.msra.mxu0 %v420_v26  ;;  %612 = vmatprep.subr.mxu1 %v555_v29  ;;  %v660_v26 = vld [vmem:[#allocation2 + $0x8a0] sm:$0xff]  ;;  %v795_v29 = vld [vmem:[#allocation2 + $0xa98] sm:$0xff] }
  0x95   :  { %476 = vmatprep.subr.mxu0 %v419_v28  ;;  %613 = vmatpush2.msra.mxu1 %v554_v31  ;;  %v659_v28 = vld [vmem:[#allocation2 + $0x898] sm:$0xff]  ;;  %v794_v31 = vld [vmem:[#allocation2 + $0xa90] sm:$0xff] }
  0x96   :  { %477 = vmatpush2.msra.mxu0 %v418_v30  ;;  %614 = vmatprep.subr.mxu1 %v553_v33  ;;  %v658_v30 = vld [vmem:[#allocation2 + $0x890] sm:$0xff]  ;;  %v793_v33 = vld [vmem:[#allocation2 + $0xa88] sm:$0xff] }
  0x97   :  { %478 = vmatprep.subr.mxu0 %v417_v32  ;;  %615 = vmatpush2.msra.mxu1 %v552_v35  ;;  %v657_v32 = vld [vmem:[#allocation2 + $0x888] sm:$0xff]  ;;  %v792_v35 = vld [vmem:[#allocation2 + $0xa80] sm:$0xff] }
  0x98   :  { %479 = vmatpush2.msra.mxu0 %v416_v34  ;;  %616 = vmatprep.subr.mxu1 %v551_v37  ;;  %v656_v34 = vld [vmem:[#allocation2 + $0x880] sm:$0xff]  ;;  %v791_v37 = vld [vmem:[#allocation2 + $0xa78] sm:$0xff] }
  0x99   :  { %480 = vmatprep.subr.mxu0 %v415_v36  ;;  %617 = vmatpush2.msra.mxu1 %v550_v39  ;;  %v655_v36 = vld [vmem:[#allocation2 + $0x878] sm:$0xff]  ;;  %v790_v39 = vld [vmem:[#allocation2 + $0xa70] sm:$0xff] }
  0x9a   :  { %481 = vmatpush2.msra.mxu0 %v414_v38  ;;  %618 = vmatprep.subr.mxu1 %v549_v41  ;;  %v654_v38 = vld [vmem:[#allocation2 + $0x870] sm:$0xff]  ;;  %v789_v41 = vld [vmem:[#allocation2 + $0xa68] sm:$0xff] }
  0x9b   :  { %482 = vmatprep.subr.mxu0 %v413_v40  ;;  %619 = vmatpush2.msra.mxu1 %v548_v43  ;;  %v653_v40 = vld [vmem:[#allocation2 + $0x868] sm:$0xff]  ;;  %v788_v43 = vld [vmem:[#allocation2 + $0xa60] sm:$0xff] }
  0x9c   :  { %483 = vmatpush2.msra.mxu0 %v412_v42  ;;  %620 = vmatprep.subr.mxu1 %v547_v45  ;;  %v652_v42 = vld [vmem:[#allocation2 + $0x860] sm:$0xff]  ;;  %v787_v45 = vld [vmem:[#allocation2 + $0xa58] sm:$0xff] }
  0x9d   :  { %484 = vmatprep.subr.mxu0 %v411_v44  ;;  %621 = vmatpush2.msra.mxu1 %v546_v47  ;;  %v651_v44 = vld [vmem:[#allocation2 + $0x858] sm:$0xff]  ;;  %v786_v47 = vld [vmem:[#allocation2 + $0xa50] sm:$0xff] }
  0x9e   :  { %485 = vmatpush2.msra.mxu0 %v410_v46  ;;  %622 = vmatprep.subr.mxu1 %v545_v49  ;;  %v650_v46 = vld [vmem:[#allocation2 + $0x850] sm:$0xff]  ;;  %v785_v49 = vld [vmem:[#allocation2 + $0xa48] sm:$0xff] }
  0x9f   :  { %486 = vmatprep.subr.mxu0 %v409_v48  ;;  %623 = vmatpush2.msra.mxu1 %v544_v51  ;;  %v649_v48 = vld [vmem:[#allocation2 + $0x848] sm:$0xff]  ;;  %v784_v51 = vld [vmem:[#allocation2 + $0xa40] sm:$0xff] }
  0xa0   :  { %487 = vmatpush2.msra.mxu0 %v408_v50  ;;  %624 = vmatprep.subr.mxu1 %v543_v53  ;;  %v648_v50 = vld [vmem:[#allocation2 + $0x840] sm:$0xff]  ;;  %v783_v53 = vld [vmem:[#allocation2 + $0xa38] sm:$0xff] }
  0xa1   :  { %488 = vmatprep.subr.mxu0 %v407_v52  ;;  %625 = vmatpush2.msra.mxu1 %v542_v55  ;;  %v647_v52 = vld [vmem:[#allocation2 + $0x838] sm:$0xff]  ;;  %v782_v55 = vld [vmem:[#allocation2 + $0xa30] sm:$0xff] }
  0xa2   :  { %489 = vmatpush2.msra.mxu0 %v406_v54  ;;  %626 = vmatprep.subr.mxu1 %v541_v57  ;;  %v646_v54 = vld [vmem:[#allocation2 + $0x830] sm:$0xff]  ;;  %v781_v57 = vld [vmem:[#allocation2 + $0xa28] sm:$0xff] }
  0xa3   :  { %490 = vmatprep.subr.mxu0 %v405_v56  ;;  %627 = vmatpush2.msra.mxu1 %v540_v59  ;;  %v645_v56 = vld [vmem:[#allocation2 + $0x828] sm:$0xff]  ;;  %v780_v59 = vld [vmem:[#allocation2 + $0xa20] sm:$0xff] }
  0xa4   :  { %491 = vmatpush2.msra.mxu0 %v404_v58  ;;  %628 = vmatprep.subr.mxu1 %v539_v61  ;;  %v644_v58 = vld [vmem:[#allocation2 + $0x820] sm:$0xff]  ;;  %v779_v61 = vld [vmem:[#allocation2 + $0xa18] sm:$0xff] }
  0xa5   :  { %492 = vmatprep.subr.mxu0 %v403_v60  ;;  %629 = vmatpush2.msra.mxu1 %v538_v63  ;;  %v643_v60 = vld [vmem:[#allocation2 + $0x818] sm:$0xff]  ;;  %v778_v63 = vld [vmem:[#allocation2 + $0xa10] sm:$0xff] }
  0xa6   :  { %493 = vmatpush2.msra.mxu0 %v402_v62  ;;  %630 = vmatprep.subr.mxu1 %v537_v3  ;;  %v642_v62 = vld [vmem:[#allocation2 + $0x810] sm:$0xff]  ;;  %v777_v3 = vld [vmem:[#allocation2 + $0xa08] sm:$0xff] }
  0xa7   :  { %494 = vmatprep.subr.mxu0 %v401_v2  ;;  %631 = vmatpush2.msra.mxu1 %v536_v5  ;;  %v641_v2 = vld [vmem:[#allocation2 + $0x808] sm:$0xff]  ;;  %v776_v5 = vld [vmem:[#allocation2 + $0xa00] sm:$0xff] }
  0xa8   :  { %495 = vmatpush2.msra.mxu0 %v400_v4  ;;  %632 = vmatprep.mubr.f32.mxu1 %v3591_v0  ;;  %v640_v4 = vld [vmem:[#allocation2 + $0x800] sm:$0xff] }
  0xa9   :  { %496 = vmatprep.mubr.f32.mxu0 %v3591_v0  ;;  %633 = vmatmul.mubr.f32.vlgmr.msra.gmra.mxu1 %v3596_v1  ;;  %v802_v0 = vld [vmem:[#allocation2 + $0xad0] sm:$0xff] }
  0xaa   :  { %704 = vmatprep.subr.mxu0 %v671_v6  ;;  %840 = vmatprep.subr.mxu1 %v807_v7  ;;  %v703_v6 = vld [vmem:[#allocation2 + $0x9f8] sm:$0xff] }
  0xab   :  { %497 = vmatmul.mubr.f32.vlgmr.msra.gmra.mxu0 %v3596_v1  ;;  %841 = vmatpush1.msra.mxu1 %v806_v9  ;;  %v663_v1 = vld [vmem:[#allocation2 + $0x8b8] sm:$0xff]  ;;  %v838_v9 = vld [vmem:[#allocation2 + $0xbf0] sm:$0xff] }
  0xac   :  { %705 = vmatpush1.msra.mxu0 %v670_v8  ;;  %842 = vmatprep.subr.mxu1 %v805_v11  ;;  %v839_v7 = vld [vmem:[#allocation2 + $0xbf8] sm:$0xff]  ;;  %v702_v8 = vld [vmem:[#allocation2 + $0x9f0] sm:$0xff]  ;;  %v837_v11 = vld [vmem:[#allocation2 + $0xbe8] sm:$0xff] }
  0xad   :  { %706 = vmatprep.subr.mxu0 %v669_v10  ;;  %843 = vmatpush1.msra.mxu1 %v804_v13  ;;  %v701_v10 = vld [vmem:[#allocation2 + $0x9e8] sm:$0xff]  ;;  %v836_v13 = vld [vmem:[#allocation2 + $0xbe0] sm:$0xff] }
  0xae   :  { %707 = vmatpush1.msra.mxu0 %v668_v12  ;;  %844 = vmatprep.subr.mxu1 %v803_v15  ;;  %v700_v12 = vld [vmem:[#allocation2 + $0x9e0] sm:$0xff]  ;;  %v835_v15 = vld [vmem:[#allocation2 + $0xbd8] sm:$0xff] }
  0xaf   :  { %708 = vmatprep.subr.mxu0 %v667_v14  ;;  %845 = vmatpush1.msra.mxu1 %v802_v0  ;;  %v699_v14 = vld [vmem:[#allocation2 + $0x9d8] sm:$0xff]  ;;  %v834_v0 = vld [vmem:[#allocation2 + $0xbd0] sm:$0xff] }
  0xb0   :  { %709 = vmatpush1.msra.mxu0 %v666_v16  ;;  %846 = vmatprep.subr.mxu1 %v801_v18  ;;  %v698_v16 = vld [vmem:[#allocation2 + $0x9d0] sm:$0xff]  ;;  %v833_v18 = vld [vmem:[#allocation2 + $0xbc8] sm:$0xff] }
  0xb1   :  { %710 = vmatprep.subr.mxu0 %v665_v17  ;;  %847 = vmatpush1.msra.mxu1 %v800_v20  ;;  %v697_v17 = vld [vmem:[#allocation2 + $0x9c8] sm:$0xff]  ;;  %v832_v20 = vld [vmem:[#allocation2 + $0xbc0] sm:$0xff] }
  0xb2   :  { %711 = vmatpush1.msra.mxu0 %v664_v19  ;;  %848 = vmatprep.subr.mxu1 %v799_v21  ;;  %v696_v19 = vld [vmem:[#allocation2 + $0x9c0] sm:$0xff]  ;;  %v831_v21 = vld [vmem:[#allocation2 + $0xbb8] sm:$0xff] }
  0xb3   :  { %712 = vmatprep.subr.mxu0 %v663_v1  ;;  %849 = vmatpush1.msra.mxu1 %v798_v23  ;;  %v695_v1 = vld [vmem:[#allocation2 + $0x9b8] sm:$0xff]  ;;  %v830_v23 = vld [vmem:[#allocation2 + $0xbb0] sm:$0xff] }
  0xb4   :  { %713 = vmatpush1.msra.mxu0 %v662_v22  ;;  %850 = vmatprep.subr.mxu1 %v797_v25  ;;  %v694_v22 = vld [vmem:[#allocation2 + $0x9b0] sm:$0xff]  ;;  %v829_v25 = vld [vmem:[#allocation2 + $0xba8] sm:$0xff] }
  0xb5   :  { %714 = vmatprep.subr.mxu0 %v661_v24  ;;  %851 = vmatpush1.msra.mxu1 %v796_v27  ;;  %v693_v24 = vld [vmem:[#allocation2 + $0x9a8] sm:$0xff]  ;;  %v828_v27 = vld [vmem:[#allocation2 + $0xba0] sm:$0xff] }
  0xb6   :  { %715 = vmatpush1.msra.mxu0 %v660_v26  ;;  %852 = vmatprep.subr.mxu1 %v795_v29  ;;  %v692_v26 = vld [vmem:[#allocation2 + $0x9a0] sm:$0xff]  ;;  %v827_v29 = vld [vmem:[#allocation2 + $0xb98] sm:$0xff] }
  0xb7   :  { %716 = vmatprep.subr.mxu0 %v659_v28  ;;  %853 = vmatpush1.msra.mxu1 %v794_v31  ;;  %v691_v28 = vld [vmem:[#allocation2 + $0x998] sm:$0xff]  ;;  %v826_v31 = vld [vmem:[#allocation2 + $0xb90] sm:$0xff] }
  0xb8   :  { %717 = vmatpush1.msra.mxu0 %v658_v30  ;;  %854 = vmatprep.subr.mxu1 %v793_v33  ;;  %v690_v30 = vld [vmem:[#allocation2 + $0x990] sm:$0xff]  ;;  %v825_v33 = vld [vmem:[#allocation2 + $0xb88] sm:$0xff] }
  0xb9   :  { %718 = vmatprep.subr.mxu0 %v657_v32  ;;  %855 = vmatpush1.msra.mxu1 %v792_v35  ;;  %v689_v32 = vld [vmem:[#allocation2 + $0x988] sm:$0xff]  ;;  %v824_v35 = vld [vmem:[#allocation2 + $0xb80] sm:$0xff] }
  0xba   :  { %719 = vmatpush1.msra.mxu0 %v656_v34  ;;  %856 = vmatprep.subr.mxu1 %v791_v37  ;;  %v688_v34 = vld [vmem:[#allocation2 + $0x980] sm:$0xff]  ;;  %v823_v37 = vld [vmem:[#allocation2 + $0xb78] sm:$0xff] }
  0xbb   :  { %720 = vmatprep.subr.mxu0 %v655_v36  ;;  %857 = vmatpush1.msra.mxu1 %v790_v39  ;;  %v687_v36 = vld [vmem:[#allocation2 + $0x978] sm:$0xff]  ;;  %v822_v39 = vld [vmem:[#allocation2 + $0xb70] sm:$0xff] }
  0xbc   :  { %721 = vmatpush1.msra.mxu0 %v654_v38  ;;  %858 = vmatprep.subr.mxu1 %v789_v41  ;;  %v686_v38 = vld [vmem:[#allocation2 + $0x970] sm:$0xff]  ;;  %v821_v41 = vld [vmem:[#allocation2 + $0xb68] sm:$0xff] }
  0xbd   :  { %722 = vmatprep.subr.mxu0 %v653_v40  ;;  %859 = vmatpush1.msra.mxu1 %v788_v43  ;;  %v685_v40 = vld [vmem:[#allocation2 + $0x968] sm:$0xff]  ;;  %v820_v43 = vld [vmem:[#allocation2 + $0xb60] sm:$0xff] }
  0xbe   :  { %723 = vmatpush1.msra.mxu0 %v652_v42  ;;  %860 = vmatprep.subr.mxu1 %v787_v45  ;;  %v684_v42 = vld [vmem:[#allocation2 + $0x960] sm:$0xff]  ;;  %v819_v45 = vld [vmem:[#allocation2 + $0xb58] sm:$0xff] }
  0xbf   :  { %724 = vmatprep.subr.mxu0 %v651_v44  ;;  %861 = vmatpush1.msra.mxu1 %v786_v47  ;;  %v683_v44 = vld [vmem:[#allocation2 + $0x958] sm:$0xff]  ;;  %v818_v47 = vld [vmem:[#allocation2 + $0xb50] sm:$0xff] }
  0xc0   :  { %725 = vmatpush1.msra.mxu0 %v650_v46  ;;  %862 = vmatprep.subr.mxu1 %v785_v49  ;;  %v682_v46 = vld [vmem:[#allocation2 + $0x950] sm:$0xff]  ;;  %v817_v49 = vld [vmem:[#allocation2 + $0xb48] sm:$0xff] }
  0xc1   :  { %726 = vmatprep.subr.mxu0 %v649_v48  ;;  %863 = vmatpush1.msra.mxu1 %v784_v51  ;;  %v681_v48 = vld [vmem:[#allocation2 + $0x948] sm:$0xff]  ;;  %v816_v51 = vld [vmem:[#allocation2 + $0xb40] sm:$0xff] }
  0xc2   :  { %727 = vmatpush1.msra.mxu0 %v648_v50  ;;  %864 = vmatprep.subr.mxu1 %v783_v53  ;;  %v680_v50 = vld [vmem:[#allocation2 + $0x940] sm:$0xff]  ;;  %v815_v53 = vld [vmem:[#allocation2 + $0xb38] sm:$0xff] }
  0xc3   :  { %728 = vmatprep.subr.mxu0 %v647_v52  ;;  %865 = vmatpush1.msra.mxu1 %v782_v55  ;;  %v679_v52 = vld [vmem:[#allocation2 + $0x938] sm:$0xff]  ;;  %v814_v55 = vld [vmem:[#allocation2 + $0xb30] sm:$0xff] }
  0xc4   :  { %729 = vmatpush1.msra.mxu0 %v646_v54  ;;  %866 = vmatprep.subr.mxu1 %v781_v57  ;;  %v678_v54 = vld [vmem:[#allocation2 + $0x930] sm:$0xff]  ;;  %v813_v57 = vld [vmem:[#allocation2 + $0xb28] sm:$0xff] }
  0xc5   :  { %730 = vmatprep.subr.mxu0 %v645_v56  ;;  %867 = vmatpush1.msra.mxu1 %v780_v59  ;;  %v677_v56 = vld [vmem:[#allocation2 + $0x928] sm:$0xff]  ;;  %v812_v59 = vld [vmem:[#allocation2 + $0xb20] sm:$0xff] }
  0xc6   :  { %731 = vmatpush1.msra.mxu0 %v644_v58  ;;  %868 = vmatprep.subr.mxu1 %v779_v61  ;;  %v676_v58 = vld [vmem:[#allocation2 + $0x920] sm:$0xff]  ;;  %v811_v61 = vld [vmem:[#allocation2 + $0xb18] sm:$0xff] }
  0xc7   :  { %732 = vmatprep.subr.mxu0 %v643_v60  ;;  %869 = vmatpush1.msra.mxu1 %v778_v63  ;;  %v675_v60 = vld [vmem:[#allocation2 + $0x918] sm:$0xff]  ;;  %v810_v63 = vld [vmem:[#allocation2 + $0xb10] sm:$0xff] }
  0xc8   :  { %733 = vmatpush1.msra.mxu0 %v642_v62  ;;  %870 = vmatprep.subr.mxu1 %v777_v3  ;;  %v674_v62 = vld [vmem:[#allocation2 + $0x910] sm:$0xff]  ;;  %v809_v3 = vld [vmem:[#allocation2 + $0xb08] sm:$0xff] }
  0xc9   :  { %734 = vmatprep.subr.mxu0 %v641_v2  ;;  %871 = vmatpush1.msra.mxu1 %v776_v5  ;;  %v673_v2 = vld [vmem:[#allocation2 + $0x908] sm:$0xff]  ;;  %v808_v5 = vld [vmem:[#allocation2 + $0xb00] sm:$0xff] }
  0xca   :  { %735 = vmatpush1.msra.mxu0 %v640_v4  ;;  %872 = vmatprep.subr.mxu1 %v839_v7  ;;  %v672_v4 = vld [vmem:[#allocation2 + $0x900] sm:$0xff]  ;;  %v1079_v7 = vld [vmem:[#allocation2 + $0xef8] sm:$0xff] }
  0xcb   :  { %736 = vmatprep.subr.mxu0 %v703_v6  ;;  %873 = vmatpush2.msra.mxu1 %v838_v9  ;;  %v943_v6 = vld [vmem:[#allocation2 + $0xcf8] sm:$0xff]  ;;  %v942_v9 = vld [vmem:[#allocation2 + $0xcf0] sm:$0xff] }
  0xcc   :  { %737 = vmatpush2.msra.mxu0 %v702_v8  ;;  %874 = vmatprep.subr.mxu1 %v837_v11  ;;  %v3609_v8 = vld [vmem:[%s4111_s6 + $0x8] sm:$0xff]  ;;  %v3616_v11 = vld [vmem:[%s4111_s6] sm:$0xff] }
  0xcd   :  { %738 = vmatprep.subr.mxu0 %v701_v10  ;;  %875 = vmatpush2.msra.mxu1 %v836_v13  ;;  %v1078_v10 = vld [vmem:[#allocation2 + $0xef0] sm:$0xff]  ;;  %v1077_v13 = vld [vmem:[#allocation2 + $0xee8] sm:$0xff] }
  0xce   :  { %739 = vmatpush2.msra.mxu0 %v700_v12  ;;  %876 = vmatprep.subr.mxu1 %v835_v15  ;;  %v941_v12 = vld [vmem:[#allocation2 + $0xce8] sm:$0xff]  ;;  %v1076_v15 = vld [vmem:[#allocation2 + $0xee0] sm:$0xff] }
  0xcf   :  { %740 = vmatprep.subr.mxu0 %v699_v14  ;;  %877 = vmatpush2.msra.mxu1 %v834_v0  ;;  %v940_v14 = vld [vmem:[#allocation2 + $0xce0] sm:$0xff]  ;;  %v1075_v0 = vld [vmem:[#allocation2 + $0xed8] sm:$0xff] }
  0xd0   :  { %741 = vmatpush2.msra.mxu0 %v698_v16  ;;  %878 = vmatprep.subr.mxu1 %v833_v18  ;;  %v939_v16 = vld [vmem:[#allocation2 + $0xcd8] sm:$0xff]  ;;  %v1074_v18 = vld [vmem:[#allocation2 + $0xed0] sm:$0xff] }
  0xd1   :  { %742 = vmatprep.subr.mxu0 %v697_v17  ;;  %879 = vmatpush2.msra.mxu1 %v832_v20  ;;  %v938_v17 = vld [vmem:[#allocation2 + $0xcd0] sm:$0xff]  ;;  %v1073_v20 = vld [vmem:[#allocation2 + $0xec8] sm:$0xff] }
  0xd2   :  { %743 = vmatpush2.msra.mxu0 %v696_v19  ;;  %880 = vmatprep.subr.mxu1 %v831_v21  ;;  %v937_v19 = vld [vmem:[#allocation2 + $0xcc8] sm:$0xff]  ;;  %v1072_v21 = vld [vmem:[#allocation2 + $0xec0] sm:$0xff] }
  0xd3   :  { %744 = vmatprep.subr.mxu0 %v695_v1  ;;  %881 = vmatpush2.msra.mxu1 %v830_v23  ;;  %v936_v1 = vld [vmem:[#allocation2 + $0xcc0] sm:$0xff]  ;;  %v1071_v23 = vld [vmem:[#allocation2 + $0xeb8] sm:$0xff] }
  0xd4   :  { %745 = vmatpush2.msra.mxu0 %v694_v22  ;;  %882 = vmatprep.subr.mxu1 %v829_v25  ;;  %v935_v22 = vld [vmem:[#allocation2 + $0xcb8] sm:$0xff]  ;;  %v1070_v25 = vld [vmem:[#allocation2 + $0xeb0] sm:$0xff] }
  0xd5   :  { %746 = vmatprep.subr.mxu0 %v693_v24  ;;  %883 = vmatpush2.msra.mxu1 %v828_v27  ;;  %v934_v24 = vld [vmem:[#allocation2 + $0xcb0] sm:$0xff]  ;;  %v1069_v27 = vld [vmem:[#allocation2 + $0xea8] sm:$0xff] }
  0xd6   :  { %747 = vmatpush2.msra.mxu0 %v692_v26  ;;  %884 = vmatprep.subr.mxu1 %v827_v29  ;;  %v933_v26 = vld [vmem:[#allocation2 + $0xca8] sm:$0xff]  ;;  %v1068_v29 = vld [vmem:[#allocation2 + $0xea0] sm:$0xff] }
  0xd7   :  { %748 = vmatprep.subr.mxu0 %v691_v28  ;;  %885 = vmatpush2.msra.mxu1 %v826_v31  ;;  %v932_v28 = vld [vmem:[#allocation2 + $0xca0] sm:$0xff]  ;;  %v1067_v31 = vld [vmem:[#allocation2 + $0xe98] sm:$0xff] }
  0xd8   :  { %749 = vmatpush2.msra.mxu0 %v690_v30  ;;  %886 = vmatprep.subr.mxu1 %v825_v33  ;;  %v931_v30 = vld [vmem:[#allocation2 + $0xc98] sm:$0xff]  ;;  %v1066_v33 = vld [vmem:[#allocation2 + $0xe90] sm:$0xff] }
  0xd9   :  { %750 = vmatprep.subr.mxu0 %v689_v32  ;;  %887 = vmatpush2.msra.mxu1 %v824_v35  ;;  %v930_v32 = vld [vmem:[#allocation2 + $0xc90] sm:$0xff]  ;;  %v1065_v35 = vld [vmem:[#allocation2 + $0xe88] sm:$0xff] }
  0xda   :  { %751 = vmatpush2.msra.mxu0 %v688_v34  ;;  %888 = vmatprep.subr.mxu1 %v823_v37  ;;  %v929_v34 = vld [vmem:[#allocation2 + $0xc88] sm:$0xff]  ;;  %v1064_v37 = vld [vmem:[#allocation2 + $0xe80] sm:$0xff] }
  0xdb   :  { %752 = vmatprep.subr.mxu0 %v687_v36  ;;  %889 = vmatpush2.msra.mxu1 %v822_v39  ;;  %v928_v36 = vld [vmem:[#allocation2 + $0xc80] sm:$0xff]  ;;  %v1063_v39 = vld [vmem:[#allocation2 + $0xe78] sm:$0xff] }
  0xdc   :  { %753 = vmatpush2.msra.mxu0 %v686_v38  ;;  %890 = vmatprep.subr.mxu1 %v821_v41  ;;  %v927_v38 = vld [vmem:[#allocation2 + $0xc78] sm:$0xff]  ;;  %v1062_v41 = vld [vmem:[#allocation2 + $0xe70] sm:$0xff] }
  0xdd   :  { %754 = vmatprep.subr.mxu0 %v685_v40  ;;  %891 = vmatpush2.msra.mxu1 %v820_v43  ;;  %v926_v40 = vld [vmem:[#allocation2 + $0xc70] sm:$0xff]  ;;  %v1061_v43 = vld [vmem:[#allocation2 + $0xe68] sm:$0xff] }
  0xde   :  { %755 = vmatpush2.msra.mxu0 %v684_v42  ;;  %892 = vmatprep.subr.mxu1 %v819_v45  ;;  %v925_v42 = vld [vmem:[#allocation2 + $0xc68] sm:$0xff]  ;;  %v1060_v45 = vld [vmem:[#allocation2 + $0xe60] sm:$0xff] }
  0xdf   :  { %756 = vmatprep.subr.mxu0 %v683_v44  ;;  %893 = vmatpush2.msra.mxu1 %v818_v47  ;;  %v924_v44 = vld [vmem:[#allocation2 + $0xc60] sm:$0xff]  ;;  %v1059_v47 = vld [vmem:[#allocation2 + $0xe58] sm:$0xff] }
  0xe0   :  { %757 = vmatpush2.msra.mxu0 %v682_v46  ;;  %894 = vmatprep.subr.mxu1 %v817_v49  ;;  %v923_v46 = vld [vmem:[#allocation2 + $0xc58] sm:$0xff]  ;;  %v1058_v49 = vld [vmem:[#allocation2 + $0xe50] sm:$0xff] }
  0xe1   :  { %758 = vmatprep.subr.mxu0 %v681_v48  ;;  %895 = vmatpush2.msra.mxu1 %v816_v51  ;;  %v922_v48 = vld [vmem:[#allocation2 + $0xc50] sm:$0xff]  ;;  %v1057_v51 = vld [vmem:[#allocation2 + $0xe48] sm:$0xff] }
  0xe2   :  { %759 = vmatpush2.msra.mxu0 %v680_v50  ;;  %896 = vmatprep.subr.mxu1 %v815_v53  ;;  %v921_v50 = vld [vmem:[#allocation2 + $0xc48] sm:$0xff]  ;;  %v1056_v53 = vld [vmem:[#allocation2 + $0xe40] sm:$0xff] }
  0xe3   :  { %760 = vmatprep.subr.mxu0 %v679_v52  ;;  %897 = vmatpush2.msra.mxu1 %v814_v55  ;;  %v920_v52 = vld [vmem:[#allocation2 + $0xc40] sm:$0xff]  ;;  %v1055_v55 = vld [vmem:[#allocation2 + $0xe38] sm:$0xff] }
  0xe4   :  { %761 = vmatpush2.msra.mxu0 %v678_v54  ;;  %898 = vmatprep.subr.mxu1 %v813_v57  ;;  %v919_v54 = vld [vmem:[#allocation2 + $0xc38] sm:$0xff]  ;;  %v1054_v57 = vld [vmem:[#allocation2 + $0xe30] sm:$0xff] }
  0xe5   :  { %762 = vmatprep.subr.mxu0 %v677_v56  ;;  %899 = vmatpush2.msra.mxu1 %v812_v59  ;;  %v918_v56 = vld [vmem:[#allocation2 + $0xc30] sm:$0xff]  ;;  %v1053_v59 = vld [vmem:[#allocation2 + $0xe28] sm:$0xff] }
  0xe6   :  { %763 = vmatpush2.msra.mxu0 %v676_v58  ;;  %900 = vmatprep.subr.mxu1 %v811_v61  ;;  %v917_v58 = vld [vmem:[#allocation2 + $0xc28] sm:$0xff]  ;;  %v1052_v61 = vld [vmem:[#allocation2 + $0xe20] sm:$0xff] }
  0xe7   :  { %764 = vmatprep.subr.mxu0 %v675_v60  ;;  %901 = vmatpush2.msra.mxu1 %v810_v63  ;;  %v916_v60 = vld [vmem:[#allocation2 + $0xc20] sm:$0xff]  ;;  %v1051_v63 = vld [vmem:[#allocation2 + $0xe18] sm:$0xff] }
  0xe8   :  { %765 = vmatpush2.msra.mxu0 %v674_v62  ;;  %902 = vmatprep.subr.mxu1 %v809_v3  ;;  %v915_v62 = vld [vmem:[#allocation2 + $0xc18] sm:$0xff]  ;;  %v1050_v3 = vld [vmem:[#allocation2 + $0xe10] sm:$0xff] }
  0xe9   :  { %766 = vmatprep.subr.mxu0 %v673_v2  ;;  %903 = vmatpush2.msra.mxu1 %v808_v5  ;;  %v914_v2 = vld [vmem:[#allocation2 + $0xc10] sm:$0xff]  ;;  %v1049_v5 = vld [vmem:[#allocation2 + $0xe08] sm:$0xff] }
  0xea   :  { %767 = vmatpush2.msra.mxu0 %v672_v4  ;;  %904 = vmatprep.mubr.f32.mxu1 %v3609_v8  ;;  %v913_v4 = vld [vmem:[#allocation2 + $0xc08] sm:$0xff] }
  0xeb   :  { %768 = vmatprep.mubr.f32.mxu0 %v3609_v8  ;;  %905 = vmatmul.mubr.f32.vlgmr.msra.gmra.mxu1 %v3616_v11 }
  0xec   :  { %976 = vmatprep.subr.mxu0 %v943_v6  ;;  %1112 = vmatprep.subr.mxu1 %v1079_v7  ;;  %v912_v6 = vld [vmem:[#allocation2 + $0xc00] sm:$0xff] }
  0xed   :  { %769 = vmatmul.mubr.f32.vlgmr.msra.gmra.mxu0 %v3616_v11  ;;  %1113 = vmatpush1.msra.mxu1 %v1078_v10  ;;  %v1048_v7 = vld [vmem:[#allocation2 + $0xe00] sm:$0xff]  ;;  %v1111_v10 = vld [vmem:[#allocation2 + $0xff8] sm:$0xff] }
  0xee   :  { %977 = vmatpush1.msra.mxu0 %v942_v9  ;;  %1114 = vmatprep.subr.mxu1 %v1077_v13  ;;  %v975_v9 = vld [vmem:[#allocation2 + $0xdf8] sm:$0xff]  ;;  %v1110_v13 = vld [vmem:[#allocation2 + $0xff0] sm:$0xff] }
  0xef   :  { %978 = vmatprep.subr.mxu0 %v941_v12  ;;  %1115 = vmatpush1.msra.mxu1 %v1076_v15  ;;  %v974_v12 = vld [vmem:[#allocation2 + $0xdf0] sm:$0xff]  ;;  %v1109_v15 = vld [vmem:[#allocation2 + $0xfe8] sm:$0xff] }
  0xf0   :  { %979 = vmatpush1.msra.mxu0 %v940_v14  ;;  %1116 = vmatprep.subr.mxu1 %v1075_v0  ;;  %v973_v14 = vld [vmem:[#allocation2 + $0xde8] sm:$0xff]  ;;  %v1108_v0 = vld [vmem:[#allocation2 + $0xfe0] sm:$0xff] }
  0xf1   :  { %980 = vmatprep.subr.mxu0 %v939_v16  ;;  %1117 = vmatpush1.msra.mxu1 %v1074_v18  ;;  %v972_v16 = vld [vmem:[#allocation2 + $0xde0] sm:$0xff]  ;;  %v1107_v18 = vld [vmem:[#allocation2 + $0xfd8] sm:$0xff] }
  0xf2   :  { %981 = vmatpush1.msra.mxu0 %v938_v17  ;;  %1118 = vmatprep.subr.mxu1 %v1073_v20  ;;  %v971_v17 = vld [vmem:[#allocation2 + $0xdd8] sm:$0xff]  ;;  %v1106_v20 = vld [vmem:[#allocation2 + $0xfd0] sm:$0xff] }
  0xf3   :  { %982 = vmatprep.subr.mxu0 %v937_v19  ;;  %1119 = vmatpush1.msra.mxu1 %v1072_v21  ;;  %v970_v19 = vld [vmem:[#allocation2 + $0xdd0] sm:$0xff]  ;;  %v1105_v21 = vld [vmem:[#allocation2 + $0xfc8] sm:$0xff] }
  0xf4   :  { %983 = vmatpush1.msra.mxu0 %v936_v1  ;;  %1120 = vmatprep.subr.mxu1 %v1071_v23  ;;  %v969_v1 = vld [vmem:[#allocation2 + $0xdc8] sm:$0xff]  ;;  %v1104_v23 = vld [vmem:[#allocation2 + $0xfc0] sm:$0xff] }
  0xf5   :  { %984 = vmatprep.subr.mxu0 %v935_v22  ;;  %1121 = vmatpush1.msra.mxu1 %v1070_v25  ;;  %v968_v22 = vld [vmem:[#allocation2 + $0xdc0] sm:$0xff]  ;;  %v1103_v25 = vld [vmem:[#allocation2 + $0xfb8] sm:$0xff] }
  0xf6   :  { %985 = vmatpush1.msra.mxu0 %v934_v24  ;;  %1122 = vmatprep.subr.mxu1 %v1069_v27  ;;  %v967_v24 = vld [vmem:[#allocation2 + $0xdb8] sm:$0xff]  ;;  %v1102_v27 = vld [vmem:[#allocation2 + $0xfb0] sm:$0xff] }
  0xf7   :  { %986 = vmatprep.subr.mxu0 %v933_v26  ;;  %1123 = vmatpush1.msra.mxu1 %v1068_v29  ;;  %v966_v26 = vld [vmem:[#allocation2 + $0xdb0] sm:$0xff]  ;;  %v1101_v29 = vld [vmem:[#allocation2 + $0xfa8] sm:$0xff] }
  0xf8   :  { %987 = vmatpush1.msra.mxu0 %v932_v28  ;;  %1124 = vmatprep.subr.mxu1 %v1067_v31  ;;  %v965_v28 = vld [vmem:[#allocation2 + $0xda8] sm:$0xff]  ;;  %v1100_v31 = vld [vmem:[#allocation2 + $0xfa0] sm:$0xff] }
  0xf9   :  { %988 = vmatprep.subr.mxu0 %v931_v30  ;;  %1125 = vmatpush1.msra.mxu1 %v1066_v33  ;;  %v964_v30 = vld [vmem:[#allocation2 + $0xda0] sm:$0xff]  ;;  %v1099_v33 = vld [vmem:[#allocation2 + $0xf98] sm:$0xff] }
  0xfa   :  { %989 = vmatpush1.msra.mxu0 %v930_v32  ;;  %1126 = vmatprep.subr.mxu1 %v1065_v35  ;;  %v963_v32 = vld [vmem:[#allocation2 + $0xd98] sm:$0xff]  ;;  %v1098_v35 = vld [vmem:[#allocation2 + $0xf90] sm:$0xff] }
  0xfb   :  { %990 = vmatprep.subr.mxu0 %v929_v34  ;;  %1127 = vmatpush1.msra.mxu1 %v1064_v37  ;;  %v962_v34 = vld [vmem:[#allocation2 + $0xd90] sm:$0xff]  ;;  %v1097_v37 = vld [vmem:[#allocation2 + $0xf88] sm:$0xff] }
  0xfc   :  { %991 = vmatpush1.msra.mxu0 %v928_v36  ;;  %1128 = vmatprep.subr.mxu1 %v1063_v39  ;;  %v961_v36 = vld [vmem:[#allocation2 + $0xd88] sm:$0xff]  ;;  %v1096_v39 = vld [vmem:[#allocation2 + $0xf80] sm:$0xff] }
  0xfd   :  { %992 = vmatprep.subr.mxu0 %v927_v38  ;;  %1129 = vmatpush1.msra.mxu1 %v1062_v41  ;;  %v960_v38 = vld [vmem:[#allocation2 + $0xd80] sm:$0xff]  ;;  %v1095_v41 = vld [vmem:[#allocation2 + $0xf78] sm:$0xff] }
  0xfe   :  { %993 = vmatpush1.msra.mxu0 %v926_v40  ;;  %1130 = vmatprep.subr.mxu1 %v1061_v43  ;;  %v959_v40 = vld [vmem:[#allocation2 + $0xd78] sm:$0xff]  ;;  %v1094_v43 = vld [vmem:[#allocation2 + $0xf70] sm:$0xff] }
  0xff   :  { %994 = vmatprep.subr.mxu0 %v925_v42  ;;  %1131 = vmatpush1.msra.mxu1 %v1060_v45  ;;  %v958_v42 = vld [vmem:[#allocation2 + $0xd70] sm:$0xff]  ;;  %v1093_v45 = vld [vmem:[#allocation2 + $0xf68] sm:$0xff] }
 0x100   :  { %995 = vmatpush1.msra.mxu0 %v924_v44  ;;  %1132 = vmatprep.subr.mxu1 %v1059_v47  ;;  %v957_v44 = vld [vmem:[#allocation2 + $0xd68] sm:$0xff]  ;;  %v1092_v47 = vld [vmem:[#allocation2 + $0xf60] sm:$0xff] }
 0x101   :  { %996 = vmatprep.subr.mxu0 %v923_v46  ;;  %1133 = vmatpush1.msra.mxu1 %v1058_v49  ;;  %v956_v46 = vld [vmem:[#allocation2 + $0xd60] sm:$0xff]  ;;  %v1091_v49 = vld [vmem:[#allocation2 + $0xf58] sm:$0xff] }
 0x102   :  { %997 = vmatpush1.msra.mxu0 %v922_v48  ;;  %1134 = vmatprep.subr.mxu1 %v1057_v51  ;;  %v955_v48 = vld [vmem:[#allocation2 + $0xd58] sm:$0xff]  ;;  %v1090_v51 = vld [vmem:[#allocation2 + $0xf50] sm:$0xff] }
 0x103   :  { %998 = vmatprep.subr.mxu0 %v921_v50  ;;  %1135 = vmatpush1.msra.mxu1 %v1056_v53  ;;  %v954_v50 = vld [vmem:[#allocation2 + $0xd50] sm:$0xff]  ;;  %v1089_v53 = vld [vmem:[#allocation2 + $0xf48] sm:$0xff] }
 0x104   :  { %999 = vmatpush1.msra.mxu0 %v920_v52  ;;  %1136 = vmatprep.subr.mxu1 %v1055_v55  ;;  %v953_v52 = vld [vmem:[#allocation2 + $0xd48] sm:$0xff]  ;;  %v1088_v55 = vld [vmem:[#allocation2 + $0xf40] sm:$0xff] }
 0x105   :  { %1000 = vmatprep.subr.mxu0 %v919_v54  ;;  %1137 = vmatpush1.msra.mxu1 %v1054_v57  ;;  %v952_v54 = vld [vmem:[#allocation2 + $0xd40] sm:$0xff]  ;;  %v1087_v57 = vld [vmem:[#allocation2 + $0xf38] sm:$0xff] }
 0x106   :  { %1001 = vmatpush1.msra.mxu0 %v918_v56  ;;  %1138 = vmatprep.subr.mxu1 %v1053_v59  ;;  %v951_v56 = vld [vmem:[#allocation2 + $0xd38] sm:$0xff]  ;;  %v1086_v59 = vld [vmem:[#allocation2 + $0xf30] sm:$0xff] }
 0x107   :  { %1002 = vmatprep.subr.mxu0 %v917_v58  ;;  %1139 = vmatpush1.msra.mxu1 %v1052_v61  ;;  %v950_v58 = vld [vmem:[#allocation2 + $0xd30] sm:$0xff]  ;;  %v1085_v61 = vld [vmem:[#allocation2 + $0xf28] sm:$0xff] }
 0x108   :  { %1003 = vmatpush1.msra.mxu0 %v916_v60  ;;  %1140 = vmatprep.subr.mxu1 %v1051_v63  ;;  %v949_v60 = vld [vmem:[#allocation2 + $0xd28] sm:$0xff]  ;;  %v1084_v63 = vld [vmem:[#allocation2 + $0xf20] sm:$0xff] }
 0x109   :  { %1004 = vmatprep.subr.mxu0 %v915_v62  ;;  %1141 = vmatpush1.msra.mxu1 %v1050_v3  ;;  %v948_v62 = vld [vmem:[#allocation2 + $0xd20] sm:$0xff]  ;;  %v1083_v3 = vld [vmem:[#allocation2 + $0xf18] sm:$0xff] }
 0x10a   :  { %1005 = vmatpush1.msra.mxu0 %v914_v2  ;;  %1142 = vmatprep.subr.mxu1 %v1049_v5  ;;  %v947_v2 = vld [vmem:[#allocation2 + $0xd18] sm:$0xff]  ;;  %v1082_v5 = vld [vmem:[#allocation2 + $0xf10] sm:$0xff] }
 0x10b   :  { %1006 = vmatprep.subr.mxu0 %v913_v4  ;;  %1143 = vmatpush1.msra.mxu1 %v1048_v7  ;;  %v946_v4 = vld [vmem:[#allocation2 + $0xd10] sm:$0xff]  ;;  %v1081_v7 = vld [vmem:[#allocation2 + $0xf08] sm:$0xff] }
 0x10c   :  { %1007 = vmatpush1.msra.mxu0 %v912_v6  ;;  %1144 = vmatprep.subr.mxu1 %v1111_v10  ;;  %v945_v6 = vld [vmem:[#allocation2 + $0xd08] sm:$0xff]  ;;  %v1080_v10 = vld [vmem:[#allocation2 + $0xf00] sm:$0xff] }
 0x10d   :  { %1008 = vmatprep.subr.mxu0 %v975_v9  ;;  %1145 = vmatpush2.msra.mxu1 %v1110_v13  ;;  %v944_v9 = vld [vmem:[#allocation2 + $0xd00] sm:$0xff] }
 0x10e   :  { %1009 = vmatpush2.msra.mxu0 %v974_v12  ;;  %1146 = vmatprep.subr.mxu1 %v1109_v15  ;;  %v3531_v12 = vmov 0.0  }
 0x10f   :  { %1010 = vmatprep.subr.mxu0 %v973_v14  ;;  %1147 = vmatpush2.msra.mxu1 %v1108_v0 }
 0x110   :  { %1011 = vmatpush2.msra.mxu0 %v972_v16  ;;  %1148 = vmatprep.subr.mxu1 %v1107_v18 }
 0x111   :  { %1012 = vmatprep.subr.mxu0 %v971_v17  ;;  %1149 = vmatpush2.msra.mxu1 %v1106_v20 }
 0x112   :  { %1013 = vmatpush2.msra.mxu0 %v970_v19  ;;  %1150 = vmatprep.subr.mxu1 %v1105_v21 }
 0x113   :  { %1014 = vmatprep.subr.mxu0 %v969_v1  ;;  %1151 = vmatpush2.msra.mxu1 %v1104_v23 }
 0x114   :  { %1015 = vmatpush2.msra.mxu0 %v968_v22  ;;  %1152 = vmatprep.subr.mxu1 %v1103_v25 }
 0x115   :  { %1016 = vmatprep.subr.mxu0 %v967_v24  ;;  %1153 = vmatpush2.msra.mxu1 %v1102_v27 }
 0x116   :  { %1017 = vmatpush2.msra.mxu0 %v966_v26  ;;  %1154 = vmatprep.subr.mxu1 %v1101_v29 }
 0x117   :  { %1018 = vmatprep.subr.mxu0 %v965_v28  ;;  %1155 = vmatpush2.msra.mxu1 %v1100_v31 }
 0x118   :  { %1019 = vmatpush2.msra.mxu0 %v964_v30  ;;  %1156 = vmatprep.subr.mxu1 %v1099_v33 }
 0x119   :  { %1020 = vmatprep.subr.mxu0 %v963_v32  ;;  %1157 = vmatpush2.msra.mxu1 %v1098_v35 }
 0x11a   :  { %1021 = vmatpush2.msra.mxu0 %v962_v34  ;;  %1158 = vmatprep.subr.mxu1 %v1097_v37  ;;  %v1267_v34 = vmul.f32 %v3609_v8, %v3609_v8 }
 0x11b   :  { %1022 = vmatprep.subr.mxu0 %v961_v36  ;;  %1159 = vmatpush2.msra.mxu1 %v1096_v39  ;;  %v1266_v36 = vmul.f32 %v3616_v11, %v3616_v11 }
 0x11c   :  { %1023 = vmatpush2.msra.mxu0 %v960_v38  ;;  %1160 = vmatprep.subr.mxu1 %v1095_v41 }
 0x11d   :  { %1024 = vmatprep.subr.mxu0 %v959_v40  ;;  %1161 = vmatpush2.msra.mxu1 %v1094_v43 }
 0x11e   :  { %1025 = vmatpush2.msra.mxu0 %v958_v42  ;;  %1162 = vmatprep.subr.mxu1 %v1093_v45 }
 0x11f   :  { %1026 = vmatprep.subr.mxu0 %v957_v44  ;;  %1163 = vmatpush2.msra.mxu1 %v1092_v47  ;;  %v2924_v47 = vld [vmem:[#allocation2 + $0xf8] sm:$0xff] }
 0x120   :  { %1027 = vmatpush2.msra.mxu0 %v956_v46  ;;  %1164 = vmatprep.subr.mxu1 %v1091_v49  ;;  %v3646_v46 = vld [vmem:[#allocation7] sm:$0xff] }
 0x121   :  { %1028 = vmatprep.subr.mxu0 %v955_v48  ;;  %1165 = vmatpush2.msra.mxu1 %v1090_v51  ;;  %v2925_v48 = vld [vmem:[#allocation2 + $0xf0] sm:$0xff]  ;;  %v2926_v49 = vld [vmem:[#allocation2 + $0xe8] sm:$0xff]  ;;  %v2928_v51 = vld [vmem:[#allocation2 + $0xd8] sm:$0xff] }
 0x122   :  { %1029 = vmatpush2.msra.mxu0 %v954_v50  ;;  %1166 = vmatprep.subr.mxu1 %v1089_v53  ;;  %v2927_v50 = vld [vmem:[#allocation2 + $0xe0] sm:$0xff]  ;;  %v2930_v53 = vld [vmem:[#allocation2 + $0xc8] sm:$0xff] }
 0x123   :  { %1030 = vmatprep.subr.mxu0 %v953_v52  ;;  %1167 = vmatpush2.msra.mxu1 %v1088_v55  ;;  %v2929_v52 = vld [vmem:[#allocation2 + $0xd0] sm:$0xff]  ;;  %v2932_v55 = vld [vmem:[#allocation2 + $0xb8] sm:$0xff] }
 0x124   :  { %1031 = vmatpush2.msra.mxu0 %v952_v54  ;;  %1168 = vmatprep.subr.mxu1 %v1087_v57  ;;  %v2931_v54 = vld [vmem:[#allocation2 + $0xc0] sm:$0xff]  ;;  %v2934_v57 = vld [vmem:[#allocation2 + $0xa8] sm:$0xff] }
 0x125   :  { %1032 = vmatprep.subr.mxu0 %v951_v56  ;;  %1169 = vmatpush2.msra.mxu1 %v1086_v59  ;;  %v2933_v56 = vld [vmem:[#allocation2 + $0xb0] sm:$0xff]  ;;  %v2936_v59 = vld [vmem:[#allocation2 + $0x98] sm:$0xff] }
 0x126   :  { %1033 = vmatpush2.msra.mxu0 %v950_v58  ;;  %1170 = vmatprep.subr.mxu1 %v1085_v61  ;;  %v2935_v58 = vld [vmem:[#allocation2 + $0xa0] sm:$0xff]  ;;  %v2938_v61 = vld [vmem:[#allocation2 + $0x88] sm:$0xff] }
 0x127   :  { %1034 = vmatprep.subr.mxu0 %v949_v60  ;;  %1171 = vmatpush2.msra.mxu1 %v1084_v63  ;;  %v362_v13 = vpop.f32.mrf.mxu1  ;;  %v2937_v60 = vld [vmem:[#allocation2 + $0x90] sm:$0xff]  ;;  %v2940_v63 = vld [vmem:[#allocation2 + $0x78] sm:$0xff] }
 0x128   :  { %1035 = vmatpush2.msra.mxu0 %v948_v62  ;;  %1172 = vmatprep.subr.mxu1 %v1083_v3  ;;  %v2939_v62 = vld [vmem:[#allocation2 + $0x80] sm:$0xff]  ;;  %v2942_v3 = vld [vmem:[#allocation2 + $0x68] sm:$0xff] }
 0x129   :  { %1036 = vmatprep.subr.mxu0 %v947_v2  ;;  %1173 = vmatpush2.msra.mxu1 %v1082_v5  ;;  %v3626_v14 = vpop.f32.mrf.mxu0  ;;  %v364_v15 = vpop.f32.mrf.mxu1  ;;  %v2941_v2 = vld [vmem:[#allocation2 + $0x70] sm:$0xff]  ;;  %v2944_v5 = vld [vmem:[#allocation2 + $0x58] sm:$0xff] }
 0x12a   :  { %1037 = vmatpush2.msra.mxu0 %v946_v4  ;;  %1174 = vmatprep.subr.mxu1 %v1081_v7  ;;  %v1261_v41 = vmul.f32 %v364_v15, %v364_v15  ;;  %v1258_v43 = vmul.f32 %v3626_v14, %v3626_v14  ;;  %v2943_v4 = vld [vmem:[#allocation2 + $0x60] sm:$0xff]  ;;  %v2946_v7 = vld [vmem:[#allocation2 + $0x48] sm:$0xff] }
 0x12b   :  { %1038 = vmatprep.subr.mxu0 %v945_v6  ;;  %1040 = vmatprep.mubr.f32.mxu0 %v3609_v8  ;;  %v228_v16 = vpop.f32.mrf.mxu0  ;;  %v2945_v6 = vld [vmem:[#allocation2 + $0x50] sm:$0xff] }
 0x12c   :  { %1039 = vmatpush2.msra.mxu0 %v944_v9  ;;  %1175 = vmatpush2.msra.mxu1 %v1080_v10  ;;  %v1259_v42 = vmul.f32 %v228_v16, %v228_v16  ;;  %v2947_v9 = vld [vmem:[#allocation2 + $0x40] sm:$0xff]  ;;  %v2948_v10 = vld [vmem:[#allocation2 + $0x38] sm:$0xff] }
 0x12d   :  { %1176 = vmatprep.mubr.f32.mxu1 %v3609_v8  ;;  %1041 = vmatmul.mubr.f32.vlgmr.msra.gmra.mxu0 %v3616_v11 }
 0x12e   :  { %1177 = vmatmul.mubr.f32.vlgmr.msra.gmra.mxu1 %v3616_v11  ;;  %1251 = vmatprep.mubr.f32.mxu0 %v3531_v12 }
 0x12f   :  { %1343 = vmatprep.mubr.f32.mxu1 %v3531_v12 }
 0x169   :  { %v634_v0 = vpop.f32.mrf.mxu1 }
 0x16a   :  { %v1264_v38 = vmul.f32 %v634_v0, %v634_v0 }
 0x16b   :  { %v498_v17 = vpop.f32.mrf.mxu0  ;;  %v636_v18 = vpop.f32.mrf.mxu1 }
 0x16c   :  { %v1265_v37 = vmul.f32 %v636_v18, %v636_v18  ;;  %v1262_v40 = vmul.f32 %v498_v17, %v498_v17 }
 0x16d   :  { %v500_v19 = vpop.f32.mrf.mxu0 }
 0x16e   :  { %v1263_v39 = vmul.f32 %v500_v19, %v500_v19 }
 0x1ab   :  { %v906_v20 = vpop.f32.mrf.mxu1 }
 0x1ac   :  { %v1270_v32 = vmul.f32 %v906_v20, %v906_v20 }
 0x1ad   :  { %v770_v1 = vpop.f32.mrf.mxu0  ;;  %v908_v21 = vpop.f32.mrf.mxu1 }
 0x1ae   :  { %v1271_v31 = vmul.f32 %v908_v21, %v908_v21  ;;  %v1268_v35 = vmul.f32 %v770_v1, %v770_v1 }
 0x1af   :  { %v772_v22 = vpop.f32.mrf.mxu0 }
 0x1b0   :  { %v1269_v33 = vmul.f32 %v772_v22, %v772_v22 }
 0x1ed   :  { %v1042_v23 = vpop.f32.mrf.mxu0 }
 0x1ee   :  { %v1178_v24 = vpop.f32.mrf.mxu1  ;;  %v1272_v30 = vmul.f32 %v1042_v23, %v1042_v23 }
 0x1ef   :  { %v1044_v25 = vpop.f32.mrf.mxu0  ;;  %v1274_v28 = vmul.f32 %v1178_v24, %v1178_v24 }
 0x1f0   :  { %v1180_v26 = vpop.f32.mrf.mxu1  ;;  %v1273_v29 = vmul.f32 %v1044_v25, %v1044_v25 }
 0x1f1   :  { %v1275_v27 = vmul.f32 %v1180_v26, %v1180_v26  ;;  %1201 = vmatprep.subr.mxu0 %v1180_v26  ;;  %v2964_v26 = vld [vmem:[#allocation2 + $0x1b8] sm:$0xff] }
 0x1f2   :  { %1202 = vmatpush1.msra.mxu0 %v1178_v24  ;;  %v2962_v24 = vld [vmem:[#allocation2 + $0x1c8] sm:$0xff] }
 0x1f3   :  { %1203 = vmatprep.subr.mxu0 %v1044_v25  ;;  %1293 = vmatprep.subr.mxu1 %v1275_v27  ;;  %v2963_v25 = vld [vmem:[#allocation2 + $0x1c0] sm:$0xff]  ;;  %v2965_v27 = vld [vmem:[#allocation2 + $0x1b0] sm:$0xff] }
 0x1f4   :  { %1204 = vmatpush1.msra.mxu0 %v1042_v23  ;;  %1294 = vmatpush1.msra.mxu1 %v1274_v28  ;;  %v2961_v23 = vld [vmem:[#allocation2 + $0x1d0] sm:$0xff]  ;;  %v2966_v28 = vld [vmem:[#allocation2 + $0x1a8] sm:$0xff] }
 0x1f5   :  { %1205 = vmatprep.subr.mxu0 %v908_v21  ;;  %1295 = vmatprep.subr.mxu1 %v1273_v29  ;;  %v2959_v21 = vld [vmem:[#allocation2 + $0x1e0] sm:$0xff] }
 0x1f6   :  { %1206 = vmatpush1.msra.mxu0 %v906_v20  ;;  %1296 = vmatpush1.msra.mxu1 %v1272_v30  ;;  %v2957_v20 = vld [vmem:[#allocation2 + $0x1f0] sm:$0xff]  ;;  %v2967_v29 = vld [vmem:[#allocation2 + $0x1a0] sm:$0xff]  ;;  %v2968_v30 = vld [vmem:[#allocation2 + $0x198] sm:$0xff] }
 0x1f7   :  { %1207 = vmatprep.subr.mxu0 %v772_v22  ;;  %1297 = vmatprep.subr.mxu1 %v1271_v31  ;;  %v2960_v22 = vld [vmem:[#allocation2 + $0x1d8] sm:$0xff]  ;;  %v2969_v31 = vld [vmem:[#allocation2 + $0x190] sm:$0xff] }
 0x1f8   :  { %1208 = vmatpush1.msra.mxu0 %v770_v1  ;;  %1298 = vmatpush1.msra.mxu1 %v1270_v32  ;;  %v2958_v1 = vld [vmem:[#allocation2 + $0x1e8] sm:$0xff] }
 0x1f9   :  { %1209 = vmatprep.subr.mxu0 %v3609_v8  ;;  %1299 = vmatprep.subr.mxu1 %v1269_v33  ;;  %v1260_v8 = vmul.f32 %v362_v13, %v362_v13  ;;  %v2970_v32 = vld [vmem:[#allocation2 + $0x188] sm:$0xff]  ;;  %v2971_v33 = vld [vmem:[#allocation2 + $0x180] sm:$0xff] }
 0x1fa   :  { %1210 = vmatpush1.msra.mxu0 %v3616_v11  ;;  %1300 = vmatpush1.msra.mxu1 %v1268_v35  ;;  %v84_v11 = vld [vmem:[%s4106_s1] sm:$0xff]  ;;  %v2973_v35 = vld [vmem:[#allocation2 + $0x170] sm:$0xff] }
 0x1fb   :  { %1211 = vmatprep.subr.mxu0 %v636_v18  ;;  %1301 = vmatprep.subr.mxu1 %v1267_v34  ;;  %v2955_v18 = vld [vmem:[#allocation2] sm:$0xff]  ;;  %v2972_v34 = vld [vmem:[#allocation2 + $0x178] sm:$0xff] }
 0x1fc   :  { %1212 = vmatpush1.msra.mxu0 %v634_v0  ;;  %1302 = vmatpush1.msra.mxu1 %v1266_v36  ;;  %v2953_v0 = vld [vmem:[#allocation2 + $0x10] sm:$0xff]  ;;  %v2974_v36 = vld [vmem:[#allocation2 + $0x168] sm:$0xff] }
 0x1fd   :  { %1213 = vmatprep.subr.mxu0 %v500_v19  ;;  %1303 = vmatprep.subr.mxu1 %v1265_v37  ;;  %v2956_v19 = vld [vmem:[#allocation2 + $0x1f8] sm:$0xff]  ;;  %v2975_v37 = vld [vmem:[#allocation2 + $0x160] sm:$0xff] }
 0x1fe   :  { %1214 = vmatpush1.msra.mxu0 %v498_v17  ;;  %1304 = vmatpush1.msra.mxu1 %v1264_v38  ;;  %v2954_v17 = vld [vmem:[#allocation2 + $0x8] sm:$0xff]  ;;  %v2976_v38 = vld [vmem:[#allocation2 + $0x158] sm:$0xff] }
 0x1ff   :  { %1215 = vmatprep.subr.mxu0 %v364_v15  ;;  %1305 = vmatprep.subr.mxu1 %v1263_v39  ;;  %v2951_v15 = vld [vmem:[#allocation2 + $0x20] sm:$0xff]  ;;  %v2977_v39 = vld [vmem:[#allocation2 + $0x150] sm:$0xff] }
 0x200   :  { %1216 = vmatpush1.msra.mxu0 %v362_v13  ;;  %1306 = vmatpush1.msra.mxu1 %v1262_v40  ;;  %v2949_v13 = vld [vmem:[#allocation2 + $0x30] sm:$0xff]  ;;  %v2978_v40 = vld [vmem:[#allocation2 + $0x148] sm:$0xff] }
 0x201   :  { %1217 = vmatprep.subr.mxu0 %v228_v16  ;;  %1307 = vmatprep.subr.mxu1 %v1261_v41  ;;  %v2952_v16 = vld [vmem:[#allocation2 + $0x18] sm:$0xff]  ;;  %v2979_v41 = vld [vmem:[#allocation2 + $0x140] sm:$0xff] }
 0x202   :  { %1218 = vmatpush1.msra.mxu0 %v3626_v14  ;;  %1308 = vmatpush1.msra.mxu1 %v1260_v8  ;;  %v2950_v14 = vld [vmem:[#allocation2 + $0x28] sm:$0xff]  ;;  %v2980_v8 = vld [vmem:[#allocation2 + $0x138] sm:$0xff] }
 0x203   :  { %2872 = vmatmul.mubr.msk.f32.vlgmr.msra.gmra.mxu0 %vm1183_vm0, %v84_v11  ;;  %1309 = vmatprep.subr.mxu1 %v1259_v42  ;;  %v2981_v11 = vld [vmem:[#allocation2 + $0x130] sm:$0xff]  ;;  %v2982_v42 = vld [vmem:[#allocation2 + $0x128] sm:$0xff] }
 0x204   :  { %1310 = vmatpush1.msra.mxu1 %v1258_v43  ;;  %1627 = vmatprep.mubr.f32.mxu0 %v3531_v12  ;;  %v2983_v43 = vld [vmem:[#allocation2 + $0x120] sm:$0xff] }
 0x2c3   :  { %v3642_v44 = vpop.f32.mrf.mxu0 }
 0x2c5   :  { %v3644_v45 = vpop.f32.mrf.mxu0 }
 0x2c6   :  { %1593 = vmatprep.subr.mxu0 %v3644_v45 }
 0x2c7   :  { %1594 = vmatpush1.msra.mxu0 %v3642_v44 }
 0x2c8   :  { %2874 = vmatmul.mubr.msk.f32.vlgmr.msra.gmra.mxu0 %vm1559_vm1, %v3646_v46  ;;  %1738 = vmatprep.subr.mxu0 %v2924_v47  ;;  %v2984_v47 = vld [vmem:[#allocation2 + $0x118] sm:$0xff] }
 0x2c9   :  { %1739 = vmatpush1.msra.mxu0 %v2925_v48  ;;  %v2985_v48 = vld [vmem:[#allocation2 + $0x110] sm:$0xff] }
 0x2ca   :  { %1740 = vmatprep.subr.mxu0 %v2926_v49  ;;  %v2986_v49 = vld [vmem:[#allocation2 + $0x108] sm:$0xff] }
 0x2cb   :  { %1741 = vmatpush1.msra.mxu0 %v2927_v50  ;;  %v2987_v50 = vld [vmem:[#allocation2 + $0x100] sm:$0xff] }
 0x2cc   :  { %1742 = vmatprep.subr.mxu0 %v2928_v51  ;;  %v2988_v51 = vld [vmem:[#allocation2 + $0x4f8] sm:$0xff] }
 0x2cd   :  { %1743 = vmatpush1.msra.mxu0 %v2929_v52  ;;  %v81_v52 = vld [vmem:[#allocation5] sm:$0xff] }
 0x2ce   :  { %1744 = vmatprep.subr.mxu0 %v2930_v53  ;;  %2873 = vmatmul.mubr.msk.f32.vlgmr.msra.gmra.mxu1 %vm1183_vm0, %v81_v52  ;;  %v3040_v52 = vld [vmem:[#allocation2 + $0x360] sm:$0xff] }
 0x2cf   :  { %1745 = vmatpush1.msra.mxu0 %v2931_v54  ;;  %1706 = vmatprep.mubr.f32.mxu1 %v3531_v12 }
 0x2d0   :  { %1746 = vmatprep.subr.mxu0 %v2932_v55 }
 0x2d1   :  { %1747 = vmatpush1.msra.mxu0 %v2933_v56 }
 0x2d2   :  { %1748 = vmatprep.subr.mxu0 %v2934_v57 }
 0x2d3   :  { %1749 = vmatpush1.msra.mxu0 %v2935_v58 }
 0x2d4   :  { %1750 = vmatprep.subr.mxu0 %v2936_v59 }
 0x2d5   :  { %1751 = vmatpush1.msra.mxu0 %v2937_v60 }
 0x2d6   :  { %1752 = vmatprep.subr.mxu0 %v2938_v61 }
 0x2d7   :  { %1753 = vmatpush1.msra.mxu0 %v2939_v62  ;;  %v2989_v62 = vld [vmem:[#allocation2 + $0x2f8] sm:$0xff] }
 0x2d8   :  { %1754 = vmatprep.subr.mxu0 %v2940_v63  ;;  %v2990_v63 = vld [vmem:[#allocation2 + $0x2f0] sm:$0xff] }
 0x2d9   :  { %1755 = vmatpush1.msra.mxu0 %v2941_v2  ;;  %v2991_v2 = vld [vmem:[#allocation2 + $0x2e8] sm:$0xff] }
 0x2da   :  { %1756 = vmatprep.subr.mxu0 %v2942_v3  ;;  %v2992_v3 = vld [vmem:[#allocation2 + $0x2e0] sm:$0xff] }
 0x2db   :  { %1757 = vmatpush1.msra.mxu0 %v2943_v4  ;;  %v2993_v4 = vld [vmem:[#allocation2 + $0x2d8] sm:$0xff] }
 0x2dc   :  { %1758 = vmatprep.subr.mxu0 %v2944_v5  ;;  %v2994_v5 = vld [vmem:[#allocation2 + $0x2d0] sm:$0xff] }
 0x2dd   :  { %1759 = vmatpush1.msra.mxu0 %v2945_v6  ;;  %v2995_v6 = vld [vmem:[#allocation2 + $0x2c8] sm:$0xff] }
 0x2de   :  { %1760 = vmatprep.subr.mxu0 %v2946_v7  ;;  %v2996_v7 = vld [vmem:[#allocation2 + $0x2c0] sm:$0xff] }
 0x2df   :  { %1761 = vmatpush1.msra.mxu0 %v2947_v9  ;;  %v2997_v9 = vld [vmem:[#allocation2 + $0x2b8] sm:$0xff] }
 0x2e0   :  { %1762 = vmatprep.subr.mxu0 %v2948_v10  ;;  %v2998_v10 = vld [vmem:[#allocation2 + $0x2b0] sm:$0xff] }
 0x2e1   :  { %1763 = vmatpush1.msra.mxu0 %v2949_v13  ;;  %v3000_v13 = vld [vmem:[#allocation2 + $0x2a0] sm:$0xff] }
 0x2e2   :  { %1764 = vmatprep.subr.mxu0 %v2950_v14  ;;  %v3001_v14 = vld [vmem:[#allocation2 + $0x298] sm:$0xff] }
 0x2e3   :  { %1765 = vmatpush1.msra.mxu0 %v2951_v15  ;;  %v3002_v15 = vld [vmem:[#allocation2 + $0x290] sm:$0xff] }
 0x2e4   :  { %1766 = vmatprep.subr.mxu0 %v2952_v16  ;;  %v3003_v16 = vld [vmem:[#allocation2 + $0x288] sm:$0xff] }
 0x2e5   :  { %1767 = vmatpush1.msra.mxu0 %v2953_v0  ;;  %v3004_v0 = vld [vmem:[#allocation2 + $0x280] sm:$0xff] }
 0x2e6   :  { %1768 = vmatprep.subr.mxu0 %v2954_v17  ;;  %v3005_v17 = vld [vmem:[#allocation2 + $0x278] sm:$0xff] }
 0x2e7   :  { %1769 = vmatpush1.msra.mxu0 %v2955_v18  ;;  %v3006_v18 = vld [vmem:[#allocation2 + $0x270] sm:$0xff] }
 0x2e8   :  { %1770 = vmatprep.subr.mxu0 %v2956_v19  ;;  %v3007_v19 = vld [vmem:[#allocation2 + $0x268] sm:$0xff] }
 0x2e9   :  { %1771 = vmatpush2.msra.mxu0 %v2957_v20  ;;  %v3008_v20 = vld [vmem:[#allocation2 + $0x260] sm:$0xff] }
 0x2ea   :  { %1772 = vmatprep.subr.mxu0 %v2958_v1  ;;  %v3009_v1 = vld [vmem:[#allocation2 + $0x258] sm:$0xff] }
 0x2eb   :  { %1773 = vmatpush2.msra.mxu0 %v2959_v21  ;;  %v3010_v21 = vld [vmem:[#allocation2 + $0x250] sm:$0xff] }
 0x2ec   :  { %1774 = vmatprep.subr.mxu0 %v2960_v22  ;;  %v3011_v22 = vld [vmem:[#allocation2 + $0x248] sm:$0xff] }
 0x2ed   :  { %1775 = vmatpush2.msra.mxu0 %v2961_v23  ;;  %v3012_v23 = vld [vmem:[#allocation2 + $0x240] sm:$0xff] }
 0x2ee   :  { %1776 = vmatprep.subr.mxu0 %v2962_v24  ;;  %v3013_v24 = vld [vmem:[#allocation2 + $0x238] sm:$0xff] }
 0x2ef   :  { %1777 = vmatpush2.msra.mxu0 %v2963_v25  ;;  %v3014_v25 = vld [vmem:[#allocation2 + $0x230] sm:$0xff] }
 0x2f0   :  { %1778 = vmatprep.subr.mxu0 %v2964_v26  ;;  %v3015_v26 = vld [vmem:[#allocation2 + $0x228] sm:$0xff] }
 0x2f1   :  { %1779 = vmatpush2.msra.mxu0 %v2965_v27  ;;  %v3016_v27 = vld [vmem:[#allocation2 + $0x220] sm:$0xff] }
 0x2f2   :  { %1780 = vmatprep.subr.mxu0 %v2966_v28  ;;  %v3017_v28 = vld [vmem:[#allocation2 + $0x218] sm:$0xff] }
 0x2f3   :  { %1781 = vmatpush2.msra.mxu0 %v2967_v29  ;;  %v3018_v29 = vld [vmem:[#allocation2 + $0x210] sm:$0xff] }
 0x2f4   :  { %1782 = vmatprep.subr.mxu0 %v2968_v30  ;;  %v3019_v30 = vld [vmem:[#allocation2 + $0x208] sm:$0xff] }
 0x2f5   :  { %1783 = vmatpush2.msra.mxu0 %v2969_v31  ;;  %v3020_v31 = vld [vmem:[#allocation2 + $0x200] sm:$0xff] }
 0x2f6   :  { %1784 = vmatprep.subr.mxu0 %v2970_v32  ;;  %v3021_v32 = vld [vmem:[#allocation2 + $0x3f8] sm:$0xff] }
 0x2f7   :  { %1785 = vmatpush2.msra.mxu0 %v2971_v33  ;;  %v3022_v33 = vld [vmem:[#allocation2 + $0x3f0] sm:$0xff] }
 0x2f8   :  { %1786 = vmatprep.subr.mxu0 %v2972_v34  ;;  %v3023_v34 = vld [vmem:[#allocation2 + $0x3e8] sm:$0xff] }
 0x2f9   :  { %1787 = vmatpush2.msra.mxu0 %v2973_v35  ;;  %v3024_v35 = vld [vmem:[#allocation2 + $0x3e0] sm:$0xff] }
 0x2fa   :  { %1788 = vmatprep.subr.mxu0 %v2974_v36  ;;  %v3025_v36 = vld [vmem:[#allocation2 + $0x3d8] sm:$0xff] }
 0x2fb   :  { %1789 = vmatpush2.msra.mxu0 %v2975_v37  ;;  %v3026_v37 = vld [vmem:[#allocation2 + $0x3d0] sm:$0xff] }
 0x2fc   :  { %1790 = vmatprep.subr.mxu0 %v2976_v38  ;;  %v3027_v38 = vld [vmem:[#allocation2 + $0x3c8] sm:$0xff] }
 0x2fd   :  { %1791 = vmatpush2.msra.mxu0 %v2977_v39  ;;  %v3028_v39 = vld [vmem:[#allocation2 + $0x3c0] sm:$0xff] }
 0x2fe   :  { %1792 = vmatprep.subr.mxu0 %v2978_v40  ;;  %v3029_v40 = vld [vmem:[#allocation2 + $0x3b8] sm:$0xff] }
 0x2ff   :  { %1793 = vmatpush2.msra.mxu0 %v2979_v41  ;;  %v3030_v41 = vld [vmem:[#allocation2 + $0x3b0] sm:$0xff] }
 0x300   :  { %1794 = vmatprep.subr.mxu0 %v2980_v8  ;;  %v3031_v8 = vld [vmem:[#allocation2 + $0x3a8] sm:$0xff] }
 0x301   :  { %1795 = vmatpush2.msra.mxu0 %v2981_v11  ;;  %v3032_v11 = vld [vmem:[#allocation2 + $0x3a0] sm:$0xff] }
 0x302   :  { %1796 = vmatprep.subr.mxu0 %v2982_v42  ;;  %v3033_v42 = vld [vmem:[#allocation2 + $0x398] sm:$0xff] }
 0x303   :  { %1797 = vmatpush2.msra.mxu0 %v2983_v43  ;;  %v3034_v43 = vld [vmem:[#allocation2 + $0x390] sm:$0xff] }
 0x304   :  { %1798 = vmatprep.subr.mxu0 %v2984_v47  ;;  %v3035_v47 = vld [vmem:[#allocation2 + $0x388] sm:$0xff] }
 0x305   :  { %1799 = vmatpush2.msra.mxu0 %v2985_v48  ;;  %v3036_v48 = vld [vmem:[#allocation2 + $0x380] sm:$0xff] }
 0x306   :  { %1800 = vmatprep.subr.mxu0 %v2986_v49  ;;  %v3037_v49 = vld [vmem:[#allocation2 + $0x378] sm:$0xff] }
 0x307   :  { %1801 = vmatpush2.msra.mxu0 %v2987_v50  ;;  %v3038_v50 = vld [vmem:[#allocation2 + $0x370] sm:$0xff] }
 0x308   :  { %1880 = vmatprep.subr.mxu0 %v2988_v51  ;;  %v3039_v51 = vld [vmem:[#allocation2 + $0x368] sm:$0xff] }
 0x388   :  { %v1629_v53 = vpop.f32.mrf.mxu0 }
 0x38a   :  { %v1631_v54 = vpop.f32.mrf.mxu0 }
 0x38b   :  { %v1634_v55 = vadd.f32 %v1631_v54, %v1629_v53  ;;  %v3041_v53 = vld [vmem:[#allocation2 + $0x358] sm:$0xff]  ;;  %v3042_v54 = vld [vmem:[#allocation2 + $0x350] sm:$0xff] }
 0x38d   :  { %1635 = vadd.xlane.f32.xlu0 %v1634_v55  ;;  %v3043_v55 = vld [vmem:[#allocation2 + $0x348] sm:$0xff] }
 0x416   :  { %v1636_v56 = vpop.xlane.xlu0 %1635 }
 0x417   :  { %v1637_v57 = vmul.f32 0.001953125, %v1636_v56  ;;  %v3044_v56 = vld [vmem:[#allocation2 + $0x340] sm:$0xff] }
 0x419   :  { %v3655_v58 = vsub.f32 %v3642_v44, %v1637_v57  ;;  %v3658_v59 = vsub.f32 %v3644_v45, %v1637_v57  ;;  %v3045_v57 = vld [vmem:[#allocation2 + $0x338] sm:$0xff] }
 0x41b   :  { %v1640_v60 = vmul.f32 %v3655_v58, %v3655_v58  ;;  %v1641_v61 = vmul.f32 %v3658_v59, %v3658_v59 }
 0x41d   :  { %1672 = vmatprep.subr.mxu1 %v1641_v61  ;;  %v3047_v61 = vld [vmem:[#allocation2 + $0x328] sm:$0xff] }
 0x41e   :  { %1673 = vmatpush1.msra.mxu1 %v1640_v60  ;;  %v3046_v60 = vld [vmem:[#allocation2 + $0x330] sm:$0xff] }
 0x41f   :  { %2875 = vmatmul.mubr.msk.f32.vlgmr.msra.gmra.mxu1 %vm1559_vm1, %v3646_v46  ;;  %1809 = vmatprep.subr.mxu1 %v2989_v62  ;;  %v2999_v46 = vld [vmem:[#allocation2 + $0x2a8] sm:$0xff]  ;;  %v3048_v62 = vld [vmem:[#allocation2 + $0x320] sm:$0xff] }
 0x420   :  { %1810 = vmatpush1.msra.mxu1 %v2990_v63  ;;  %v3049_v63 = vld [vmem:[#allocation2 + $0x318] sm:$0xff] }
 0x421   :  { %1811 = vmatprep.subr.mxu1 %v2991_v2  ;;  %v3050_v2 = vld [vmem:[#allocation2 + $0x310] sm:$0xff] }
 0x422   :  { %1812 = vmatpush1.msra.mxu1 %v2992_v3  ;;  %v3051_v3 = vld [vmem:[#allocation2 + $0x308] sm:$0xff] }
 0x423   :  { %1813 = vmatprep.subr.mxu1 %v2993_v4  ;;  %v3052_v4 = vld [vmem:[#allocation2 + $0x300] sm:$0xff] }
 0x424   :  { %1814 = vmatpush1.msra.mxu1 %v2994_v5  ;;  %v3053_v5 = vld [vmem:[#allocation2 + $0x6f8] sm:$0xff] }
 0x425   :  { %1815 = vmatprep.subr.mxu1 %v2995_v6  ;;  %v3666_v6 = vpop.f32.mrf.mxu1 }
 0x426   :  { %1816 = vmatpush1.msra.mxu1 %v2996_v7  ;;  %vm1352_vm6 = vcmp.eq.f32.partialorder %v3666_v6, inf  ;;  %vm1354_vm8 = vcmp.eq.f32.partialorder %v3666_v6, 0.0 }
 0x427   :  { %1817 = vmatprep.subr.mxu1 %v2997_v9  ;;  %v3668_v7 = vpop.f32.mrf.mxu1 }
 0x428   :  { %1818 = vmatpush1.msra.mxu1 %v2998_v10  ;;  %vm1359_vm7 = vcmp.eq.f32.partialorder %v3668_v7, inf  ;;  %vm1361_vm9 = vcmp.eq.f32.partialorder %v3668_v7, 0.0 }
 0x429   :  { %1819 = vmatprep.subr.mxu1 %v2999_v46 }
 0x42a   :  { %1820 = vmatpush1.msra.mxu1 %v3000_v13 }
 0x42b   :  { %1821 = vmatprep.subr.mxu1 %v3001_v14 }
 0x42c   :  { %1822 = vmatpush1.msra.mxu1 %v3002_v15 }
 0x42d   :  { %1823 = vmatprep.subr.mxu1 %v3003_v16 }
 0x42e   :  { %1824 = vmatpush1.msra.mxu1 %v3004_v0 }
 0x42f   :  { %1825 = vmatprep.subr.mxu1 %v3005_v17 }
 0x430   :  { %1826 = vmatpush1.msra.mxu1 %v3006_v18 }
 0x431   :  { %1827 = vmatprep.subr.mxu1 %v3007_v19 }
 0x432   :  { %1828 = vmatpush1.msra.mxu1 %v3008_v20  ;;  %v3054_v20 = vld [vmem:[#allocation2 + $0x4f0] sm:$0xff] }
 0x433   :  { %1829 = vmatprep.subr.mxu1 %v3009_v1  ;;  %v3055_v1 = vld [vmem:[#allocation2 + $0x6f0] sm:$0xff] }
 0x434   :  { %1830 = vmatpush1.msra.mxu1 %v3010_v21  ;;  %v3056_v21 = vld [vmem:[#allocation2 + $0x4e8] sm:$0xff] }
 0x435   :  { %1831 = vmatprep.subr.mxu1 %v3011_v22  ;;  %v3059_v22 = vld [vmem:[#allocation2 + $0x6e0] sm:$0xff] }
 0x436   :  { %1832 = vmatpush1.msra.mxu1 %v3012_v23  ;;  %v3060_v23 = vld [vmem:[#allocation2 + $0x4d8] sm:$0xff] }
 0x437   :  { %1833 = vmatprep.subr.mxu1 %v3013_v24  ;;  %v3061_v24 = vld [vmem:[#allocation2 + $0x6d8] sm:$0xff] }
 0x438   :  { %1834 = vmatpush1.msra.mxu1 %v3014_v25  ;;  %v3062_v25 = vld [vmem:[#allocation2 + $0x4d0] sm:$0xff] }
 0x439   :  { %1835 = vmatprep.subr.mxu1 %v3015_v26  ;;  %v3063_v26 = vld [vmem:[#allocation2 + $0x6d0] sm:$0xff] }
 0x43a   :  { %1836 = vmatpush1.msra.mxu1 %v3016_v27  ;;  %v3064_v27 = vld [vmem:[#allocation2 + $0x4c8] sm:$0xff] }
 0x43b   :  { %1837 = vmatprep.subr.mxu1 %v3017_v28  ;;  %v3065_v28 = vld [vmem:[#allocation2 + $0x6c8] sm:$0xff] }
 0x43c   :  { %1838 = vmatpush1.msra.mxu1 %v3018_v29  ;;  %v3066_v29 = vld [vmem:[#allocation2 + $0x4c0] sm:$0xff] }
 0x43d   :  { %1839 = vmatprep.subr.mxu1 %v3019_v30  ;;  %v3067_v30 = vld [vmem:[#allocation2 + $0x6c0] sm:$0xff] }
 0x43e   :  { %1840 = vmatpush1.msra.mxu1 %v3020_v31  ;;  %v3068_v31 = vld [vmem:[#allocation2 + $0x4b8] sm:$0xff] }
 0x43f   :  { %1841 = vmatprep.subr.mxu1 %v3021_v32  ;;  %v3069_v32 = vld [vmem:[#allocation2 + $0x6b8] sm:$0xff] }
 0x440   :  { %1842 = vmatpush2.msra.mxu1 %v3022_v33  ;;  %v3070_v33 = vld [vmem:[#allocation2 + $0x4b0] sm:$0xff] }
 0x441   :  { %1843 = vmatprep.subr.mxu1 %v3023_v34  ;;  %v3071_v34 = vld [vmem:[#allocation2 + $0x6b0] sm:$0xff] }
 0x442   :  { %1844 = vmatpush2.msra.mxu1 %v3024_v35  ;;  %v3072_v35 = vld [vmem:[#allocation2 + $0x4a8] sm:$0xff] }
 0x443   :  { %1845 = vmatprep.subr.mxu1 %v3025_v36  ;;  %v3073_v36 = vld [vmem:[#allocation2 + $0x6a8] sm:$0xff] }
 0x444   :  { %1846 = vmatpush2.msra.mxu1 %v3026_v37  ;;  %v3074_v37 = vld [vmem:[#allocation2 + $0x4a0] sm:$0xff] }
 0x445   :  { %1847 = vmatprep.subr.mxu1 %v3027_v38  ;;  %v3075_v38 = vld [vmem:[#allocation2 + $0x6a0] sm:$0xff] }
 0x446   :  { %1848 = vmatpush2.msra.mxu1 %v3028_v39  ;;  %v3076_v39 = vld [vmem:[#allocation2 + $0x498] sm:$0xff] }
 0x447   :  { %1849 = vmatprep.subr.mxu1 %v3029_v40  ;;  %v3077_v40 = vld [vmem:[#allocation2 + $0x698] sm:$0xff] }
 0x448   :  { %1850 = vmatpush2.msra.mxu1 %v3030_v41  ;;  %v3078_v41 = vld [vmem:[#allocation2 + $0x490] sm:$0xff] }
 0x449   :  { %1851 = vmatprep.subr.mxu1 %v3031_v8  ;;  %v3079_v8 = vld [vmem:[#allocation2 + $0x690] sm:$0xff] }
 0x44a   :  { %1852 = vmatpush2.msra.mxu1 %v3032_v11  ;;  %v3080_v11 = vld [vmem:[#allocation2 + $0x488] sm:$0xff] }
 0x44b   :  { %1853 = vmatprep.subr.mxu1 %v3033_v42  ;;  %v3081_v42 = vld [vmem:[#allocation2 + $0x688] sm:$0xff] }
 0x44c   :  { %1854 = vmatpush2.msra.mxu1 %v3034_v43  ;;  %v3082_v43 = vld [vmem:[#allocation2 + $0x480] sm:$0xff] }
 0x44d   :  { %1855 = vmatprep.subr.mxu1 %v3035_v47  ;;  %v3083_v47 = vld [vmem:[#allocation2 + $0x680] sm:$0xff] }
 0x44e   :  { %1856 = vmatpush2.msra.mxu1 %v3036_v48  ;;  %v3084_v48 = vld [vmem:[#allocation2 + $0x478] sm:$0xff] }
 0x44f   :  { %1857 = vmatprep.subr.mxu1 %v3037_v49  ;;  %v3085_v49 = vld [vmem:[#allocation2 + $0x678] sm:$0xff] }
 0x450   :  { %1858 = vmatpush2.msra.mxu1 %v3038_v50  ;;  %v3086_v50 = vld [vmem:[#allocation2 + $0x470] sm:$0xff] }
 0x451   :  { %1859 = vmatprep.subr.mxu1 %v3039_v51  ;;  %v3087_v51 = vld [vmem:[#allocation2 + $0x670] sm:$0xff] }
 0x452   :  { %1860 = vmatpush2.msra.mxu1 %v3040_v52  ;;  %v3088_v52 = vld [vmem:[#allocation2 + $0x468] sm:$0xff] }
 0x453   :  { %1861 = vmatprep.subr.mxu1 %v3041_v53  ;;  %v3089_v53 = vld [vmem:[#allocation2 + $0x668] sm:$0xff] }
 0x454   :  { %1862 = vmatpush2.msra.mxu1 %v3042_v54  ;;  %v3090_v54 = vld [vmem:[#allocation2 + $0x460] sm:$0xff] }
 0x455   :  { %1863 = vmatprep.subr.mxu1 %v3043_v55  ;;  %v3091_v55 = vld [vmem:[#allocation2 + $0x660] sm:$0xff] }
 0x456   :  { %1864 = vmatpush2.msra.mxu1 %v3044_v56  ;;  %v3092_v56 = vld [vmem:[#allocation2 + $0x458] sm:$0xff] }
 0x457   :  { %1865 = vmatprep.subr.mxu1 %v3045_v57  ;;  %v3093_v57 = vld [vmem:[#allocation2 + $0x658] sm:$0xff] }
 0x458   :  { %1866 = vmatpush2.msra.mxu1 %v3046_v60  ;;  %v3094_v60 = vld [vmem:[#allocation2 + $0x450] sm:$0xff] }
 0x459   :  { %1867 = vmatprep.subr.mxu1 %v3047_v61  ;;  %v3095_v61 = vld [vmem:[#allocation2 + $0x650] sm:$0xff] }
 0x45a   :  { %1868 = vmatpush2.msra.mxu1 %v3048_v62  ;;  %v3096_v62 = vld [vmem:[#allocation2 + $0x448] sm:$0xff] }
 0x45b   :  { %1869 = vmatprep.subr.mxu1 %v3049_v63  ;;  %v3097_v63 = vld [vmem:[#allocation2 + $0x648] sm:$0xff] }
 0x45c   :  { %1870 = vmatpush2.msra.mxu1 %v3050_v2  ;;  %v3098_v2 = vld [vmem:[#allocation2 + $0x440] sm:$0xff] }
 0x45d   :  { %1871 = vmatprep.subr.mxu1 %v3051_v3  ;;  %v3099_v3 = vld [vmem:[#allocation2 + $0x640] sm:$0xff] }
 0x45e   :  { %1872 = vmatpush2.msra.mxu1 %v3052_v4  ;;  %v3100_v4 = vld [vmem:[#allocation2 + $0x438] sm:$0xff] }
 0x45f   :  { %1951 = vmatprep.subr.mxu1 %v3053_v5  ;;  %v3101_v5 = vld [vmem:[#allocation2 + $0x638] sm:$0xff] }
 0x4df   :  { %v1708_v9 = vpop.f32.mrf.mxu1 }
 0x4e1   :  { %v1710_v10 = vpop.f32.mrf.mxu1 }
 0x4e2   :  { %v1713_v46 = vadd.f32 %v1710_v10, %v1708_v9  ;;  %v3102_v9 = vld [vmem:[#allocation2 + $0x430] sm:$0xff] }
 0x4e3   :  { %v3103_v10 = vld [vmem:[#allocation2 + $0x630] sm:$0xff] }
 0x4e4   :  { %1714 = vadd.xlane.f32.xlu0 %v1713_v46  ;;  %v3104_v46 = vld [vmem:[#allocation2 + $0x428] sm:$0xff] }
 0x56d   :  { %v1715_v13 = vpop.xlane.xlu0 %1714 }
 0x56e   :  { %v1716_v14 = vmul.f32 0.001953125, %v1715_v13  ;;  %v3105_v13 = vld [vmem:[#allocation2 + $0x628] sm:$0xff] }
 0x570   :  { %v1717_v15 = vadd.f32 1e-05, %v1716_v14  ;;  %v3106_v14 = vld [vmem:[#allocation2 + $0x420] sm:$0xff] }
 0x572   :  { %2902 = vrsqrt.f32 %v1717_v15  ;;  %v3107_v15 = vld [vmem:[#allocation2 + $0x620] sm:$0xff] }
 0x57f   :  { %v2903_v16 = vpop.eup %2902 }
 0x580   :  { %v1719_v0 = vmul.f32 %v2903_v16, %v3655_v58  ;;  %v1720_v17 = vmul.f32 %v2903_v16, %v3658_v59  ;;  %v3057_v58 = vld [vmem:[#allocation2 + $0x6e8] sm:$0xff]  ;;  %v3058_v59 = vld [vmem:[#allocation2 + $0x4e0] sm:$0xff]  ;;  %v3108_v16 = vld [vmem:[#allocation2 + $0x418] sm:$0xff] }
 0x582   :  { %v3672_v18 = vmax.f32 %v1719_v0, 0.0  ;;  %v3674_v19 = vmax.f32 %v1720_v17, 0.0  ;;  %v3109_v0 = vld [vmem:[#allocation2 + $0x618] sm:$0xff]  ;;  %v3110_v17 = vld [vmem:[#allocation2 + $0x410] sm:$0xff] }
 0x584   :  { %1802 = vmatprep.mubr.f32.mxu0 %v3674_v19  ;;  %1873 = vmatprep.mubr.f32.mxu1 %v3674_v19 }
 0x585   :  { %1803 = vmatmul.mubr.f32.vlgmr.msra.gmra.mxu0 %v3672_v18  ;;  %1874 = vmatmul.mubr.f32.vlgmr.msra.gmra.mxu1 %v3672_v18 }
 0x586   :  { %1881 = vmatpush1.msra.mxu0 %v3054_v20  ;;  %1952 = vmatpush1.msra.mxu1 %v3055_v1  ;;  %v3111_v20 = vld [vmem:[#allocation2 + $0x610] sm:$0xff]  ;;  %v3112_v1 = vld [vmem:[#allocation2 + $0x408] sm:$0xff] }
 0x587   :  { %1882 = vmatprep.subr.mxu0 %v3056_v21  ;;  %1944 = vmatprep.mubr.f32.mxu0 %v3674_v19  ;;  %v3113_v21 = vld [vmem:[#allocation2 + $0x608] sm:$0xff] }
 0x588   :  { %1953 = vmatprep.subr.mxu1 %v3057_v58  ;;  %2015 = vmatprep.mubr.f32.mxu1 %v3674_v19  ;;  %v3114_v58 = vld [vmem:[#allocation2 + $0x400] sm:$0xff] }
 0x589   :  { %1883 = vmatpush1.msra.mxu0 %v3058_v59  ;;  %1954 = vmatpush1.msra.mxu1 %v3059_v22  ;;  %v3115_v59 = vld [vmem:[#allocation2 + $0x600] sm:$0xff]  ;;  %v3116_v22 = vld [vmem:[#allocation2 + $0x5f8] sm:$0xff] }
 0x58a   :  { %1884 = vmatprep.subr.mxu0 %v3060_v23  ;;  %1955 = vmatprep.subr.mxu1 %v3061_v24  ;;  %v3117_v23 = vld [vmem:[#allocation2 + $0x7f8] sm:$0xff]  ;;  %v3118_v24 = vld [vmem:[#allocation2 + $0x5f0] sm:$0xff] }
 0x58b   :  { %1885 = vmatpush1.msra.mxu0 %v3062_v25  ;;  %1956 = vmatpush1.msra.mxu1 %v3063_v26  ;;  %v3119_v25 = vld [vmem:[#allocation2 + $0x7f0] sm:$0xff]  ;;  %v3120_v26 = vld [vmem:[#allocation2 + $0x5e8] sm:$0xff] }
 0x58c   :  { %1886 = vmatprep.subr.mxu0 %v3064_v27  ;;  %1957 = vmatprep.subr.mxu1 %v3065_v28  ;;  %v3121_v27 = vld [vmem:[#allocation2 + $0x7e8] sm:$0xff]  ;;  %v3122_v28 = vld [vmem:[#allocation2 + $0x5e0] sm:$0xff] }
 0x58d   :  { %1887 = vmatpush1.msra.mxu0 %v3066_v29  ;;  %1958 = vmatpush1.msra.mxu1 %v3067_v30  ;;  %v3123_v29 = vld [vmem:[#allocation2 + $0x7e0] sm:$0xff]  ;;  %v3124_v30 = vld [vmem:[#allocation2 + $0x5d8] sm:$0xff] }
 0x58e   :  { %1888 = vmatprep.subr.mxu0 %v3068_v31  ;;  %1959 = vmatprep.subr.mxu1 %v3069_v32  ;;  %v3125_v31 = vld [vmem:[#allocation2 + $0x7d8] sm:$0xff]  ;;  %v3126_v32 = vld [vmem:[#allocation2 + $0x5d0] sm:$0xff] }
 0x58f   :  { %1889 = vmatpush1.msra.mxu0 %v3070_v33  ;;  %1960 = vmatpush1.msra.mxu1 %v3071_v34  ;;  %v3127_v33 = vld [vmem:[#allocation2 + $0x7d0] sm:$0xff]  ;;  %v3128_v34 = vld [vmem:[#allocation2 + $0x5c8] sm:$0xff] }
 0x590   :  { %1890 = vmatprep.subr.mxu0 %v3072_v35  ;;  %1961 = vmatprep.subr.mxu1 %v3073_v36  ;;  %v3129_v35 = vld [vmem:[#allocation2 + $0x7c8] sm:$0xff]  ;;  %v3130_v36 = vld [vmem:[#allocation2 + $0x5c0] sm:$0xff] }
 0x591   :  { %1891 = vmatpush1.msra.mxu0 %v3074_v37  ;;  %1962 = vmatpush1.msra.mxu1 %v3075_v38  ;;  %v3131_v37 = vld [vmem:[#allocation2 + $0x7c0] sm:$0xff]  ;;  %v3132_v38 = vld [vmem:[#allocation2 + $0x5b8] sm:$0xff] }
 0x592   :  { %1892 = vmatprep.subr.mxu0 %v3076_v39  ;;  %1963 = vmatprep.subr.mxu1 %v3077_v40  ;;  %v3133_v39 = vld [vmem:[#allocation2 + $0x7b8] sm:$0xff]  ;;  %v3134_v40 = vld [vmem:[#allocation2 + $0x5b0] sm:$0xff] }
 0x593   :  { %1893 = vmatpush1.msra.mxu0 %v3078_v41  ;;  %1964 = vmatpush1.msra.mxu1 %v3079_v8  ;;  %v3135_v41 = vld [vmem:[#allocation2 + $0x7b0] sm:$0xff]  ;;  %v3136_v8 = vld [vmem:[#allocation2 + $0x5a8] sm:$0xff] }
 0x594   :  { %1894 = vmatprep.subr.mxu0 %v3080_v11  ;;  %1965 = vmatprep.subr.mxu1 %v3081_v42  ;;  %v3137_v11 = vld [vmem:[#allocation2 + $0x7a8] sm:$0xff]  ;;  %v3138_v42 = vld [vmem:[#allocation2 + $0x5a0] sm:$0xff] }
 0x595   :  { %1895 = vmatpush1.msra.mxu0 %v3082_v43  ;;  %1966 = vmatpush1.msra.mxu1 %v3083_v47  ;;  %v3139_v43 = vld [vmem:[#allocation2 + $0x7a0] sm:$0xff]  ;;  %v3140_v47 = vld [vmem:[#allocation2 + $0x598] sm:$0xff] }
 0x596   :  { %1896 = vmatprep.subr.mxu0 %v3084_v48  ;;  %1967 = vmatprep.subr.mxu1 %v3085_v49  ;;  %v3141_v48 = vld [vmem:[#allocation2 + $0x798] sm:$0xff]  ;;  %v3142_v49 = vld [vmem:[#allocation2 + $0x590] sm:$0xff] }
 0x597   :  { %1897 = vmatpush1.msra.mxu0 %v3086_v50  ;;  %1968 = vmatpush1.msra.mxu1 %v3087_v51  ;;  %v3143_v50 = vld [vmem:[#allocation2 + $0x790] sm:$0xff]  ;;  %v3144_v51 = vld [vmem:[#allocation2 + $0x588] sm:$0xff] }
 0x598   :  { %1898 = vmatprep.subr.mxu0 %v3088_v52  ;;  %1969 = vmatprep.subr.mxu1 %v3089_v53  ;;  %v3145_v52 = vld [vmem:[#allocation2 + $0x788] sm:$0xff]  ;;  %v3146_v53 = vld [vmem:[#allocation2 + $0x580] sm:$0xff] }
 0x599   :  { %1899 = vmatpush1.msra.mxu0 %v3090_v54  ;;  %1970 = vmatpush1.msra.mxu1 %v3091_v55  ;;  %v3147_v54 = vld [vmem:[#allocation2 + $0x780] sm:$0xff]  ;;  %v3148_v55 = vld [vmem:[#allocation2 + $0x578] sm:$0xff] }
 0x59a   :  { %1900 = vmatprep.subr.mxu0 %v3092_v56  ;;  %1971 = vmatprep.subr.mxu1 %v3093_v57  ;;  %v3149_v56 = vld [vmem:[#allocation2 + $0x778] sm:$0xff]  ;;  %v3150_v57 = vld [vmem:[#allocation2 + $0x570] sm:$0xff] }
 0x59b   :  { %1901 = vmatpush1.msra.mxu0 %v3094_v60  ;;  %1972 = vmatpush1.msra.mxu1 %v3095_v61  ;;  %v3151_v60 = vld [vmem:[#allocation2 + $0x770] sm:$0xff]  ;;  %v3152_v61 = vld [vmem:[#allocation2 + $0x568] sm:$0xff] }
 0x59c   :  { %1902 = vmatprep.subr.mxu0 %v3096_v62  ;;  %1973 = vmatprep.subr.mxu1 %v3097_v63  ;;  %v3153_v62 = vld [vmem:[#allocation2 + $0x768] sm:$0xff]  ;;  %v3154_v63 = vld [vmem:[#allocation2 + $0x560] sm:$0xff] }
 0x59d   :  { %1903 = vmatpush1.msra.mxu0 %v3098_v2  ;;  %1974 = vmatpush1.msra.mxu1 %v3099_v3  ;;  %v3155_v2 = vld [vmem:[#allocation2 + $0x760] sm:$0xff]  ;;  %v3156_v3 = vld [vmem:[#allocation2 + $0x558] sm:$0xff] }
 0x59e   :  { %1904 = vmatprep.subr.mxu0 %v3100_v4  ;;  %1975 = vmatprep.subr.mxu1 %v3101_v5  ;;  %v3157_v4 = vld [vmem:[#allocation2 + $0x758] sm:$0xff]  ;;  %v3158_v5 = vld [vmem:[#allocation2 + $0x550] sm:$0xff] }
 0x59f   :  { %1905 = vmatpush1.msra.mxu0 %v3102_v9  ;;  %1976 = vmatpush1.msra.mxu1 %v3103_v10  ;;  %v3159_v9 = vld [vmem:[#allocation2 + $0x750] sm:$0xff]  ;;  %v3160_v10 = vld [vmem:[#allocation2 + $0x548] sm:$0xff] }
 0x5a0   :  { %1906 = vmatprep.subr.mxu0 %v3104_v46  ;;  %1977 = vmatprep.subr.mxu1 %v3105_v13  ;;  %v3161_v46 = vld [vmem:[#allocation2 + $0x748] sm:$0xff]  ;;  %v3162_v13 = vld [vmem:[#allocation2 + $0x540] sm:$0xff] }
 0x5a1   :  { %1907 = vmatpush1.msra.mxu0 %v3106_v14  ;;  %1978 = vmatpush1.msra.mxu1 %v3107_v15  ;;  %v3163_v14 = vld [vmem:[#allocation2 + $0x740] sm:$0xff]  ;;  %v3164_v15 = vld [vmem:[#allocation2 + $0x538] sm:$0xff] }
 0x5a2   :  { %1908 = vmatprep.subr.mxu0 %v3108_v16  ;;  %1979 = vmatprep.subr.mxu1 %v3109_v0  ;;  %v3165_v16 = vld [vmem:[#allocation2 + $0x738] sm:$0xff]  ;;  %v3166_v0 = vld [vmem:[#allocation2 + $0x530] sm:$0xff] }
 0x5a3   :  { %1909 = vmatpush1.msra.mxu0 %v3110_v17  ;;  %1980 = vmatpush1.msra.mxu1 %v3111_v20  ;;  %v3167_v17 = vld [vmem:[#allocation2 + $0x730] sm:$0xff]  ;;  %v3168_v20 = vld [vmem:[#allocation2 + $0x528] sm:$0xff] }
 0x5a4   :  { %1910 = vmatprep.subr.mxu0 %v3112_v1  ;;  %1981 = vmatprep.subr.mxu1 %v3113_v21  ;;  %v3169_v1 = vld [vmem:[#allocation2 + $0x728] sm:$0xff]  ;;  %v3170_v21 = vld [vmem:[#allocation2 + $0x520] sm:$0xff] }
 0x5a5   :  { %1911 = vmatpush1.msra.mxu0 %v3114_v58  ;;  %1982 = vmatpush1.msra.mxu1 %v3115_v59  ;;  %v3171_v58 = vld [vmem:[#allocation2 + $0x720] sm:$0xff]  ;;  %v3172_v59 = vld [vmem:[#allocation2 + $0x518] sm:$0xff] }
 0x5a6   :  { %1912 = vmatprep.subr.mxu0 %v3116_v22  ;;  %1983 = vmatprep.subr.mxu1 %v3117_v23  ;;  %v3173_v22 = vld [vmem:[#allocation2 + $0x718] sm:$0xff]  ;;  %v3174_v23 = vld [vmem:[#allocation2 + $0x510] sm:$0xff] }
 0x5a7   :  { %1913 = vmatpush2.msra.mxu0 %v3118_v24  ;;  %1984 = vmatpush2.msra.mxu1 %v3119_v25  ;;  %v3175_v24 = vld [vmem:[#allocation2 + $0x710] sm:$0xff]  ;;  %v3176_v25 = vld [vmem:[#allocation2 + $0x508] sm:$0xff] }
 0x5a8   :  { %1914 = vmatprep.subr.mxu0 %v3120_v26  ;;  %1985 = vmatprep.subr.mxu1 %v3121_v27  ;;  %v3177_v26 = vld [vmem:[#allocation2 + $0x708] sm:$0xff]  ;;  %v3178_v27 = vld [vmem:[#allocation2 + $0x500] sm:$0xff] }
 0x5a9   :  { %1915 = vmatpush2.msra.mxu0 %v3122_v28  ;;  %1986 = vmatpush2.msra.mxu1 %v3123_v29  ;;  %v3179_v28 = vld [vmem:[#allocation2 + $0x700] sm:$0xff]  ;;  %v3180_v29 = vld [vmem:[#allocation2 + $0x8f8] sm:$0xff] }
 0x5aa   :  { %1916 = vmatprep.subr.mxu0 %v3124_v30  ;;  %1987 = vmatprep.subr.mxu1 %v3125_v31  ;;  %v3181_v30 = vld [vmem:[#allocation2 + $0xaf8] sm:$0xff]  ;;  %v3182_v31 = vld [vmem:[#allocation2 + $0x8f0] sm:$0xff] }
 0x5ab   :  { %1917 = vmatpush2.msra.mxu0 %v3126_v32  ;;  %1988 = vmatpush2.msra.mxu1 %v3127_v33  ;;  %v3183_v32 = vld [vmem:[#allocation2 + $0xaf0] sm:$0xff]  ;;  %v3184_v33 = vld [vmem:[#allocation2 + $0x8e8] sm:$0xff] }
 0x5ac   :  { %1918 = vmatprep.subr.mxu0 %v3128_v34  ;;  %1989 = vmatprep.subr.mxu1 %v3129_v35  ;;  %v3185_v34 = vld [vmem:[#allocation2 + $0xae8] sm:$0xff]  ;;  %v3186_v35 = vld [vmem:[#allocation2 + $0x8e0] sm:$0xff] }
 0x5ad   :  { %1919 = vmatpush2.msra.mxu0 %v3130_v36  ;;  %1990 = vmatpush2.msra.mxu1 %v3131_v37  ;;  %v3187_v36 = vld [vmem:[#allocation2 + $0xae0] sm:$0xff]  ;;  %v3188_v37 = vld [vmem:[#allocation2 + $0x8d8] sm:$0xff] }
 0x5ae   :  { %1920 = vmatprep.subr.mxu0 %v3132_v38  ;;  %1991 = vmatprep.subr.mxu1 %v3133_v39  ;;  %v3189_v38 = vld [vmem:[#allocation2 + $0xad8] sm:$0xff]  ;;  %v3190_v39 = vld [vmem:[#allocation2 + $0x8d0] sm:$0xff] }
 0x5af   :  { %1921 = vmatpush2.msra.mxu0 %v3134_v40  ;;  %1992 = vmatpush2.msra.mxu1 %v3135_v41  ;;  %v3191_v40 = vld [vmem:[#allocation2 + $0xad0] sm:$0xff]  ;;  %v3192_v41 = vld [vmem:[#allocation2 + $0x8c8] sm:$0xff] }
 0x5b0   :  { %1922 = vmatprep.subr.mxu0 %v3136_v8  ;;  %1993 = vmatprep.subr.mxu1 %v3137_v11  ;;  %v3193_v8 = vld [vmem:[#allocation2 + $0xac8] sm:$0xff]  ;;  %v3194_v11 = vld [vmem:[#allocation2 + $0x8c0] sm:$0xff] }
 0x5b1   :  { %1923 = vmatpush2.msra.mxu0 %v3138_v42  ;;  %1994 = vmatpush2.msra.mxu1 %v3139_v43  ;;  %v3195_v42 = vld [vmem:[#allocation2 + $0xac0] sm:$0xff]  ;;  %v3196_v43 = vld [vmem:[#allocation2 + $0x8b8] sm:$0xff] }
 0x5b2   :  { %1924 = vmatprep.subr.mxu0 %v3140_v47  ;;  %1995 = vmatprep.subr.mxu1 %v3141_v48  ;;  %v3197_v47 = vld [vmem:[#allocation2 + $0xab8] sm:$0xff]  ;;  %v3198_v48 = vld [vmem:[#allocation2 + $0x8b0] sm:$0xff] }
 0x5b3   :  { %1925 = vmatpush2.msra.mxu0 %v3142_v49  ;;  %1996 = vmatpush2.msra.mxu1 %v3143_v50  ;;  %v3199_v49 = vld [vmem:[#allocation2 + $0xab0] sm:$0xff]  ;;  %v3200_v50 = vld [vmem:[#allocation2 + $0x8a8] sm:$0xff] }
 0x5b4   :  { %1926 = vmatprep.subr.mxu0 %v3144_v51  ;;  %1997 = vmatprep.subr.mxu1 %v3145_v52  ;;  %v3201_v51 = vld [vmem:[#allocation2 + $0xaa8] sm:$0xff]  ;;  %v3202_v52 = vld [vmem:[#allocation2 + $0x8a0] sm:$0xff] }
 0x5b5   :  { %1927 = vmatpush2.msra.mxu0 %v3146_v53  ;;  %1998 = vmatpush2.msra.mxu1 %v3147_v54  ;;  %v3203_v53 = vld [vmem:[#allocation2 + $0xaa0] sm:$0xff]  ;;  %v3204_v54 = vld [vmem:[#allocation2 + $0x898] sm:$0xff] }
 0x5b6   :  { %1928 = vmatprep.subr.mxu0 %v3148_v55  ;;  %1999 = vmatprep.subr.mxu1 %v3149_v56  ;;  %v3205_v55 = vld [vmem:[#allocation2 + $0xa98] sm:$0xff]  ;;  %v3206_v56 = vld [vmem:[#allocation2 + $0x890] sm:$0xff] }
 0x5b7   :  { %1929 = vmatpush2.msra.mxu0 %v3150_v57  ;;  %2000 = vmatpush2.msra.mxu1 %v3151_v60  ;;  %v3207_v57 = vld [vmem:[#allocation2 + $0xa90] sm:$0xff]  ;;  %v3208_v60 = vld [vmem:[#allocation2 + $0x888] sm:$0xff] }
 0x5b8   :  { %1930 = vmatprep.subr.mxu0 %v3152_v61  ;;  %2001 = vmatprep.subr.mxu1 %v3153_v62  ;;  %v3209_v61 = vld [vmem:[#allocation2 + $0xa88] sm:$0xff]  ;;  %v3210_v62 = vld [vmem:[#allocation2 + $0x880] sm:$0xff] }
 0x5b9   :  { %1931 = vmatpush2.msra.mxu0 %v3154_v63  ;;  %2002 = vmatpush2.msra.mxu1 %v3155_v2  ;;  %v3211_v63 = vld [vmem:[#allocation2 + $0xa80] sm:$0xff]  ;;  %v3212_v2 = vld [vmem:[#allocation2 + $0x878] sm:$0xff] }
 0x5ba   :  { %1932 = vmatprep.subr.mxu0 %v3156_v3  ;;  %2003 = vmatprep.subr.mxu1 %v3157_v4  ;;  %v3213_v3 = vld [vmem:[#allocation2 + $0xa78] sm:$0xff]  ;;  %v3214_v4 = vld [vmem:[#allocation2 + $0x870] sm:$0xff] }
 0x5bb   :  { %1933 = vmatpush2.msra.mxu0 %v3158_v5  ;;  %2004 = vmatpush2.msra.mxu1 %v3159_v9  ;;  %v3215_v5 = vld [vmem:[#allocation2 + $0xa70] sm:$0xff]  ;;  %v3216_v9 = vld [vmem:[#allocation2 + $0x868] sm:$0xff] }
 0x5bc   :  { %1934 = vmatprep.subr.mxu0 %v3160_v10  ;;  %2005 = vmatprep.subr.mxu1 %v3161_v46  ;;  %v3217_v10 = vld [vmem:[#allocation2 + $0xa68] sm:$0xff]  ;;  %v3218_v46 = vld [vmem:[#allocation2 + $0x860] sm:$0xff] }
 0x5bd   :  { %1935 = vmatpush2.msra.mxu0 %v3162_v13  ;;  %2006 = vmatpush2.msra.mxu1 %v3163_v14  ;;  %v3219_v13 = vld [vmem:[#allocation2 + $0xa60] sm:$0xff]  ;;  %v3220_v14 = vld [vmem:[#allocation2 + $0x858] sm:$0xff] }
 0x5be   :  { %1936 = vmatprep.subr.mxu0 %v3164_v15  ;;  %2007 = vmatprep.subr.mxu1 %v3165_v16  ;;  %v3221_v15 = vld [vmem:[#allocation2 + $0xa58] sm:$0xff]  ;;  %v3222_v16 = vld [vmem:[#allocation2 + $0x850] sm:$0xff] }
 0x5bf   :  { %1937 = vmatpush2.msra.mxu0 %v3166_v0  ;;  %2008 = vmatpush2.msra.mxu1 %v3167_v17  ;;  %v3223_v0 = vld [vmem:[#allocation2 + $0xa50] sm:$0xff]  ;;  %v3224_v17 = vld [vmem:[#allocation2 + $0x848] sm:$0xff] }
 0x5c0   :  { %1938 = vmatprep.subr.mxu0 %v3168_v20  ;;  %2009 = vmatprep.subr.mxu1 %v3169_v1  ;;  %v3225_v20 = vld [vmem:[#allocation2 + $0xa48] sm:$0xff]  ;;  %v3226_v1 = vld [vmem:[#allocation2 + $0x840] sm:$0xff] }
 0x5c1   :  { %1939 = vmatpush2.msra.mxu0 %v3170_v21  ;;  %2010 = vmatpush2.msra.mxu1 %v3171_v58  ;;  %v3227_v21 = vld [vmem:[#allocation2 + $0xa40] sm:$0xff]  ;;  %v3228_v58 = vld [vmem:[#allocation2 + $0x838] sm:$0xff] }
 0x5c2   :  { %1940 = vmatprep.subr.mxu0 %v3172_v59  ;;  %2011 = vmatprep.subr.mxu1 %v3173_v22  ;;  %v3229_v59 = vld [vmem:[#allocation2 + $0xa38] sm:$0xff]  ;;  %v3230_v22 = vld [vmem:[#allocation2 + $0x830] sm:$0xff] }
 0x5c3   :  { %1941 = vmatpush2.msra.mxu0 %v3174_v23  ;;  %2012 = vmatpush2.msra.mxu1 %v3175_v24  ;;  %v3231_v23 = vld [vmem:[#allocation2 + $0xa30] sm:$0xff]  ;;  %v3232_v24 = vld [vmem:[#allocation2 + $0x828] sm:$0xff] }
 0x5c4   :  { %1942 = vmatprep.subr.mxu0 %v3176_v25  ;;  %2013 = vmatprep.subr.mxu1 %v3177_v26  ;;  %v3233_v25 = vld [vmem:[#allocation2 + $0xa28] sm:$0xff]  ;;  %v3234_v26 = vld [vmem:[#allocation2 + $0x820] sm:$0xff] }
 0x5c5   :  { %1943 = vmatpush2.msra.mxu0 %v3178_v27  ;;  %2014 = vmatpush2.msra.mxu1 %v3179_v28  ;;  %v3235_v27 = vld [vmem:[#allocation2 + $0xa20] sm:$0xff]  ;;  %v3236_v28 = vld [vmem:[#allocation2 + $0x818] sm:$0xff] }
 0x5c6   :  { %1945 = vmatmul.mubr.f32.vlgmr.msra.gmra.mxu0 %v3672_v18  ;;  %2016 = vmatmul.mubr.f32.vlgmr.msra.gmra.mxu1 %v3672_v18 }
 0x5c7   :  { %2022 = vmatprep.subr.mxu0 %v3180_v29  ;;  %2093 = vmatprep.subr.mxu1 %v3181_v30  ;;  %v3237_v29 = vld [vmem:[#allocation2 + $0xa18] sm:$0xff]  ;;  %v3238_v30 = vld [vmem:[#allocation2 + $0x810] sm:$0xff] }
 0x5c8   :  { %2023 = vmatpush1.msra.mxu0 %v3182_v31  ;;  %2086 = vmatprep.mubr.f32.mxu0 %v3674_v19  ;;  %v3239_v31 = vld [vmem:[#allocation2 + $0xa10] sm:$0xff] }
 0x5c9   :  { %2094 = vmatpush1.msra.mxu1 %v3183_v32  ;;  %2157 = vmatprep.mubr.f32.mxu1 %v3674_v19  ;;  %v3240_v32 = vld [vmem:[#allocation2 + $0x808] sm:$0xff] }
 0x5ca   :  { %2024 = vmatprep.subr.mxu0 %v3184_v33  ;;  %2095 = vmatprep.subr.mxu1 %v3185_v34  ;;  %v3241_v33 = vld [vmem:[#allocation2 + $0xa08] sm:$0xff]  ;;  %v3242_v34 = vld [vmem:[#allocation2 + $0x800] sm:$0xff] }
 0x5cb   :  { %2025 = vmatpush1.msra.mxu0 %v3186_v35  ;;  %2096 = vmatpush1.msra.mxu1 %v3187_v36  ;;  %v3243_v35 = vld [vmem:[#allocation2 + $0xa00] sm:$0xff]  ;;  %v3244_v36 = vld [vmem:[#allocation2 + $0x9f8] sm:$0xff] }
 0x5cc   :  { %2026 = vmatprep.subr.mxu0 %v3188_v37  ;;  %2097 = vmatprep.subr.mxu1 %v3189_v38  ;;  %v3245_v37 = vld [vmem:[#allocation2 + $0xbf8] sm:$0xff]  ;;  %v3246_v38 = vld [vmem:[#allocation2 + $0x9f0] sm:$0xff] }
 0x5cd   :  { %2027 = vmatpush1.msra.mxu0 %v3190_v39  ;;  %2098 = vmatpush1.msra.mxu1 %v3191_v40  ;;  %v3247_v39 = vld [vmem:[#allocation2 + $0xbf0] sm:$0xff]  ;;  %v3248_v40 = vld [vmem:[#allocation2 + $0x9e8] sm:$0xff] }
 0x5ce   :  { %2028 = vmatprep.subr.mxu0 %v3192_v41  ;;  %2099 = vmatprep.subr.mxu1 %v3193_v8  ;;  %v3249_v41 = vld [vmem:[#allocation2 + $0xbe8] sm:$0xff]  ;;  %v3250_v8 = vld [vmem:[#allocation2 + $0x9e0] sm:$0xff] }
 0x5cf   :  { %2029 = vmatpush1.msra.mxu0 %v3194_v11  ;;  %2100 = vmatpush1.msra.mxu1 %v3195_v42  ;;  %v3251_v11 = vld [vmem:[#allocation2 + $0xbe0] sm:$0xff]  ;;  %v3252_v42 = vld [vmem:[#allocation2 + $0x9d8] sm:$0xff] }
 0x5d0   :  { %2030 = vmatprep.subr.mxu0 %v3196_v43  ;;  %2101 = vmatprep.subr.mxu1 %v3197_v47  ;;  %v3253_v43 = vld [vmem:[#allocation2 + $0xbd8] sm:$0xff]  ;;  %v3254_v47 = vld [vmem:[#allocation2 + $0x9d0] sm:$0xff] }
 0x5d1   :  { %2031 = vmatpush1.msra.mxu0 %v3198_v48  ;;  %2102 = vmatpush1.msra.mxu1 %v3199_v49  ;;  %v3255_v48 = vld [vmem:[#allocation2 + $0xbd0] sm:$0xff]  ;;  %v3256_v49 = vld [vmem:[#allocation2 + $0x9c8] sm:$0xff] }
 0x5d2   :  { %2032 = vmatprep.subr.mxu0 %v3200_v50  ;;  %2103 = vmatprep.subr.mxu1 %v3201_v51  ;;  %v3257_v50 = vld [vmem:[#allocation2 + $0xbc8] sm:$0xff]  ;;  %v3258_v51 = vld [vmem:[#allocation2 + $0x9c0] sm:$0xff] }
 0x5d3   :  { %2033 = vmatpush1.msra.mxu0 %v3202_v52  ;;  %2104 = vmatpush1.msra.mxu1 %v3203_v53  ;;  %v3259_v52 = vld [vmem:[#allocation2 + $0xbc0] sm:$0xff]  ;;  %v3260_v53 = vld [vmem:[#allocation2 + $0x9b8] sm:$0xff] }
 0x5d4   :  { %2034 = vmatprep.subr.mxu0 %v3204_v54  ;;  %2105 = vmatprep.subr.mxu1 %v3205_v55  ;;  %v3261_v54 = vld [vmem:[#allocation2 + $0xbb8] sm:$0xff]  ;;  %v3262_v55 = vld [vmem:[#allocation2 + $0x9b0] sm:$0xff] }
 0x5d5   :  { %2035 = vmatpush1.msra.mxu0 %v3206_v56  ;;  %2106 = vmatpush1.msra.mxu1 %v3207_v57  ;;  %v3263_v56 = vld [vmem:[#allocation2 + $0xbb0] sm:$0xff]  ;;  %v3264_v57 = vld [vmem:[#allocation2 + $0x9a8] sm:$0xff] }
 0x5d6   :  { %2036 = vmatprep.subr.mxu0 %v3208_v60  ;;  %2107 = vmatprep.subr.mxu1 %v3209_v61  ;;  %v3265_v60 = vld [vmem:[#allocation2 + $0xba8] sm:$0xff]  ;;  %v3266_v61 = vld [vmem:[#allocation2 + $0x9a0] sm:$0xff] }
 0x5d7   :  { %2037 = vmatpush1.msra.mxu0 %v3210_v62  ;;  %2108 = vmatpush1.msra.mxu1 %v3211_v63  ;;  %v3267_v62 = vld [vmem:[#allocation2 + $0xba0] sm:$0xff]  ;;  %v3268_v63 = vld [vmem:[#allocation2 + $0x998] sm:$0xff] }
 0x5d8   :  { %2038 = vmatprep.subr.mxu0 %v3212_v2  ;;  %2109 = vmatprep.subr.mxu1 %v3213_v3  ;;  %v3269_v2 = vld [vmem:[#allocation2 + $0xb98] sm:$0xff]  ;;  %v3270_v3 = vld [vmem:[#allocation2 + $0x990] sm:$0xff] }
 0x5d9   :  { %2039 = vmatpush1.msra.mxu0 %v3214_v4  ;;  %2110 = vmatpush1.msra.mxu1 %v3215_v5  ;;  %v3271_v4 = vld [vmem:[#allocation2 + $0xb90] sm:$0xff]  ;;  %v3272_v5 = vld [vmem:[#allocation2 + $0x988] sm:$0xff] }
 0x5da   :  { %2040 = vmatprep.subr.mxu0 %v3216_v9  ;;  %2111 = vmatprep.subr.mxu1 %v3217_v10  ;;  %v3273_v9 = vld [vmem:[#allocation2 + $0xb88] sm:$0xff]  ;;  %v3274_v10 = vld [vmem:[#allocation2 + $0x980] sm:$0xff] }
 0x5db   :  { %2041 = vmatpush1.msra.mxu0 %v3218_v46  ;;  %2112 = vmatpush1.msra.mxu1 %v3219_v13  ;;  %v3275_v46 = vld [vmem:[#allocation2 + $0xb80] sm:$0xff]  ;;  %v3276_v13 = vld [vmem:[#allocation2 + $0x978] sm:$0xff] }
 0x5dc   :  { %2042 = vmatprep.subr.mxu0 %v3220_v14  ;;  %2113 = vmatprep.subr.mxu1 %v3221_v15  ;;  %v3277_v14 = vld [vmem:[#allocation2 + $0xb78] sm:$0xff]  ;;  %v3278_v15 = vld [vmem:[#allocation2 + $0x970] sm:$0xff] }
 0x5dd   :  { %2043 = vmatpush1.msra.mxu0 %v3222_v16  ;;  %2114 = vmatpush1.msra.mxu1 %v3223_v0  ;;  %v3279_v16 = vld [vmem:[#allocation2 + $0xb70] sm:$0xff]  ;;  %v3280_v0 = vld [vmem:[#allocation2 + $0x968] sm:$0xff] }
 0x5de   :  { %2044 = vmatprep.subr.mxu0 %v3224_v17  ;;  %2115 = vmatprep.subr.mxu1 %v3225_v20  ;;  %v3281_v17 = vld [vmem:[#allocation2 + $0xb68] sm:$0xff]  ;;  %v3282_v20 = vld [vmem:[#allocation2 + $0x960] sm:$0xff] }
 0x5df   :  { %2045 = vmatpush1.msra.mxu0 %v3226_v1  ;;  %2116 = vmatpush1.msra.mxu1 %v3227_v21  ;;  %v3283_v1 = vld [vmem:[#allocation2 + $0xb60] sm:$0xff]  ;;  %v3284_v21 = vld [vmem:[#allocation2 + $0x958] sm:$0xff] }
 0x5e0   :  { %2046 = vmatprep.subr.mxu0 %v3228_v58  ;;  %2117 = vmatprep.subr.mxu1 %v3229_v59  ;;  %v3285_v58 = vld [vmem:[#allocation2 + $0xb58] sm:$0xff]  ;;  %v3286_v59 = vld [vmem:[#allocation2 + $0x950] sm:$0xff] }
 0x5e1   :  { %2047 = vmatpush1.msra.mxu0 %v3230_v22  ;;  %2118 = vmatpush1.msra.mxu1 %v3231_v23  ;;  %v3287_v22 = vld [vmem:[#allocation2 + $0xb50] sm:$0xff]  ;;  %v3288_v23 = vld [vmem:[#allocation2 + $0x948] sm:$0xff] }
 0x5e2   :  { %2048 = vmatprep.subr.mxu0 %v3232_v24  ;;  %2119 = vmatprep.subr.mxu1 %v3233_v25  ;;  %v3289_v24 = vld [vmem:[#allocation2 + $0xb48] sm:$0xff]  ;;  %v3290_v25 = vld [vmem:[#allocation2 + $0x940] sm:$0xff] }
 0x5e3   :  { %2049 = vmatpush1.msra.mxu0 %v3234_v26  ;;  %2120 = vmatpush1.msra.mxu1 %v3235_v27  ;;  %v3291_v26 = vld [vmem:[#allocation2 + $0xb40] sm:$0xff]  ;;  %v3292_v27 = vld [vmem:[#allocation2 + $0x938] sm:$0xff] }
 0x5e4   :  { %2050 = vmatprep.subr.mxu0 %v3236_v28  ;;  %2121 = vmatprep.subr.mxu1 %v3237_v29  ;;  %v3293_v28 = vld [vmem:[#allocation2 + $0xb38] sm:$0xff]  ;;  %v3294_v29 = vld [vmem:[#allocation2 + $0x930] sm:$0xff] }
 0x5e5   :  { %2051 = vmatpush1.msra.mxu0 %v3238_v30  ;;  %2122 = vmatpush1.msra.mxu1 %v3239_v31  ;;  %v3295_v30 = vld [vmem:[#allocation2 + $0xb30] sm:$0xff]  ;;  %v3296_v31 = vld [vmem:[#allocation2 + $0x928] sm:$0xff] }
 0x5e6   :  { %2052 = vmatprep.subr.mxu0 %v3240_v32  ;;  %2123 = vmatprep.subr.mxu1 %v3241_v33  ;;  %v3297_v32 = vld [vmem:[#allocation2 + $0xb28] sm:$0xff]  ;;  %v3298_v33 = vld [vmem:[#allocation2 + $0x920] sm:$0xff] }
 0x5e7   :  { %2053 = vmatpush1.msra.mxu0 %v3242_v34  ;;  %2124 = vmatpush1.msra.mxu1 %v3243_v35  ;;  %v3299_v34 = vld [vmem:[#allocation2 + $0xb20] sm:$0xff]  ;;  %v3300_v35 = vld [vmem:[#allocation2 + $0x918] sm:$0xff] }
 0x5e8   :  { %2054 = vmatprep.subr.mxu0 %v3244_v36  ;;  %2125 = vmatprep.subr.mxu1 %v3245_v37  ;;  %v3301_v36 = vld [vmem:[#allocation2 + $0xb18] sm:$0xff]  ;;  %v3302_v37 = vld [vmem:[#allocation2 + $0x910] sm:$0xff] }
 0x5e9   :  { %2055 = vmatpush2.msra.mxu0 %v3246_v38  ;;  %2126 = vmatpush2.msra.mxu1 %v3247_v39  ;;  %v3303_v38 = vld [vmem:[#allocation2 + $0xb10] sm:$0xff]  ;;  %v3304_v39 = vld [vmem:[#allocation2 + $0x908] sm:$0xff] }
 0x5ea   :  { %2056 = vmatprep.subr.mxu0 %v3248_v40  ;;  %2127 = vmatprep.subr.mxu1 %v3249_v41  ;;  %v3305_v40 = vld [vmem:[#allocation2 + $0xb08] sm:$0xff]  ;;  %v3306_v41 = vld [vmem:[#allocation2 + $0x900] sm:$0xff] }
 0x5eb   :  { %2057 = vmatpush2.msra.mxu0 %v3250_v8  ;;  %2128 = vmatpush2.msra.mxu1 %v3251_v11  ;;  %v3307_v8 = vld [vmem:[#allocation2 + $0xb00] sm:$0xff]  ;;  %v3308_v11 = vld [vmem:[#allocation2 + $0xcf8] sm:$0xff] }
 0x5ec   :  { %2058 = vmatprep.subr.mxu0 %v3252_v42  ;;  %2129 = vmatprep.subr.mxu1 %v3253_v43  ;;  %v3309_v42 = vld [vmem:[#allocation2 + $0xef8] sm:$0xff]  ;;  %v3310_v43 = vld [vmem:[#allocation2 + $0xcf0] sm:$0xff] }
 0x5ed   :  { %2059 = vmatpush2.msra.mxu0 %v3254_v47  ;;  %2130 = vmatpush2.msra.mxu1 %v3255_v48  ;;  %v3311_v47 = vld [vmem:[#allocation2 + $0xef0] sm:$0xff]  ;;  %v3312_v48 = vld [vmem:[#allocation2 + $0xce8] sm:$0xff] }
 0x5ee   :  { %2060 = vmatprep.subr.mxu0 %v3256_v49  ;;  %2131 = vmatprep.subr.mxu1 %v3257_v50  ;;  %v3313_v49 = vld [vmem:[#allocation2 + $0xee8] sm:$0xff]  ;;  %v3314_v50 = vld [vmem:[#allocation2 + $0xce0] sm:$0xff] }
 0x5ef   :  { %2061 = vmatpush2.msra.mxu0 %v3258_v51  ;;  %2132 = vmatpush2.msra.mxu1 %v3259_v52  ;;  %v3315_v51 = vld [vmem:[#allocation2 + $0xee0] sm:$0xff]  ;;  %v3316_v52 = vld [vmem:[#allocation2 + $0xcd8] sm:$0xff] }
 0x5f0   :  { %2062 = vmatprep.subr.mxu0 %v3260_v53  ;;  %2133 = vmatprep.subr.mxu1 %v3261_v54  ;;  %v3317_v53 = vld [vmem:[#allocation2 + $0xed8] sm:$0xff]  ;;  %v3318_v54 = vld [vmem:[#allocation2 + $0xcd0] sm:$0xff] }
 0x5f1   :  { %2063 = vmatpush2.msra.mxu0 %v3262_v55  ;;  %2134 = vmatpush2.msra.mxu1 %v3263_v56  ;;  %v3319_v55 = vld [vmem:[#allocation2 + $0xed0] sm:$0xff]  ;;  %v3320_v56 = vld [vmem:[#allocation2 + $0xcc8] sm:$0xff] }
 0x5f2   :  { %2064 = vmatprep.subr.mxu0 %v3264_v57  ;;  %2135 = vmatprep.subr.mxu1 %v3265_v60  ;;  %v3321_v57 = vld [vmem:[#allocation2 + $0xec8] sm:$0xff]  ;;  %v3322_v60 = vld [vmem:[#allocation2 + $0xcc0] sm:$0xff] }
 0x5f3   :  { %2065 = vmatpush2.msra.mxu0 %v3266_v61  ;;  %2136 = vmatpush2.msra.mxu1 %v3267_v62  ;;  %v3323_v61 = vld [vmem:[#allocation2 + $0xec0] sm:$0xff]  ;;  %v3324_v62 = vld [vmem:[#allocation2 + $0xcb8] sm:$0xff] }
 0x5f4   :  { %2066 = vmatprep.subr.mxu0 %v3268_v63  ;;  %2137 = vmatprep.subr.mxu1 %v3269_v2  ;;  %v3325_v63 = vld [vmem:[#allocation2 + $0xeb8] sm:$0xff]  ;;  %v3326_v2 = vld [vmem:[#allocation2 + $0xcb0] sm:$0xff] }
 0x5f5   :  { %2067 = vmatpush2.msra.mxu0 %v3270_v3  ;;  %2138 = vmatpush2.msra.mxu1 %v3271_v4  ;;  %v3327_v3 = vld [vmem:[#allocation2 + $0xeb0] sm:$0xff]  ;;  %v3328_v4 = vld [vmem:[#allocation2 + $0xca8] sm:$0xff] }
 0x5f6   :  { %2068 = vmatprep.subr.mxu0 %v3272_v5  ;;  %2139 = vmatprep.subr.mxu1 %v3273_v9  ;;  %v3329_v5 = vld [vmem:[#allocation2 + $0xea8] sm:$0xff]  ;;  %v3330_v9 = vld [vmem:[#allocation2 + $0xca0] sm:$0xff] }
 0x5f7   :  { %2069 = vmatpush2.msra.mxu0 %v3274_v10  ;;  %2140 = vmatpush2.msra.mxu1 %v3275_v46  ;;  %v3331_v10 = vld [vmem:[#allocation2 + $0xea0] sm:$0xff]  ;;  %v3332_v46 = vld [vmem:[#allocation2 + $0xc98] sm:$0xff] }
 0x5f8   :  { %2070 = vmatprep.subr.mxu0 %v3276_v13  ;;  %2141 = vmatprep.subr.mxu1 %v3277_v14  ;;  %v3333_v13 = vld [vmem:[#allocation2 + $0xe98] sm:$0xff]  ;;  %v3334_v14 = vld [vmem:[#allocation2 + $0xc90] sm:$0xff] }
 0x5f9   :  { %2071 = vmatpush2.msra.mxu0 %v3278_v15  ;;  %2142 = vmatpush2.msra.mxu1 %v3279_v16  ;;  %v3335_v15 = vld [vmem:[#allocation2 + $0xe90] sm:$0xff]  ;;  %v3336_v16 = vld [vmem:[#allocation2 + $0xc88] sm:$0xff] }
 0x5fa   :  { %2072 = vmatprep.subr.mxu0 %v3280_v0  ;;  %2143 = vmatprep.subr.mxu1 %v3281_v17  ;;  %v3337_v0 = vld [vmem:[#allocation2 + $0xe88] sm:$0xff]  ;;  %v3338_v17 = vld [vmem:[#allocation2 + $0xc80] sm:$0xff] }
 0x5fb   :  { %2073 = vmatpush2.msra.mxu0 %v3282_v20  ;;  %2144 = vmatpush2.msra.mxu1 %v3283_v1  ;;  %v3339_v20 = vld [vmem:[#allocation2 + $0xe80] sm:$0xff]  ;;  %v3340_v1 = vld [vmem:[#allocation2 + $0xc78] sm:$0xff] }
 0x5fc   :  { %2074 = vmatprep.subr.mxu0 %v3284_v21  ;;  %2145 = vmatprep.subr.mxu1 %v3285_v58  ;;  %v3341_v21 = vld [vmem:[#allocation2 + $0xe78] sm:$0xff]  ;;  %v3342_v58 = vld [vmem:[#allocation2 + $0xc70] sm:$0xff] }
 0x5fd   :  { %2075 = vmatpush2.msra.mxu0 %v3286_v59  ;;  %2146 = vmatpush2.msra.mxu1 %v3287_v22  ;;  %v3343_v59 = vld [vmem:[#allocation2 + $0xe70] sm:$0xff]  ;;  %v3344_v22 = vld [vmem:[#allocation2 + $0xc68] sm:$0xff] }
 0x5fe   :  { %2076 = vmatprep.subr.mxu0 %v3288_v23  ;;  %2147 = vmatprep.subr.mxu1 %v3289_v24  ;;  %v3345_v23 = vld [vmem:[#allocation2 + $0xe68] sm:$0xff]  ;;  %v3346_v24 = vld [vmem:[#allocation2 + $0xc60] sm:$0xff] }
 0x5ff   :  { %2077 = vmatpush2.msra.mxu0 %v3290_v25  ;;  %2148 = vmatpush2.msra.mxu1 %v3291_v26  ;;  %v3347_v25 = vld [vmem:[#allocation2 + $0xe60] sm:$0xff]  ;;  %v3348_v26 = vld [vmem:[#allocation2 + $0xc58] sm:$0xff] }
 0x600   :  { %2078 = vmatprep.subr.mxu0 %v3292_v27  ;;  %2149 = vmatprep.subr.mxu1 %v3293_v28  ;;  %v3349_v27 = vld [vmem:[#allocation2 + $0xe58] sm:$0xff]  ;;  %v3350_v28 = vld [vmem:[#allocation2 + $0xc50] sm:$0xff] }
 0x601   :  { %2079 = vmatpush2.msra.mxu0 %v3294_v29  ;;  %2150 = vmatpush2.msra.mxu1 %v3295_v30  ;;  %v3351_v29 = vld [vmem:[#allocation2 + $0xe50] sm:$0xff]  ;;  %v3352_v30 = vld [vmem:[#allocation2 + $0xc48] sm:$0xff] }
 0x602   :  { %2080 = vmatprep.subr.mxu0 %v3296_v31  ;;  %2151 = vmatprep.subr.mxu1 %v3297_v32  ;;  %v3353_v31 = vld [vmem:[#allocation2 + $0xe48] sm:$0xff]  ;;  %v3354_v32 = vld [vmem:[#allocation2 + $0xc40] sm:$0xff] }
 0x603   :  { %2081 = vmatpush2.msra.mxu0 %v3298_v33  ;;  %2152 = vmatpush2.msra.mxu1 %v3299_v34  ;;  %v3355_v33 = vld [vmem:[#allocation2 + $0xe40] sm:$0xff]  ;;  %v3356_v34 = vld [vmem:[#allocation2 + $0xc38] sm:$0xff] }
 0x604   :  { %2082 = vmatprep.subr.mxu0 %v3300_v35  ;;  %2153 = vmatprep.subr.mxu1 %v3301_v36  ;;  %v3357_v35 = vld [vmem:[#allocation2 + $0xe38] sm:$0xff]  ;;  %v3358_v36 = vld [vmem:[#allocation2 + $0xc30] sm:$0xff] }
 0x605   :  { %2083 = vmatpush2.msra.mxu0 %v3302_v37  ;;  %2154 = vmatpush2.msra.mxu1 %v3303_v38  ;;  %v3359_v37 = vld [vmem:[#allocation2 + $0xe30] sm:$0xff]  ;;  %v3360_v38 = vld [vmem:[#allocation2 + $0xc28] sm:$0xff] }
 0x606   :  { %2084 = vmatprep.subr.mxu0 %v3304_v39  ;;  %2155 = vmatprep.subr.mxu1 %v3305_v40  ;;  %v3361_v39 = vld [vmem:[#allocation2 + $0xe28] sm:$0xff]  ;;  %v3362_v40 = vld [vmem:[#allocation2 + $0xc20] sm:$0xff] }
 0x607   :  { %2085 = vmatpush2.msra.mxu0 %v3306_v41  ;;  %2156 = vmatpush2.msra.mxu1 %v3307_v8  ;;  %v3363_v41 = vld [vmem:[#allocation2 + $0xe20] sm:$0xff]  ;;  %v3364_v8 = vld [vmem:[#allocation2 + $0xc18] sm:$0xff] }
 0x608   :  { %2087 = vmatmul.mubr.f32.vlgmr.msra.gmra.mxu0 %v3672_v18  ;;  %2158 = vmatmul.mubr.f32.vlgmr.msra.gmra.mxu1 %v3672_v18 }
 0x609   :  { %2164 = vmatprep.subr.mxu0 %v3308_v11  ;;  %2235 = vmatprep.subr.mxu1 %v3309_v42  ;;  %v3365_v11 = vld [vmem:[#allocation2 + $0xe18] sm:$0xff]  ;;  %v3366_v42 = vld [vmem:[#allocation2 + $0xc10] sm:$0xff] }
 0x60a   :  { %2165 = vmatpush1.msra.mxu0 %v3310_v43  ;;  %2228 = vmatprep.mubr.f32.mxu0 %v3674_v19  ;;  %v3367_v43 = vld [vmem:[#allocation2 + $0xe10] sm:$0xff] }
 0x60b   :  { %2236 = vmatpush1.msra.mxu1 %v3311_v47  ;;  %2299 = vmatprep.mubr.f32.mxu1 %v3674_v19  ;;  %v3368_v47 = vld [vmem:[#allocation2 + $0xc08] sm:$0xff] }
 0x60c   :  { %2166 = vmatprep.subr.mxu0 %v3312_v48  ;;  %2237 = vmatprep.subr.mxu1 %v3313_v49  ;;  %v3369_v48 = vld [vmem:[#allocation2 + $0xe08] sm:$0xff]  ;;  %v3370_v49 = vld [vmem:[#allocation2 + $0xc00] sm:$0xff] }
 0x60d   :  { %2167 = vmatpush1.msra.mxu0 %v3314_v50  ;;  %2238 = vmatpush1.msra.mxu1 %v3315_v51  ;;  %v3371_v50 = vld [vmem:[#allocation2 + $0xe00] sm:$0xff]  ;;  %v3372_v51 = vld [vmem:[#allocation2 + $0xdf8] sm:$0xff] }
 0x60e   :  { %2168 = vmatprep.subr.mxu0 %v3316_v52  ;;  %2239 = vmatprep.subr.mxu1 %v3317_v53  ;;  %v3373_v52 = vld [vmem:[#allocation2 + $0xff8] sm:$0xff]  ;;  %v3374_v53 = vld [vmem:[#allocation2 + $0xdf0] sm:$0xff] }
 0x60f   :  { %2169 = vmatpush1.msra.mxu0 %v3318_v54  ;;  %2240 = vmatpush1.msra.mxu1 %v3319_v55  ;;  %v3375_v54 = vld [vmem:[#allocation2 + $0xff0] sm:$0xff]  ;;  %v3376_v55 = vld [vmem:[#allocation2 + $0xde8] sm:$0xff] }
 0x610   :  { %2170 = vmatprep.subr.mxu0 %v3320_v56  ;;  %2241 = vmatprep.subr.mxu1 %v3321_v57  ;;  %v3377_v56 = vld [vmem:[#allocation2 + $0xfe8] sm:$0xff]  ;;  %v3378_v57 = vld [vmem:[#allocation2 + $0xde0] sm:$0xff] }
 0x611   :  { %2171 = vmatpush1.msra.mxu0 %v3322_v60  ;;  %2242 = vmatpush1.msra.mxu1 %v3323_v61  ;;  %v3379_v60 = vld [vmem:[#allocation2 + $0xfe0] sm:$0xff]  ;;  %v3380_v61 = vld [vmem:[#allocation2 + $0xdd8] sm:$0xff] }
 0x612   :  { %2172 = vmatprep.subr.mxu0 %v3324_v62  ;;  %2243 = vmatprep.subr.mxu1 %v3325_v63  ;;  %v3381_v62 = vld [vmem:[#allocation2 + $0xfd8] sm:$0xff]  ;;  %v3382_v63 = vld [vmem:[#allocation2 + $0xdd0] sm:$0xff] }
 0x613   :  { %2173 = vmatpush1.msra.mxu0 %v3326_v2  ;;  %2244 = vmatpush1.msra.mxu1 %v3327_v3  ;;  %v3383_v2 = vld [vmem:[#allocation2 + $0xfd0] sm:$0xff]  ;;  %v3384_v3 = vld [vmem:[#allocation2 + $0xdc8] sm:$0xff] }
 0x614   :  { %2174 = vmatprep.subr.mxu0 %v3328_v4  ;;  %2245 = vmatprep.subr.mxu1 %v3329_v5  ;;  %v3385_v4 = vld [vmem:[#allocation2 + $0xfc8] sm:$0xff]  ;;  %v3386_v5 = vld [vmem:[#allocation2 + $0xdc0] sm:$0xff] }
 0x615   :  { %2175 = vmatpush1.msra.mxu0 %v3330_v9  ;;  %2246 = vmatpush1.msra.mxu1 %v3331_v10  ;;  %v3387_v9 = vld [vmem:[#allocation2 + $0xfc0] sm:$0xff]  ;;  %v3388_v10 = vld [vmem:[#allocation2 + $0xdb8] sm:$0xff] }
 0x616   :  { %2176 = vmatprep.subr.mxu0 %v3332_v46  ;;  %2247 = vmatprep.subr.mxu1 %v3333_v13  ;;  %v3389_v46 = vld [vmem:[#allocation2 + $0xfb8] sm:$0xff]  ;;  %v3390_v13 = vld [vmem:[#allocation2 + $0xdb0] sm:$0xff] }
 0x617   :  { %2177 = vmatpush1.msra.mxu0 %v3334_v14  ;;  %2248 = vmatpush1.msra.mxu1 %v3335_v15  ;;  %v3391_v14 = vld [vmem:[#allocation2 + $0xfb0] sm:$0xff]  ;;  %v3392_v15 = vld [vmem:[#allocation2 + $0xda8] sm:$0xff] }
 0x618   :  { %2178 = vmatprep.subr.mxu0 %v3336_v16  ;;  %2249 = vmatprep.subr.mxu1 %v3337_v0  ;;  %v3393_v16 = vld [vmem:[#allocation2 + $0xfa8] sm:$0xff]  ;;  %v3394_v0 = vld [vmem:[#allocation2 + $0xda0] sm:$0xff] }
 0x619   :  { %2179 = vmatpush1.msra.mxu0 %v3338_v17  ;;  %2250 = vmatpush1.msra.mxu1 %v3339_v20  ;;  %v3395_v17 = vld [vmem:[#allocation2 + $0xfa0] sm:$0xff]  ;;  %v3396_v20 = vld [vmem:[#allocation2 + $0xd98] sm:$0xff] }
 0x61a   :  { %2180 = vmatprep.subr.mxu0 %v3340_v1  ;;  %2251 = vmatprep.subr.mxu1 %v3341_v21  ;;  %v3397_v1 = vld [vmem:[#allocation2 + $0xf98] sm:$0xff]  ;;  %v3398_v21 = vld [vmem:[#allocation2 + $0xd90] sm:$0xff] }
 0x61b   :  { %2181 = vmatpush1.msra.mxu0 %v3342_v58  ;;  %2252 = vmatpush1.msra.mxu1 %v3343_v59  ;;  %v3399_v58 = vld [vmem:[#allocation2 + $0xf90] sm:$0xff]  ;;  %v3400_v59 = vld [vmem:[#allocation2 + $0xd88] sm:$0xff] }
 0x61c   :  { %2182 = vmatprep.subr.mxu0 %v3344_v22  ;;  %2253 = vmatprep.subr.mxu1 %v3345_v23  ;;  %v3401_v22 = vld [vmem:[#allocation2 + $0xf88] sm:$0xff]  ;;  %v3402_v23 = vld [vmem:[#allocation2 + $0xd80] sm:$0xff] }
 0x61d   :  { %2183 = vmatpush1.msra.mxu0 %v3346_v24  ;;  %2254 = vmatpush1.msra.mxu1 %v3347_v25  ;;  %v3403_v24 = vld [vmem:[#allocation2 + $0xf80] sm:$0xff]  ;;  %v3404_v25 = vld [vmem:[#allocation2 + $0xd78] sm:$0xff] }
 0x61e   :  { %2184 = vmatprep.subr.mxu0 %v3348_v26  ;;  %2255 = vmatprep.subr.mxu1 %v3349_v27  ;;  %v3405_v26 = vld [vmem:[#allocation2 + $0xf78] sm:$0xff]  ;;  %v3406_v27 = vld [vmem:[#allocation2 + $0xd70] sm:$0xff] }
 0x61f   :  { %2185 = vmatpush1.msra.mxu0 %v3350_v28  ;;  %2256 = vmatpush1.msra.mxu1 %v3351_v29  ;;  %v3407_v28 = vld [vmem:[#allocation2 + $0xf70] sm:$0xff]  ;;  %v3408_v29 = vld [vmem:[#allocation2 + $0xd68] sm:$0xff] }
 0x620   :  { %2186 = vmatprep.subr.mxu0 %v3352_v30  ;;  %2257 = vmatprep.subr.mxu1 %v3353_v31  ;;  %v3409_v30 = vld [vmem:[#allocation2 + $0xf68] sm:$0xff]  ;;  %v3410_v31 = vld [vmem:[#allocation2 + $0xd60] sm:$0xff] }
 0x621   :  { %2187 = vmatpush1.msra.mxu0 %v3354_v32  ;;  %2258 = vmatpush1.msra.mxu1 %v3355_v33  ;;  %v3411_v32 = vld [vmem:[#allocation2 + $0xf60] sm:$0xff]  ;;  %v3412_v33 = vld [vmem:[#allocation2 + $0xd58] sm:$0xff] }
 0x622   :  { %2188 = vmatprep.subr.mxu0 %v3356_v34  ;;  %2259 = vmatprep.subr.mxu1 %v3357_v35  ;;  %v3413_v34 = vld [vmem:[#allocation2 + $0xf58] sm:$0xff]  ;;  %v3414_v35 = vld [vmem:[#allocation2 + $0xd50] sm:$0xff] }
 0x623   :  { %2189 = vmatpush1.msra.mxu0 %v3358_v36  ;;  %2260 = vmatpush1.msra.mxu1 %v3359_v37  ;;  %v3415_v36 = vld [vmem:[#allocation2 + $0xf50] sm:$0xff]  ;;  %v3416_v37 = vld [vmem:[#allocation2 + $0xd48] sm:$0xff] }
 0x624   :  { %2190 = vmatprep.subr.mxu0 %v3360_v38  ;;  %2261 = vmatprep.subr.mxu1 %v3361_v39  ;;  %v3417_v38 = vld [vmem:[#allocation2 + $0xf48] sm:$0xff]  ;;  %v3418_v39 = vld [vmem:[#allocation2 + $0xd40] sm:$0xff] }
 0x625   :  { %2191 = vmatpush1.msra.mxu0 %v3362_v40  ;;  %2262 = vmatpush1.msra.mxu1 %v3363_v41  ;;  %v3419_v40 = vld [vmem:[#allocation2 + $0xf40] sm:$0xff]  ;;  %v3420_v41 = vld [vmem:[#allocation2 + $0xd38] sm:$0xff] }
 0x626   :  { %2192 = vmatprep.subr.mxu0 %v3364_v8  ;;  %2263 = vmatprep.subr.mxu1 %v3365_v11  ;;  %v3421_v8 = vld [vmem:[#allocation2 + $0xf38] sm:$0xff]  ;;  %v3422_v11 = vld [vmem:[#allocation2 + $0xd30] sm:$0xff] }
 0x627   :  { %2193 = vmatpush1.msra.mxu0 %v3366_v42  ;;  %2264 = vmatpush1.msra.mxu1 %v3367_v43  ;;  %v3423_v42 = vld [vmem:[#allocation2 + $0xf30] sm:$0xff]  ;;  %v3424_v43 = vld [vmem:[#allocation2 + $0xd28] sm:$0xff] }
 0x628   :  { %2194 = vmatprep.subr.mxu0 %v3368_v47  ;;  %2265 = vmatprep.subr.mxu1 %v3369_v48  ;;  %v3425_v47 = vld [vmem:[#allocation2 + $0xf28] sm:$0xff]  ;;  %v3426_v48 = vld [vmem:[#allocation2 + $0xd20] sm:$0xff] }
 0x629   :  { %2195 = vmatpush1.msra.mxu0 %v3370_v49  ;;  %2266 = vmatpush1.msra.mxu1 %v3371_v50  ;;  %v3427_v49 = vld [vmem:[#allocation2 + $0xf20] sm:$0xff]  ;;  %v3428_v50 = vld [vmem:[#allocation2 + $0xd18] sm:$0xff] }
 0x62a   :  { %2196 = vmatprep.subr.mxu0 %v3372_v51  ;;  %2267 = vmatprep.subr.mxu1 %v3373_v52  ;;  %v3429_v51 = vld [vmem:[#allocation2 + $0xf18] sm:$0xff]  ;;  %v3430_v52 = vld [vmem:[#allocation2 + $0xd10] sm:$0xff] }
 0x62b   :  { %2197 = vmatpush2.msra.mxu0 %v3374_v53  ;;  %2268 = vmatpush2.msra.mxu1 %v3375_v54  ;;  %v3431_v53 = vld [vmem:[#allocation2 + $0xf10] sm:$0xff]  ;;  %v3432_v54 = vld [vmem:[#allocation2 + $0xd08] sm:$0xff] }
 0x62c   :  { %2198 = vmatprep.subr.mxu0 %v3376_v55  ;;  %2269 = vmatprep.subr.mxu1 %v3377_v56  ;;  %v3433_v55 = vld [vmem:[#allocation2 + $0xf08] sm:$0xff]  ;;  %v3434_v56 = vld [vmem:[#allocation2 + $0xd00] sm:$0xff] }
 0x62d   :  { %2199 = vmatpush2.msra.mxu0 %v3378_v57  ;;  %2270 = vmatpush2.msra.mxu1 %v3379_v60  ;;  %v3435_v57 = vld [vmem:[#allocation2 + $0xf00] sm:$0xff]  ;;  %v2877_v60 = vld [vmem:[%s4109_s4 + $0x8] sm:$0xff] }
 0x62e   :  { %2200 = vmatprep.subr.mxu0 %v3380_v61  ;;  %2271 = vmatprep.subr.mxu1 %v3381_v62  ;;  %v3532_v61 = vmov 0   ;;  %v2483_v62 = vadd.f32 1e-06, %v2877_v60 }
 0x62f   :  { %2201 = vmatpush2.msra.mxu0 %v3382_v63  ;;  %2272 = vmatpush2.msra.mxu1 %v3383_v2 }
 0x630   :  { %2202 = vmatprep.subr.mxu0 %v3384_v3  ;;  %2273 = vmatprep.subr.mxu1 %v3385_v4 }
 0x631   :  { %2203 = vmatpush2.msra.mxu0 %v3386_v5  ;;  %2274 = vmatpush2.msra.mxu1 %v3387_v9 }
 0x632   :  { %2204 = vmatprep.subr.mxu0 %v3388_v10  ;;  %2275 = vmatprep.subr.mxu1 %v3389_v46 }
 0x633   :  { %2205 = vmatpush2.msra.mxu0 %v3390_v13  ;;  %2276 = vmatpush2.msra.mxu1 %v3391_v14 }
 0x634   :  { %2206 = vmatprep.subr.mxu0 %v3392_v15  ;;  %2277 = vmatprep.subr.mxu1 %v3393_v16 }
 0x635   :  { %2207 = vmatpush2.msra.mxu0 %v3394_v0  ;;  %2278 = vmatpush2.msra.mxu1 %v3395_v17 }
 0x636   :  { %2208 = vmatprep.subr.mxu0 %v3396_v20  ;;  %2279 = vmatprep.subr.mxu1 %v3397_v1 }
 0x637   :  { %2209 = vmatpush2.msra.mxu0 %v3398_v21  ;;  %2280 = vmatpush2.msra.mxu1 %v3399_v58 }
 0x638   :  { %2210 = vmatprep.subr.mxu0 %v3400_v59  ;;  %2281 = vmatprep.subr.mxu1 %v3401_v22 }
 0x639   :  { %2211 = vmatpush2.msra.mxu0 %v3402_v23  ;;  %2282 = vmatpush2.msra.mxu1 %v3403_v24 }
 0x63a   :  { %2212 = vmatprep.subr.mxu0 %v3404_v25  ;;  %2283 = vmatprep.subr.mxu1 %v3405_v26 }
 0x63b   :  { %2213 = vmatpush2.msra.mxu0 %v3406_v27  ;;  %2284 = vmatpush2.msra.mxu1 %v3407_v28  ;;  %v2389_v27 = vmul.f32 %v3674_v19, %v3674_v19  ;;  %v2388_v28 = vmul.f32 %v3672_v18, %v3672_v18 }
 0x63c   :  { %2214 = vmatprep.subr.mxu0 %v3408_v29  ;;  %2285 = vmatprep.subr.mxu1 %v3409_v30 }
 0x63d   :  { %2215 = vmatpush2.msra.mxu0 %v3410_v31  ;;  %2286 = vmatpush2.msra.mxu1 %v3411_v32 }
 0x63e   :  { %2216 = vmatprep.subr.mxu0 %v3412_v33  ;;  %2287 = vmatprep.subr.mxu1 %v3413_v34 }
 0x63f   :  { %2217 = vmatpush2.msra.mxu0 %v3414_v35  ;;  %2288 = vmatpush2.msra.mxu1 %v3415_v36  ;;  %v3436_v36 = vld [vmem:[#allocation5] sm:$0xff] }
 0x640   :  { %2218 = vmatprep.subr.mxu0 %v3416_v37  ;;  %2289 = vmatprep.subr.mxu1 %v3417_v38 }
 0x641   :  { %2219 = vmatpush2.msra.mxu0 %v3418_v39  ;;  %2290 = vmatpush2.msra.mxu1 %v3419_v40  ;;  %v3721_v39 = vld [vmem:[#allocation7] sm:$0xff] }
 0x642   :  { %2220 = vmatprep.subr.mxu0 %v3420_v41  ;;  %2291 = vmatprep.subr.mxu1 %v3421_v8 }
 0x643   :  { %2221 = vmatpush2.msra.mxu0 %v3422_v11  ;;  %2292 = vmatpush2.msra.mxu1 %v3423_v42 }
 0x644   :  { %2222 = vmatprep.subr.mxu0 %v3424_v43  ;;  %2293 = vmatprep.subr.mxu1 %v3425_v47 }
 0x645   :  { %2223 = vmatpush2.msra.mxu0 %v3426_v48  ;;  %2294 = vmatpush2.msra.mxu1 %v3427_v49  ;;  %v3697_v63 = vpop.f32.mrf.mxu0  ;;  %v1875_v2 = vpop.f32.mrf.mxu1 }
 0x646   :  { %2224 = vmatprep.subr.mxu0 %v3428_v50  ;;  %2295 = vmatprep.subr.mxu1 %v3429_v51  ;;  %v2380_v35 = vmul.f32 %v3697_v63, %v3697_v63 }
 0x647   :  { %2225 = vmatpush2.msra.mxu0 %v3430_v52  ;;  %2296 = vmatpush2.msra.mxu1 %v3431_v53  ;;  %v1806_v3 = vpop.f32.mrf.mxu0  ;;  %v1877_v4 = vpop.f32.mrf.mxu1 }
 0x648   :  { %2226 = vmatprep.subr.mxu0 %v3432_v54  ;;  %2297 = vmatprep.subr.mxu1 %v3433_v55  ;;  %v2383_v33 = vmul.f32 %v1877_v4, %v1877_v4  ;;  %v2381_v34 = vmul.f32 %v1806_v3, %v1806_v3 }
 0x649   :  { %2227 = vmatpush2.msra.mxu0 %v3434_v56  ;;  %2298 = vmatpush2.msra.mxu1 %v3435_v57 }
 0x64a   :  { %2229 = vmatmul.mubr.f32.vlgmr.msra.gmra.mxu0 %v3672_v18  ;;  %2300 = vmatmul.mubr.f32.vlgmr.msra.gmra.mxu1 %v3672_v18 }
 0x64b   :  { %2373 = vmatprep.mubr.f32.mxu0 %v3531_v12  ;;  %2462 = vmatprep.mubr.f32.mxu1 %v3531_v12 }
 0x64c   :  { %2901 = vset.pattern.permute.xlu0 %v3532_v61  ;;  %2900 = vset.pattern.permute.xlu1 %v3532_v61 }
 0x64d   :  { %2488 = vperm.xlu0 %2901, %v2483_v62  }
 0x686   :  { %v1946_v5 = vpop.f32.mrf.mxu0  ;;  %v2017_v9 = vpop.f32.mrf.mxu1 }
 0x687   :  { %v2386_v30 = vmul.f32 %v2017_v9, %v2017_v9  ;;  %v2384_v32 = vmul.f32 %v1946_v5, %v1946_v5 }
 0x688   :  { %v1948_v10 = vpop.f32.mrf.mxu0  ;;  %v2019_v46 = vpop.f32.mrf.mxu1 }
 0x689   :  { %v2387_v29 = vmul.f32 %v2019_v46, %v2019_v46  ;;  %v2385_v31 = vmul.f32 %v1948_v10, %v1948_v10 }
 0x6c8   :  { %v2088_v13 = vpop.f32.mrf.mxu0  ;;  %v2159_v14 = vpop.f32.mrf.mxu1 }
 0x6c9   :  { %v2392_v24 = vmul.f32 %v2159_v14, %v2159_v14  ;;  %v2390_v26 = vmul.f32 %v2088_v13, %v2088_v13 }
 0x6ca   :  { %v2090_v15 = vpop.f32.mrf.mxu0  ;;  %v2161_v16 = vpop.f32.mrf.mxu1 }
 0x6cb   :  { %v2393_v23 = vmul.f32 %v2161_v16, %v2161_v16  ;;  %v2391_v25 = vmul.f32 %v2090_v15, %v2090_v15 }
 0x70a   :  { %v2230_v0 = vpop.f32.mrf.mxu0  ;;  %v2301_v17 = vpop.f32.mrf.mxu1 }
 0x70b   :  { %v2396_v58 = vmul.f32 %v2301_v17, %v2301_v17  ;;  %v2394_v22 = vmul.f32 %v2230_v0, %v2230_v0 }
 0x70c   :  { %v2232_v20 = vpop.f32.mrf.mxu0  ;;  %v2303_v1 = vpop.f32.mrf.mxu1 }
 0x70d   :  { %v2397_v21 = vmul.f32 %v2303_v1, %v2303_v1  ;;  %2323 = vmatprep.subr.mxu0 %v2303_v1  ;;  %v2395_v59 = vmul.f32 %v2232_v20, %v2232_v20 }
 0x70e   :  { %2324 = vmatpush1.msra.mxu0 %v2301_v17 }
 0x70f   :  { %2325 = vmatprep.subr.mxu0 %v2232_v20  ;;  %2412 = vmatprep.subr.mxu1 %v2397_v21 }
 0x710   :  { %2326 = vmatpush1.msra.mxu0 %v2230_v0  ;;  %2413 = vmatpush1.msra.mxu1 %v2396_v58 }
 0x711   :  { %2327 = vmatprep.subr.mxu0 %v2161_v16  ;;  %2414 = vmatprep.subr.mxu1 %v2395_v59 }
 0x712   :  { %2328 = vmatpush1.msra.mxu0 %v2159_v14  ;;  %2415 = vmatpush1.msra.mxu1 %v2394_v22 }
 0x713   :  { %2329 = vmatprep.subr.mxu0 %v2090_v15  ;;  %2416 = vmatprep.subr.mxu1 %v2393_v23 }
 0x714   :  { %2330 = vmatpush1.msra.mxu0 %v2088_v13  ;;  %2417 = vmatpush1.msra.mxu1 %v2392_v24 }
 0x715   :  { %2331 = vmatprep.subr.mxu0 %v3674_v19  ;;  %2418 = vmatprep.subr.mxu1 %v2391_v25  ;;  %v2382_v19 = vmul.f32 %v1875_v2, %v1875_v2 }
 0x716   :  { %2332 = vmatpush1.msra.mxu0 %v3672_v18  ;;  %2419 = vmatpush1.msra.mxu1 %v2390_v26  ;;  %v2876_v18 = vld [vmem:[%s4106_s1 + $0x8] sm:$0xff] }
 0x717   :  { %2333 = vmatprep.subr.mxu0 %v2019_v46  ;;  %2420 = vmatprep.subr.mxu1 %v2389_v27 }
 0x718   :  { %2334 = vmatpush1.msra.mxu0 %v2017_v9  ;;  %2421 = vmatpush1.msra.mxu1 %v2388_v28 }
 0x719   :  { %2335 = vmatprep.subr.mxu0 %v1948_v10  ;;  %2422 = vmatprep.subr.mxu1 %v2387_v29  ;;  %v2489_v10 = vpop.permute.xlu0 %2488 }
 0x71a   :  { %2336 = vmatpush1.msra.mxu0 %v1946_v5  ;;  %2423 = vmatpush1.msra.mxu1 %v2386_v30 }
 0x71b   :  { %2337 = vmatprep.subr.mxu0 %v1877_v4  ;;  %2424 = vmatprep.subr.mxu1 %v2385_v31  ;;  %v88_v31 = vld [vmem:[%s4110_s5 + $0x10] sm:$0xff] }
 0x71c   :  { %2338 = vmatpush1.msra.mxu0 %v1875_v2  ;;  %2425 = vmatpush1.msra.mxu1 %v2384_v32  ;;  %v1355_v2 = vand.u32 2147483648, %v3666_v6  ;;  %v86_v32 = vld [vmem:[%s4110_s5] sm:$0xff] }
 0x71d   :  { %2339 = vmatprep.subr.mxu0 %v1806_v3  ;;  %2426 = vmatprep.subr.mxu1 %v2383_v33  ;;  %v1362_v3 = vand.u32 2147483648, %v3668_v7  ;;  %v89_v33 = vld [vmem:[%s4110_s5 + $0x18] sm:$0xff] }
 0x71e   :  { %2340 = vmatpush1.msra.mxu0 %v3697_v63  ;;  %2427 = vmatpush1.msra.mxu1 %v2382_v19  ;;  %v87_v19 = vld [vmem:[%s4110_s5 + $0x8] sm:$0xff] }
 0x71f   :  { %2888 = vmatmul.mubr.msk.f32.vlgmr.msra.gmra.mxu0 %vm1183_vm0, %v2876_v18  ;;  %2428 = vmatprep.subr.mxu1 %v2381_v34 }
 0x720   :  { %2429 = vmatpush1.msra.mxu1 %v2380_v35  ;;  %2742 = vmatprep.mubr.f32.mxu0 %v3531_v12 }
 0x721   :  { %2889 = vmatmul.mubr.msk.f32.vlgmr.msra.gmra.mxu1 %vm1183_vm0, %v3436_v36  ;;  %v2887_v36 = vld [vmem:[%s4110_s5 + $0x98] sm:$0xff] }
 0x722   :  { %2821 = vmatprep.mubr.f32.mxu1 %v3531_v12  ;;  %v85_v12 = vld [vmem:[%s4109_s4] sm:$0xff] }
 0x723   :  { %v1364_v11 = vadd.f32 1e-06, %v85_v12 }
 0x7df   :  { %v3715_v37 = vpop.f32.mrf.mxu0 }
 0x7e1   :  { %v3717_v38 = vpop.f32.mrf.mxu0  ;;  %v2464_v42 = vpop.f32.mrf.mxu1 }
 0x7e2   :  { %2708 = vmatprep.subr.mxu0 %v3717_v38  ;;  %vm2471_vm3 = vcmp.eq.f32.partialorder %v2464_v42, inf  ;;  %v2474_v55 = vand.u32 2147483648, %v2464_v42  ;;  %vm2473_vm5 = vcmp.eq.f32.partialorder %v2464_v42, 0.0 }
 0x7e3   :  { %2709 = vmatpush1.msra.mxu0 %v3715_v37  ;;  %v2466_v43 = vpop.f32.mrf.mxu1 }
 0x7e4   :  { %2890 = vmatmul.mubr.msk.f32.vlgmr.msra.gmra.mxu0 %vm1559_vm1, %v3721_v39  ;;  %2904 = vrsqrt.f32 %v2466_v43  ;;  %vm2478_vm2 = vcmp.eq.f32.partialorder %v2466_v43, inf  ;;  %v2481_v52 = vand.u32 2147483648, %v2466_v43  ;;  %vm2480_vm4 = vcmp.eq.f32.partialorder %v2466_v43, 0.0 }
 0x7e5   :  { %2906 = vrsqrt.f32 %v2464_v42 }
 0x7e6   :  { %2908 = vrsqrt.f32 %v3666_v6 }
 0x7e7   :  { %2910 = vrsqrt.f32 %v3668_v7 }
 0x7f1   :  { %v2905_v47 = vpop.eup %2904 }
 0x7f2   :  { %v2907_v48 = vpop.eup %2906  ;;  %v2477_v49 = vmul.f32 %v2905_v47, %v2466_v43  ;;  %v2881_v47 = vld [vmem:[%s4110_s5 + $0x68] sm:$0xff] }
 0x7f3   :  { %v2470_v50 = vmul.f32 %v2907_v48, %v2464_v42  ;;  %v2909_v51 = vpop.eup %2908 }
 0x7f4   :  { %v2911_v53 = vpop.eup %2910  ;;  %v2479_v54 = vsel %vm2478_vm2, %v2466_v43, %v2477_v49  ;;  %v1351_v60 = vmul.f32 %v2909_v51, %v3666_v6 }
 0x7f5   :  { %v2472_v56 = vsel %vm2471_vm3, %v2464_v42, %v2470_v50  ;;  %v2482_v57 = vsel %vm2480_vm4, %v2481_v52, %v2479_v54  ;;  %v1358_v61 = vmul.f32 %v2911_v53, %v3668_v7  ;;  %v2880_v50 = vld [vmem:[%s4110_s5 + $0x60] sm:$0xff] }
 0x7f6   :  { %v2475_v62 = vsel %vm2473_vm5, %v2474_v55, %v2472_v56  ;;  %v2485_v63 = vadd.f32 1e-06, %v2482_v57  ;;  %v1353_v4 = vsel %vm1352_vm6, %v3666_v6, %v1351_v60  ;;  %v90_v54 = vld [vmem:[%s4110_s5 + $0x20] sm:$0xff]  ;;  %v91_v55 = vld [vmem:[%s4110_s5 + $0x28] sm:$0xff] }
 0x7f7   :  { %v1360_v5 = vsel %vm1359_vm7, %v3668_v7, %v1358_v61  ;;  %v2484_v9 = vadd.f32 1e-06, %v2475_v62  ;;  %v1356_v14 = vsel %vm1354_vm8, %v1355_v2, %v1353_v4  ;;  %v2883_v62 = vld [vmem:[%s4110_s5 + $0x78] sm:$0xff]  ;;  %v92_v4 = vld [vmem:[%s4110_s5 + $0x30] sm:$0xff] }
 0x7f8   :  { %v2492_v46 = vmul.f32 %v2489_v10, %v2485_v63  ;;  %v1363_v15 = vsel %vm1361_vm9, %v1362_v3, %v1360_v5  ;;  %v1365_v1 = vadd.f32 1e-06, %v1356_v14  ;;  %v2882_v63 = vld [vmem:[%s4110_s5 + $0x70] sm:$0xff]  ;;  %v93_v5 = vld [vmem:[%s4110_s5 + $0x38] sm:$0xff]  ;;  %v2885_v14 = vld [vmem:[%s4110_s5 + $0x88] sm:$0xff] }
 0x7f9   :  { %v2491_v0 = vmul.f32 %v2489_v10, %v2484_v9  ;;  %v1366_v6 = vadd.f32 1e-06, %v1363_v15  ;;  %v2884_v15 = vld [vmem:[%s4110_s5 + $0x80] sm:$0xff] }
 0x7fa   :  { %2912 = vrcp.f32 %v2492_v46 }
 0x7fb   :  { %2914 = vrcp.f32 %v2491_v0 }
 0x807   :  { %v2913_v23 = vpop.eup %2912 }
 0x808   :  { %v2915_v24 = vpop.eup %2914  ;;  %v3753_v26 = vmul.f32 %v2913_v23, %v3717_v38  ;;  %v66_v23 = vlaneseq }
 0x809   :  { %v3759_v29 = vmul.f32 %v2915_v24, %v3715_v37 }
 0x80a   :  { %v2498_v18 = vmul.f32 2.0, %v3753_v26  ;;  %v67_v24 = vand.u32 127, %v66_v23 }
 0x80c   :  { %v3804_v42 = vadd.f32 %v2887_v36, %v2498_v18  ;;  %v3822_v53 = vadd.f32 %v2881_v47, %v2498_v18  ;;  %v3843_v3 = vadd.f32 %v2883_v62, %v2498_v18  ;;  %v3867_v0 = vadd.f32 %v2885_v14, %v2498_v18 }
 0x8a4   :  { %v2744_v40 = vpop.f32.mrf.mxu0 }
 0x8a6   :  { %v2746_v41 = vpop.f32.mrf.mxu0 }
 0x8a7   :  { %v2749_v8 = vadd.f32 %v2746_v41, %v2744_v40  ;;  %v2497_v40 = vmul.f32 2.0, %v3759_v29  ;;  %v2886_v41 = vld [vmem:[%s4110_s5 + $0x90] sm:$0xff] }
 0x8a9   :  { %2750 = vadd.xlane.f32.xlu1 %v2749_v8  ;;  %v2878_v8 = vld [vmem:[%s4110_s5 + $0x50] sm:$0xff]  ;;  %v3811_v48 = vadd.f32 %v2886_v41, %v2497_v40  ;;  %v2501_v56 = vadd.f32 %v2880_v50, %v2497_v40  ;;  %v3851_v9 = vadd.f32 %v2882_v63, %v2497_v40 }
 0x8aa   :  { %v3813_v49 = vadd.f32 %v2878_v8, %v2497_v40 }
 0x8ab   :  { %v2521_v51 = vmax.f32 %v3811_v48, %v3804_v42  ;;  %v2512_v57 = vmax.f32 %v2501_v56, %v3822_v53  ;;  %v2515_v10 = vmax.f32 %v3851_v9, %v3843_v3 }
 0x8ba   :  { %1369 = vperm.xlu1 %2900, %v1364_v11  }
 0x932   :  { %v2751_v13 = vpop.xlane.xlu1 %2750 }
 0x933   :  { %v2752_v16 = vmul.f32 0.001953125, %v2751_v13 }
 0x935   :  { %v3741_v17 = vsub.f32 %v3715_v37, %v2752_v16  ;;  %v3744_v20 = vsub.f32 %v3717_v38, %v2752_v16  ;;  %v2879_v37 = vld [vmem:[%s4110_s5 + $0x58] sm:$0xff] }
 0x936   :  { %v1370_v21 = vpop.permute.xlu1 %1369  ;;  %v3806_v43 = vadd.f32 %v2879_v37, %v2498_v18 }
 0x937   :  { %v2755_v7 = vmul.f32 %v3741_v17, %v3741_v17  ;;  %v1372_v58 = vmul.f32 %v1370_v21, %v1365_v1  ;;  %v1373_v59 = vmul.f32 %v1370_v21, %v1366_v6  ;;  %v2756_v22 = vmul.f32 %v3744_v20, %v3744_v20  ;;  %v94_v1 = vld [vmem:[%s4110_s5 + $0x40] sm:$0xff]  ;;  %v95_v6 = vld [vmem:[%s4110_s5 + $0x48] sm:$0xff] }
 0x938   :  { %v2509_v52 = vmax.f32 %v3813_v49, %v3806_v43  ;;  %v3875_v21 = vadd.f32 %v2884_v15, %v2497_v40 }
 0x939   :  { %2916 = vrcp.f32 %v1372_v58  ;;  %2787 = vmatprep.subr.mxu1 %v2756_v22 }
 0x93a   :  { %2918 = vrcp.f32 %v1373_v59  ;;  %2788 = vmatpush1.msra.mxu1 %v2755_v7  ;;  %v2518_v7 = vmax.f32 %v3875_v21, %v3867_v0 }
 0x93b   :  { %2891 = vmatmul.mubr.msk.f32.vlgmr.msra.gmra.mxu1 %vm1559_vm1, %v3721_v39 }
 0x946   :  { %v2917_v25 = vpop.eup %2916 }
 0x947   :  { %v2919_v27 = vpop.eup %2918  ;;  %v3756_v28 = vmul.f32 %v2917_v25, %v3642_v44  ;;  %v68_v25 = vadd.s32 128, %v67_v24 }
 0x948   :  { %v3762_v30 = vmul.f32 %v2919_v27, %v3644_v45  ;;  %v3885_v27 = vcvt.s32.f32 %v67_v24 }
 0x949   :  { %v1378_v44 = vmul.f32 2.0, %v3756_v28 }
 0x94a   :  { %v1379_v45 = vmul.f32 2.0, %v3762_v30 }
 0x94b   :  { %v3779_v34 = vadd.f32 %v1378_v44, %v88_v31  ;;  %v3781_v35 = vadd.f32 %v1378_v44, %v86_v32  ;;  %v3831_v60 = vadd.f32 %v1378_v44, %v90_v54  ;;  %v3855_v46 = vadd.f32 %v1378_v44, %v92_v4 }
 0x94c   :  { %v3789_v38 = vadd.f32 %v1379_v45, %v89_v33  ;;  %v3791_v39 = vadd.f32 %v1379_v45, %v87_v19  ;;  %v3833_v61 = vadd.f32 %v1379_v45, %v91_v55  ;;  %v3857_v13 = vadd.f32 %v1379_v45, %v93_v5 }
 0x94d   :  { %v3879_v58 = vadd.f32 %v1378_v44, %v94_v1  ;;  %v3881_v59 = vadd.f32 %v1379_v45, %v95_v6  ;;  %v3887_v31 = vcvt.s32.f32 %v68_v25 }
 0x94e   :  { %v1393_v12 = vmax.f32 %v3779_v34, %v3789_v38  ;;  %v1390_v11 = vmax.f32 %v3781_v35, %v3791_v39  ;;  %v1396_v2 = vmax.f32 %v3831_v60, %v3833_v61  ;;  %v1399_v16 = vmax.f32 %v3855_v46, %v3857_v13 }
 0x94f   :  { %v1402_v22 = vmax.f32 %v3879_v58, %v3881_v59 }
 0x950   :  { %1394 = vmax.xlane.f32.xlu0 %v1393_v12  ;;  %1391 = vmax.xlane.f32.xlu1 %v1390_v11 }
 0x954   :  { %2522 = vmax.xlane.f32.xlu0 %v2521_v51  ;;  %2510 = vmax.xlane.f32.xlu1 %v2509_v52 }
 0x958   :  { %2513 = vmax.xlane.f32.xlu1 %v2512_v57 }
 0x95c   :  { %1397 = vmax.xlane.f32.xlu1 %v1396_v2 }
 0x960   :  { %2516 = vmax.xlane.f32.xlu1 %v2515_v10 }
 0x964   :  { %1400 = vmax.xlane.f32.xlu1 %v1399_v16 }
 0x968   :  { %2519 = vmax.xlane.f32.xlu1 %v2518_v7 }
 0x96c   :  { %1403 = vmax.xlane.f32.xlu1 %v1402_v22 }
 0x9d9   :  { %v1392_v32 = vpop.xlane.xlu1 %1391  ;;  %v1395_v33 = vpop.xlane.xlu0 %1394 }
 0x9da   :  { %vm1405_vm10 = vcmp.ge.f32.partialorder %v3781_v35, %v1392_v32  ;;  %vm1406_vm11 = vcmp.ge.f32.partialorder %v3791_v39, %v1392_v32  ;;  %vm1407_vm12 = vcmp.ge.f32.partialorder %v3779_v34, %v1395_v33  ;;  %vm1408_vm13 = vcmp.ge.f32.partialorder %v3789_v38, %v1395_v33 }
 0x9db   :  { %v1415_v44 = vsel %vm1405_vm10, %v3885_v27, 256.0  ;;  %v1416_v19 = vsel %vm1406_vm11, %v3887_v31, 256.0  ;;  %v1417_v45 = vsel %vm1407_vm12, %v3885_v27, 256.0  ;;  %v1418_v18 = vsel %vm1408_vm13, %v3887_v31, 256.0 }
 0x9dc   :  { %v1425_v36 = vmin.f32 %v1415_v44, %v1416_v19  ;;  %v1428_v37 = vmin.f32 %v1417_v45, %v1418_v18 }
 0x9dd   :  { %v2511_v40 = vpop.xlane.xlu1 %2510  ;;  %v2523_v55 = vpop.xlane.xlu0 %2522 }
 0x9de   :  { %vm2524_vm14 = vcmp.ge.f32.partialorder %v3813_v49, %v2511_v40  ;;  %vm2525_vm15 = vcmp.ge.f32.partialorder %v3806_v43, %v2511_v40  ;;  %1426 = vmin.xlane.f32.xlu1 %v1425_v36  ;;  %1429 = vmin.xlane.f32.xlu0 %v1428_v37  ;;  %vm2532_vm8 = vcmp.ge.f32.partialorder %v3811_v48, %v2523_v55 }
 0x9df   :  { %v2534_v34 = vsel %vm2524_vm14, %v3885_v27, 256.0  ;;  %v2535_v35 = vsel %vm2525_vm15, %v3887_v31, 256.0  ;;  %vm2533_vm9 = vcmp.ge.f32.partialorder %v3804_v42, %v2523_v55  ;;  %v2542_v4 = vsel %vm2532_vm8, %v3885_v27, 256.0 }
 0x9e0   :  { %v2544_v38 = vmin.f32 %v2534_v34, %v2535_v35  ;;  %v2543_v5 = vsel %vm2533_vm9, %v3887_v31, 256.0 }
 0x9e1   :  { %v2514_v39 = vpop.xlane.xlu1 %2513  ;;  %v2556_v10 = vmin.f32 %v2542_v4, %v2543_v5 }
 0x9e2   :  { %vm2526_vm0 = vcmp.ge.f32.partialorder %v2501_v56, %v2514_v39  ;;  %vm2527_vm1 = vcmp.ge.f32.partialorder %v3822_v53, %v2514_v39  ;;  %2545 = vmin.xlane.f32.xlu1 %v2544_v38 }
 0x9e3   :  { %v2536_v41 = vsel %vm2526_vm0, %v3885_v27, 256.0  ;;  %v2537_v8 = vsel %vm2527_vm1, %v3887_v31, 256.0 }
 0x9e4   :  { %v2547_v12 = vmin.f32 %v2536_v41, %v2537_v8 }
 0x9e5   :  { %v1398_v11 = vpop.xlane.xlu1 %1397 }
 0x9e6   :  { %vm1409_vm2 = vcmp.ge.f32.partialorder %v3831_v60, %v1398_v11  ;;  %vm1410_vm3 = vcmp.ge.f32.partialorder %v3833_v61, %v1398_v11  ;;  %2548 = vmin.xlane.f32.xlu0 %v2547_v12 }
 0x9e7   :  { %v1419_v43 = vsel %vm1409_vm2, %v3885_v27, 256.0  ;;  %v1420_v47 = vsel %vm1410_vm3, %v3887_v31, 256.0 }
 0x9e8   :  { %v1431_v49 = vmin.f32 %v1419_v43, %v1420_v47 }
 0x9e9   :  { %v2517_v50 = vpop.xlane.xlu1 %2516 }
 0x9ea   :  { %vm2528_vm4 = vcmp.ge.f32.partialorder %v3851_v9, %v2517_v50  ;;  %vm2529_vm5 = vcmp.ge.f32.partialorder %v3843_v3, %v2517_v50  ;;  %1432 = vmin.xlane.f32.xlu1 %v1431_v49 }
 0x9eb   :  { %v2538_v51 = vsel %vm2528_vm4, %v3885_v27, 256.0  ;;  %v2539_v52 = vsel %vm2529_vm5, %v3887_v31, 256.0 }
 0x9ec   :  { %v2550_v53 = vmin.f32 %v2538_v51, %v2539_v52 }
 0x9ed   :  { %v1401_v54 = vpop.xlane.xlu1 %1400 }
 0x9ee   :  { %vm1411_vm6 = vcmp.ge.f32.partialorder %v3855_v46, %v1401_v54  ;;  %vm1412_vm7 = vcmp.ge.f32.partialorder %v3857_v13, %v1401_v54  ;;  %2551 = vmin.xlane.f32.xlu0 %v2550_v53  ;;  %v72_v46 = vmul.f32 0.0625, %v3885_v27  ;;  %v73_v13 = vmul.f32 0.0625, %v3887_v31 }
 0x9ef   :  { %v1421_v56 = vsel %vm1411_vm6, %v3885_v27, 256.0  ;;  %v1422_v57 = vsel %vm1412_vm7, %v3887_v31, 256.0 }
 0x9f0   :  { %v1434_v60 = vmin.f32 %v1421_v56, %v1422_v57  ;;  %v3930_v14 = vfloor.f32 %v72_v46  ;;  %v3932_v15 = vfloor.f32 %v73_v13 }
 0x9f1   :  { %v2520_v61 = vpop.xlane.xlu1 %2519 }
 0x9f2   :  { %vm2530_vm10 = vcmp.ge.f32.partialorder %v3875_v21, %v2520_v61  ;;  %vm2531_vm11 = vcmp.ge.f32.partialorder %v3867_v0, %v2520_v61  ;;  %1435 = vmin.xlane.f32.xlu1 %v1434_v60  ;;  %v76_v16 = vmul.f32 16.0, %v3930_v14  ;;  %v77_v0 = vmul.f32 16.0, %v3932_v15 }
 0x9f3   :  { %v2540_v62 = vsel %vm2530_vm10, %v3885_v27, 256.0  ;;  %v2541_v63 = vsel %vm2531_vm11, %v3887_v31, 256.0 }
 0x9f4   :  { %v2553_v2 = vmin.f32 %v2540_v62, %v2541_v63  ;;  %v3940_v22 = vsub.f32 %v3887_v31, %v77_v0 }
 0x9f5   :  { %v1404_v3 = vpop.xlane.xlu1 %1403 }
 0x9f6   :  { %vm1413_vm12 = vcmp.ge.f32.partialorder %v3879_v58, %v1404_v3  ;;  %vm1414_vm13 = vcmp.ge.f32.partialorder %v3881_v59, %v1404_v3  ;;  %2554 = vmin.xlane.f32.xlu0 %v2553_v2  ;;  %v3937_v59 = vsub.f32 %v3885_v27, %v76_v16 }
 0x9f7   :  { %v1423_v42 = vsel %vm1413_vm12, %v3885_v27, 256.0  ;;  %v1424_v48 = vsel %vm1414_vm13, %v3887_v31, 256.0 }
 0x9f8   :  { %v1437_v9 = vmin.f32 %v1423_v42, %v1424_v48 }
 0x9fa   :  { %1438 = vmin.xlane.f32.xlu1 %v1437_v9  ;;  %2557 = vmin.xlane.f32.xlu0 %v2556_v10 }
 0xa67   :  { %v1427_v1 = vpop.xlane.xlu1 %1426  ;;  %v1430_v21 = vpop.xlane.xlu0 %1429 }
 0xa68   :  { %v1440_v6 = vmul.f32 0.0625, %v1427_v1  ;;  %v1441_v7 = vmul.f32 0.0625, %v1430_v21 }
 0xa6a   :  { %v1445_v58 = vfloor.f32 %v1440_v6  ;;  %v1446_v23 = vfloor.f32 %v1441_v7 }
 0xa6b   :  { %v2546_v24 = vpop.xlane.xlu1 %2545 }
 0xa6c   :  { %v1450_v25 = vmul.f32 16.0, %v1445_v58  ;;  %v2559_v32 = vmul.f32 0.0625, %v2546_v24  ;;  %v1460_v33 = vsub.f32 %v3930_v14, %v1445_v58  ;;  %v1461_v44 = vsub.f32 %v3932_v15, %v1445_v58 }
 0xa6d   :  { %v1451_v19 = vmul.f32 16.0, %v1446_v23  ;;  %v1462_v45 = vsub.f32 %v3930_v14, %v1446_v23  ;;  %v1463_v18 = vsub.f32 %v3932_v15, %v1446_v23 }
 0xa6e   :  { %v1455_v36 = vsub.f32 %v1427_v1, %v1450_v25  ;;  %v2564_v37 = vfloor.f32 %v2559_v32  ;;  %v1470_v27 = vand.u32 2147483647, %v1460_v33  ;;  %v1471_v40 = vand.u32 2147483647, %v1461_v44 }
 0xa6f   :  { %v1456_v34 = vsub.f32 %v1430_v21, %v1451_v19  ;;  %v2549_v31 = vpop.xlane.xlu0 %2548  ;;  %v1472_v35 = vand.u32 2147483647, %v1462_v45  ;;  %v1473_v38 = vand.u32 2147483647, %v1463_v18 }
 0xa70   :  { %v1490_v39 = vsub.f32 %v3937_v59, %v1455_v36  ;;  %v1491_v41 = vsub.f32 %v3940_v22, %v1455_v36  ;;  %v2569_v8 = vmul.f32 16.0, %v2564_v37  ;;  %v2560_v12 = vmul.f32 0.0625, %v2549_v31 }
 0xa71   :  { %v1492_v11 = vsub.f32 %v3937_v59, %v1456_v34  ;;  %v1493_v43 = vsub.f32 %v3940_v22, %v1456_v34  ;;  %vm1480_vm14 = vcmp.le.f32.partialorder %v1470_v27, 5.0  ;;  %vm1481_vm15 = vcmp.le.f32.partialorder %v1471_v40, 5.0 }
 0xa72   :  { %v1500_v47 = vand.u32 2147483647, %v1490_v39  ;;  %v1501_v49 = vand.u32 2147483647, %v1491_v41  ;;  %v2574_v50 = vsub.f32 %v2546_v24, %v2569_v8  ;;  %v3950_v51 = vfloor.f32 %v2560_v12 }
 0xa73   :  { %v1502_v52 = vand.u32 2147483647, %v1492_v11  ;;  %v1503_v53 = vand.u32 2147483647, %v1493_v43  ;;  %v1433_v54 = vpop.xlane.xlu1 %1432  ;;  %vm1482_vm0 = vcmp.le.f32.partialorder %v1472_v35, 5.0  ;;  %vm1483_vm1 = vcmp.le.f32.partialorder %v1473_v38, 5.0 }
 0xa74   :  { %v2609_v55 = vsub.f32 %v3937_v59, %v2574_v50  ;;  %v2610_v56 = vsub.f32 %v3940_v22, %v2574_v50  ;;  %v2570_v57 = vmul.f32 16.0, %v3950_v51  ;;  %v1442_v60 = vmul.f32 0.0625, %v1433_v54 }
 0xa75   :  { %vm1510_vm2 = vcmp.le.f32.partialorder %v1500_v47, 5.0  ;;  %vm1511_vm3 = vcmp.le.f32.partialorder %v1501_v49, 5.0  ;;  %vm1512_vm4 = vcmp.le.f32.partialorder %v1502_v52, 5.0  ;;  %vm1513_vm5 = vcmp.le.f32.partialorder %v1503_v53, 5.0  ;;  %v2823_v53 = vpop.f32.mrf.mxu1 }
 0xa76   :  { %v2619_v61 = vand.u32 2147483647, %v2609_v55  ;;  %v2620_v62 = vand.u32 2147483647, %v2610_v56  ;;  %v2575_v63 = vsub.f32 %v2549_v31, %v2570_v57  ;;  %v1447_v2 = vfloor.f32 %v1442_v60  ;;  %vm3956_vm6 = vmand %vm1480_vm14, %vm1510_vm2 }
 0xa77   :  { %v2552_v4 = vpop.xlane.xlu0 %2551  ;;  %vm3961_vm7 = vmand %vm1481_vm15, %vm1511_vm3  ;;  %v1530_v42 = vsel %vm3956_vm6, %v3756_v28, 0.0  ;;  %v2579_v48 = vsub.f32 %v3930_v14, %v2564_v37  ;;  %v2580_v9 = vsub.f32 %v3932_v15, %v2564_v37  ;;  %v2581_v10 = vsub.f32 %v3930_v14, %v3950_v51 }
 0xa78   :  { %v2611_v46 = vsub.f32 %v3937_v59, %v2575_v63  ;;  %v2612_v13 = vsub.f32 %v3940_v22, %v2575_v63  ;;  %v1452_v16 = vmul.f32 16.0, %v1447_v2  ;;  %v2561_v0 = vmul.f32 0.0625, %v2552_v4  ;;  %vm3976_vm8 = vmand %vm1482_vm0, %vm1512_vm4 }
 0xa79   :  { %v1531_v6 = vsel %vm3961_vm7, %v3762_v30, 0.0  ;;  %vm3985_vm9 = vmand %vm1483_vm1, %vm1513_vm5  ;;  %v1532_v7 = vsel %vm3976_vm8, %v3756_v28, 0.0  ;;  %v2589_v58 = vand.u32 2147483647, %v2579_v48  ;;  %v2590_v23 = vand.u32 2147483647, %v2580_v9  ;;  %v2825_v48 = vpop.f32.mrf.mxu1 }
 0xa7a   :  { %v3992_v24 = vand.u32 2147483647, %v2611_v46  ;;  %v3994_v25 = vand.u32 2147483647, %v2612_v13  ;;  %v1457_v32 = vsub.f32 %v1433_v54, %v1452_v16  ;;  %v3996_v33 = vfloor.f32 %v2561_v0 }
 0xa7b   :  { %v1540_v44 = vadd.f32 %v1531_v6, %v1530_v42  ;;  %v1533_v19 = vsel %vm3985_vm9, %v3762_v30, 0.0  ;;  %v1436_v45 = vpop.xlane.xlu1 %1435  ;;  %vm2599_vm10 = vcmp.le.f32.partialorder %v2589_v58, 5.0  ;;  %vm2600_vm11 = vcmp.le.f32.partialorder %v2590_v23, 5.0 }
 0xa7c   :  { %v1494_v18 = vsub.f32 %v3937_v59, %v1457_v32  ;;  %v1495_v36 = vsub.f32 %v3940_v22, %v1457_v32  ;;  %v2571_v37 = vmul.f32 16.0, %v3996_v33  ;;  %v1543_v27 = vadd.f32 %v1533_v19, %v1532_v7 }
 0xa7d   :  { %1541 = vadd.xlane.f32.xlu1 %v1540_v44  ;;  %v1443_v40 = vmul.f32 0.0625, %v1436_v45  ;;  %vm2629_vm12 = vcmp.le.f32.partialorder %v2619_v61, 5.0  ;;  %vm2630_vm13 = vcmp.le.f32.partialorder %v2620_v62, 5.0  ;;  %v1464_v34 = vsub.f32 %v3930_v14, %v1447_v2 }
 0xa7e   :  { %v1504_v31 = vand.u32 2147483647, %v1494_v18  ;;  %v1505_v35 = vand.u32 2147483647, %v1495_v36  ;;  %v2576_v38 = vsub.f32 %v2552_v4, %v2571_v37  ;;  %1544 = vadd.xlane.f32.xlu0 %v1543_v27  ;;  %vm2639_vm14 = vmand %vm2599_vm10, %vm2629_vm12  ;;  %v1465_v39 = vsub.f32 %v3932_v15, %v1447_v2 }
 0xa7f   :  { %v4007_v41 = vfloor.f32 %v1443_v40  ;;  %vm2640_vm15 = vmand %vm2600_vm11, %vm2630_vm13  ;;  %v2649_v8 = vsel %vm2639_vm14, %v3759_v29, 0.0  ;;  %v2555_v12 = vpop.xlane.xlu0 %2554  ;;  %v1474_v11 = vand.u32 2147483647, %v1464_v34  ;;  %v2582_v43 = vsub.f32 %v3932_v15, %v3950_v51 }
 0xa80   :  { %v2613_v47 = vsub.f32 %v3937_v59, %v2576_v38  ;;  %v2614_v49 = vsub.f32 %v3940_v22, %v2576_v38  ;;  %v2650_v50 = vsel %vm2640_vm15, %v3753_v26, 0.0  ;;  %v2562_v52 = vmul.f32 0.0625, %v2555_v12 }
 0xa81   :  { %v1453_v54 = vmul.f32 16.0, %v4007_v41  ;;  %v2659_v55 = vadd.f32 %v2650_v50, %v2649_v8  ;;  %v1475_v56 = vand.u32 2147483647, %v1465_v39  ;;  %vm1484_vm0 = vcmp.le.f32.partialorder %v1474_v11, 5.0 }
 0xa82   :  { %v2623_v57 = vand.u32 2147483647, %v2613_v47  ;;  %v2624_v60 = vand.u32 2147483647, %v2614_v49  ;;  %v4017_v61 = vfloor.f32 %v2562_v52  ;;  %vm1514_vm1 = vcmp.le.f32.partialorder %v1504_v31, 5.0 }
 0xa83   :  { %v1458_v62 = vsub.f32 %v1436_v45, %v1453_v54  ;;  %2660 = vadd.xlane.f32.xlu1 %v2659_v55  ;;  %v1439_v51 = vpop.xlane.xlu1 %1438  ;;  %v2558_v63 = vpop.xlane.xlu0 %2557  ;;  %vm1485_vm2 = vcmp.le.f32.partialorder %v1475_v56, 5.0  ;;  %vm1515_vm3 = vcmp.le.f32.partialorder %v1505_v35, 5.0  ;;  %vm1524_vm4 = vmand %vm1484_vm0, %vm1514_vm1  ;;  %v2591_v2 = vand.u32 2147483647, %v2581_v10 }
 0xa84   :  { %v2572_v3 = vmul.f32 16.0, %v4017_v61  ;;  %v1444_v4 = vmul.f32 0.0625, %v1439_v51  ;;  %v2563_v5 = vmul.f32 0.0625, %v2558_v63  ;;  %vm1525_vm5 = vmand %vm1485_vm2, %vm1515_vm3  ;;  %v1534_v42 = vsel %vm1524_vm4, %v3756_v28, 0.0 }
 0xa85   :  { %v1496_v9 = vsub.f32 %v3937_v59, %v1458_v62  ;;  %v1497_v46 = vsub.f32 %v3940_v22, %v1458_v62  ;;  %v1535_v13 = vsel %vm1525_vm5, %v3762_v30, 0.0  ;;  %v2592_v16 = vand.u32 2147483647, %v2582_v43 }
 0xa86   :  { %v2577_v0 = vsub.f32 %v2555_v12, %v2572_v3  ;;  %v4024_v1 = vfloor.f32 %v1444_v4  ;;  %v4026_v6 = vfloor.f32 %v2563_v5  ;;  %v1546_v10 = vadd.f32 %v1535_v13, %v1534_v42 }
 0xa87   :  { %v1506_v21 = vand.u32 2147483647, %v1496_v9  ;;  %v4028_v7 = vand.u32 2147483647, %v1497_v46  ;;  %vm2601_vm6 = vcmp.le.f32.partialorder %v2591_v2, 5.0  ;;  %v4030_v58 = vadd.f32 %v2825_v48, %v2823_v53 }
 0xa88   :  { %v2615_v23 = vsub.f32 %v3937_v59, %v2577_v0  ;;  %v2616_v32 = vsub.f32 %v3940_v22, %v2577_v0  ;;  %v1454_v44 = vmul.f32 16.0, %v4024_v1  ;;  %v2573_v19 = vmul.f32 16.0, %v4026_v6  ;;  %1547 = vadd.xlane.f32.xlu0 %v1546_v10 }
 0xa89   :  { %vm2631_vm7 = vcmp.le.f32.partialorder %v3992_v24, 5.0  ;;  %vm2632_vm8 = vcmp.le.f32.partialorder %v3994_v25, 5.0  ;;  %v2583_v45 = vsub.f32 %v3930_v14, %v3996_v33  ;;  %v2584_v18 = vsub.f32 %v3932_v15, %v3996_v33 }
 0xa8a   :  { %v2625_v36 = vand.u32 2147483647, %v2615_v23  ;;  %v1459_v37 = vsub.f32 %v1439_v51, %v1454_v44  ;;  %v2578_v27 = vsub.f32 %v2558_v63, %v2573_v19  ;;  %vm2602_vm9 = vcmp.le.f32.partialorder %v2592_v16, 5.0  ;;  %vm4043_vm10 = vmand %vm2601_vm6, %vm2631_vm7 }
 0xa8b   :  { %vm2642_vm11 = vmand %vm2602_vm9, %vm2632_vm8  ;;  %v2651_v24 = vsel %vm4043_vm10, %v3759_v29, 0.0  ;;  %v2593_v25 = vand.u32 2147483647, %v2583_v45  ;;  %v2594_v34 = vand.u32 2147483647, %v2584_v18  ;;  %vm2633_vm12 = vcmp.le.f32.partialorder %v2623_v57, 5.0 }
 0xa8c   :  { %v1498_v31 = vsub.f32 %v3937_v59, %v1459_v37  ;;  %v1499_v33 = vsub.f32 %v3940_v22, %v1459_v37  ;;  %v2617_v35 = vsub.f32 %v3937_v59, %v2578_v27  ;;  %v2618_v38 = vsub.f32 %v3940_v22, %v2578_v27 }
 0xa8d   :  { %v2626_v39 = vand.u32 2147483647, %v2616_v32  ;;  %v2652_v8 = vsel %vm2642_vm11, %v3753_v26, 0.0  ;;  %vm2603_vm13 = vcmp.le.f32.partialorder %v2593_v25, 5.0  ;;  %vm2634_vm14 = vcmp.le.f32.partialorder %v2624_v60, 5.0 }
 0xa8e   :  { %v1508_v12 = vand.u32 2147483647, %v1498_v31  ;;  %v1509_v11 = vand.u32 2147483647, %v1499_v33  ;;  %v2662_v43 = vadd.f32 %v2652_v8, %v2651_v24  ;;  %vm2604_vm15 = vcmp.le.f32.partialorder %v2594_v34, 5.0  ;;  %vm2643_vm0 = vmand %vm2603_vm13, %vm2633_vm12 }
 0xa8f   :  { %v2627_v47 = vand.u32 2147483647, %v2617_v35  ;;  %vm2644_vm1 = vmand %vm2604_vm15, %vm2634_vm14  ;;  %v2653_v49 = vsel %vm2643_vm0, %v3759_v29, 0.0  ;;  %v1466_v50 = vsub.f32 %v3930_v14, %v4007_v41  ;;  %v1467_v59 = vsub.f32 %v3932_v15, %v4007_v41 }
 0xa90   :  { %v2628_v22 = vand.u32 2147483647, %v2618_v38  ;;  %2663 = vadd.xlane.f32.xlu0 %v2662_v43  ;;  %v2654_v52 = vsel %vm2644_vm1, %v3753_v26, 0.0  ;;  %vm1516_vm2 = vcmp.le.f32.partialorder %v1506_v21, 5.0  ;;  %v2585_v53 = vsub.f32 %v3930_v14, %v4017_v61 }
 0xa91   :  { %v2665_v54 = vadd.f32 %v2654_v52, %v2653_v49  ;;  %v1476_v55 = vand.u32 2147483647, %v1466_v50  ;;  %v1477_v56 = vand.u32 2147483647, %v1467_v59  ;;  %v2586_v57 = vsub.f32 %v3932_v15, %v4017_v61  ;;  %v3439_v50 = vld [vmem:[%s4111_s6 + $0x8] sm:$0xff] }
 0xa92   :  { %vm1517_vm3 = vcmp.le.f32.partialorder %v4028_v7, 5.0  ;;  %v2595_v60 = vand.u32 2147483647, %v2585_v53  ;;  %vm2635_vm4 = vcmp.le.f32.partialorder %v2625_v36, 5.0  ;;  %v1468_v41 = vsub.f32 %v3930_v14, %v4024_v1 }
 0xa93   :  { %2666 = vadd.xlane.f32.xlu1 %v2665_v54  ;;  %vm1486_vm5 = vcmp.le.f32.partialorder %v1476_v55, 5.0  ;;  %v2596_v62 = vand.u32 2147483647, %v2586_v57  ;;  %vm2636_vm6 = vcmp.le.f32.partialorder %v2626_v39, 5.0  ;;  %v1469_v51 = vsub.f32 %v3932_v15, %v4024_v1 }
 0xa94   :  { %vm1487_vm7 = vcmp.le.f32.partialorder %v1477_v56, 5.0  ;;  %vm1526_vm8 = vmand %vm1486_vm5, %vm1516_vm2  ;;  %vm2605_vm9 = vcmp.le.f32.partialorder %v2595_v60, 5.0  ;;  %v1478_v63 = vand.u32 2147483647, %v1468_v41  ;;  %vm1518_vm10 = vcmp.le.f32.partialorder %v1508_v12, 5.0 }
 0xa95   :  { %vm1527_vm11 = vmand %vm1487_vm7, %vm1517_vm3  ;;  %v1536_v61 = vsel %vm1526_vm8, %v3756_v28, 0.0  ;;  %v1479_v2 = vand.u32 2147483647, %v1469_v51  ;;  %vm1519_vm12 = vcmp.le.f32.partialorder %v1509_v11, 5.0  ;;  %v2587_v3 = vsub.f32 %v3930_v14, %v4026_v6 }
 0xa96   :  { %v1537_v4 = vsel %vm1527_vm11, %v3762_v30, 0.0  ;;  %vm2606_vm13 = vcmp.le.f32.partialorder %v2596_v62, 5.0  ;;  %vm2645_vm14 = vmand %vm2605_vm9, %vm2635_vm4  ;;  %vm1488_vm15 = vcmp.le.f32.partialorder %v1478_v63, 5.0  ;;  %v2588_v5 = vsub.f32 %v3932_v15, %v4026_v6 }
 0xa97   :  { %v1549_v42 = vadd.f32 %v1537_v4, %v1536_v61  ;;  %2829 = vadd.xlane.f32.xlu1 %v4030_v58  ;;  %vm2646_vm0 = vmand %vm2606_vm13, %vm2636_vm6  ;;  %v2655_v48 = vsel %vm2645_vm14, %v3759_v29, 0.0  ;;  %v2597_v9 = vand.u32 2147483647, %v2587_v3  ;;  %vm2637_vm1 = vcmp.le.f32.partialorder %v2627_v47, 5.0  ;;  %v3438_v47 = vld [vmem:[%s4111_s6] sm:$0xff]  ;;  %s3500_s6 = scalar_lea.vmem %s2861_s25, 16 }
 0xa98   :  { %v2656_v14 = vsel %vm2646_vm0, %v3753_v26, 0.0  ;;  %vm1489_vm2 = vcmp.le.f32.partialorder %v1479_v2, 5.0  ;;  %vm1528_vm3 = vmand %vm1488_vm15, %vm1518_vm10  ;;  %v2598_v46 = vand.u32 2147483647, %v2588_v5  ;;  %vm2638_vm4 = vcmp.le.f32.partialorder %v2628_v22, 5.0  ;;  %p3501_p1 = scmp.ne.s32.totalorder %s2861_s25, %s3500_s6  ;;  %p3506_p3 = scmp.lt.s32.totalorder %s3504_s30, %s3500_s6 }
 0xa99   :  { %1550 = vadd.xlane.f32.xlu0 %v1549_v42  ;;  %v2668_v13 = vadd.f32 %v2656_v14, %v2655_v48  ;;  %vm1529_vm5 = vmand %vm1489_vm2, %vm1519_vm12  ;;  %v1538_v15 = vsel %vm1528_vm3, %v3756_v28, 0.0  ;;  %vm2607_vm7 = vcmp.le.f32.partialorder %v2597_v9, 5.0  ;;  %vm2850_vm10 = vcmask 0  }
 0xa9a   :  { %v1539_v16 = vsel %vm1529_vm5, %v3762_v30, 0.0  ;;  %vm2608_vm6 = vcmp.le.f32.partialorder %v2598_v46, 5.0  ;;  %vm2647_vm8 = vmand %vm2607_vm7, %vm2637_vm1  ;;  %p3507_p4 = por %p3506_p3, %p3505_p2 }
 0xa9b   :  { %2669 = vadd.xlane.f32.xlu1 %v2668_v13  ;;  %v1552_v0 = vadd.f32 %v1539_v16, %v1538_v15  ;;  %vm2648_vm9 = vmand %vm2608_vm6, %vm2638_vm4  ;;  %v2657_v1 = vsel %vm2647_vm8, %v3759_v29, 0.0 }
 0xa9c   :  { %v2658_v6 = vsel %vm2648_vm9, %v3753_v26, 0.0  ;;  %p3508_p5 = pnand %p3507_p4, %p3501_p1 }
 0xa9d   :  { %1553 = vadd.xlane.f32.xlu0 %v1552_v0  ;;  %v2671_v10 = vadd.f32 %v2658_v6, %v2657_v1 }
 0xa9f   :  { %2672 = vadd.xlane.f32.xlu1 %v2671_v10 }
 0xb06   :  { %v1542_v21 = vpop.xlane.xlu1 %1541 }
 0xb07   :  { %v1545_v7 = vpop.xlane.xlu0 %1544 }
 0xb08   :  { %v1555_v30 = vadd.f32 %v1545_v7, %v1542_v21 }
 0xb0c   :  { %v2661_v23 = vpop.xlane.xlu1 %2660 }
 0xb11   :  { %v1548_v58 = vpop.xlane.xlu0 %1547 }
 0xb12   :  { %v1556_v36 = vadd.f32 %v1555_v30, %v1548_v58 }
 0xb19   :  { %v2664_v32 = vpop.xlane.xlu0 %2663 }
 0xb1a   :  { %v2674_v19 = vadd.f32 %v2664_v32, %v2661_v23 }
 0xb1c   :  { %v2667_v28 = vpop.xlane.xlu1 %2666 }
 0xb1d   :  { %v2675_v26 = vadd.f32 %v2674_v19, %v2667_v28 }
 0xb20   :  { %v2830_v44 = vpop.xlane.xlu1 %2829 }
 0xb21   :  { %v2831_v45 = vmul.f32 0.001953125, %v2830_v44 }
 0xb22   :  { %v1551_v18 = vpop.xlane.xlu0 %1550 }
 0xb23   :  { %v2832_v37 = vadd.f32 1e-05, %v2831_v45  ;;  %v1557_v29 = vadd.f32 %v1556_v36, %v1551_v18 }
 0xb24   :  { %v2670_v27 = vpop.xlane.xlu1 %2669 }
 0xb25   :  { %2920 = vrsqrt.f32 %v2832_v37  ;;  %v2676_v24 = vadd.f32 %v2675_v26, %v2670_v27 }
 0xb26   :  { %v1554_v40 = vpop.xlane.xlu0 %1553 }
 0xb27   :  { %v1558_v25 = vadd.f32 %v1557_v29, %v1554_v40 }
 0xb28   :  { %v2673_v34 = vpop.xlane.xlu1 %2672 }
 0xb29   :  { %v2677_v31 = vadd.f32 %v2676_v24, %v2673_v34 }
 0xb2b   :  { %v2842_v33 = vadd.f32 %v2677_v31, %v1558_v25 }
 0xb2d   :  { %v2843_v35 = vrot.slane %v2842_v33, 4 }
 0xb2f   :  { %v2844_v38 = vadd.f32 %v2843_v35, %v2842_v33 }
 0xb31   :  { %v2845_v39 = vrot.slane %v2844_v38, 2 }
 0xb32   :  { %v2921_v8 = vpop.eup %2920 }
 0xb33   :  { %v2834_v12 = vmul.f32 %v2921_v8, %v3741_v17  ;;  %v2835_v11 = vmul.f32 %v2921_v8, %v3744_v20  ;;  %v2846_v43 = vadd.f32 %v2845_v39, %v2844_v38 }
 0xb35   :  { %v2836_v49 = vadd.f32 %v3438_v47, %v2834_v12  ;;  %v2837_v59 = vadd.f32 %v3439_v50, %v2835_v11  ;;  %v2847_v22 = vrot.slane %v2846_v43, 1 }
 0xb37   :  { %v2838_v52 = vmax.f32 %v2836_v49, 0.0  ;;  %v2839_v53 = vmax.f32 %v2837_v59, 0.0  ;;  %v2848_v54 = vadd.f32 %v2847_v22, %v2846_v43 }
 0xb39   :  { %2840 = vst [vmem:[%s4112_s7] sm:$0xff] %v2838_v52  ;;  %2841 = vst [vmem:[%s4112_s7 + $0x8] sm:$0xff] %v2839_v53  ;;  %v2849_v17 = vmul.f32 0.00020661157, %v2848_v54 }
 0xb3b   :  { %2851 = vst.msk [vmem:[#allocation8] sm:$0x1] %vm2850_vm10, %v2849_v17 }
 0xb3c   :  { %3511 = shalt.err (!%p3508_p5)
}
 0xb3d   :  { %2863 = dma.vmem_to_hbm [thread:$0]  %s2861_s25, 16, %s4113_s8, [#allocation4]  }
 0xb3e   :  { %3524 = dma.done.wait [#allocation4], 16  }
 0xb3f   :  { %3525 = vsyncadd [#allocation4], 4294967280 }
 0xb40   :  { %2869 = vsyncpa [#allocation3], 1 }
 0xb41   :  { %2870 = vsyncpa [#allocation6], 1 }
 0xb42   :  { %2871 = vsyncpa [#allocation4], 1 }

</bundles_post_ra>
